<compile_context>
chip_gen: v5e
topology: v5e:2x2
jax: 0.10.0
libtpu: 0.0.40
codegen_flags: <defaults>
</compile_context>

<pallas_src>
import jax
import jax.numpy as jnp
from jax import lax
from jax.experimental import pallas as pl
from jax.experimental.pallas import tpu as pltpu

C = 64        # hidden width (edge layers are zero-padded to this)
KH = KW = 3   # conv taps


def _fused_kernel(H, W, n_layers):
    M = H * W
    K = KH * C          # 192: contraction dim = (dy, cin)

    def kernel(x_ref, w_ref, s_ref, b_ref, o_ref, act_ref):
        # act_ref: (H, W, 3C) bf16.  Lane chunk j in {0,1,2} of row h holds the
        # previous layer's output at row (h + j - 1) (zeros outside the image),
        # i.e. the three dy taps are pre-gathered in channels at writeback time.

        zrow = jnp.zeros((1, W, C), jnp.bfloat16)
        col = lax.broadcasted_iota(jnp.int32, (H, W, C), 1)
        not_col0 = col != 0          # valid positions for the w-1 contribution
        not_colW = col != (W - 1)    # valid positions for the w+1 contribution

        def write_act(y):            # y: (H, W, C) float
            yb = y.astype(jnp.bfloat16)
            act_ref[:, :, C:2 * C] = yb                       # dy=1: inp[h]
            act_ref[1:H, :, 0:C] = yb[0:H - 1]                # dy=0: inp[h-1]
            act_ref[0:1, :, 0:C] = zrow
            act_ref[0:H - 1, :, 2 * C:3 * C] = yb[1:H]        # dy=2: inp[h+1]
            act_ref[H - 1:H, :, 2 * C:3 * C] = zrow

        def conv(l):
            # One clean LHS load shared by the three dx matmuls (K = 192 each).
            lhs = act_ref[...].reshape(M, K)                  # (256, 192) bf16
            t = [jnp.dot(lhs, w_ref[l, d],
                         preferred_element_type=jnp.float32).reshape(H, W, C)
                 for d in range(KW)]                          # (H, W, C) f32
            # dx = 0 tap contributes t0[w-1]; dx = 2 tap contributes t2[w+1].
            left = jnp.where(not_col0, pltpu.roll(t[0], 1, axis=1), 0.0)
            right = jnp.where(not_colW, pltpu.roll(t[2], W - 1, axis=1), 0.0)
            return t[1] + left + right

        # Layer-0 input: channel 0 of the x block (zero-padded to C lanes).
        write_act(x_ref[0])

        def body(l, carry):
            y = conv(l) * s_ref[l] + b_ref[l]     # folded conv-bias + eval BN
            write_act(jnp.maximum(y, 0.0))        # ReLU
            return carry

        lax.fori_loop(0, n_layers - 1, body, 0)   # start + 19 hidden blocks

        # End block: conv -> Sigmoid -> Threshold(0.5, 0).
        le = n_layers - 1
        y = conv(le) * s_ref[le] + b_ref[le]
        sig = jax.nn.sigmoid(y)
        o_ref[0] = jnp.where(sig > 0.5, sig, 0.0)

    return kernel


def overlapnet_forward(x_nchw, w_stack, s_stack, b_stack):
    """x_nchw: (N, 1, H, W) f32 -> (N, 1, H, W) f32."""
    N, _, H, W = x_nchw.shape
    n_layers = w_stack.shape[0]

    # NCHW -> NHWC, zero-pad the single input channel to C lanes, cast bf16
    # (the activation buffer is bf16 anyway, so this loses nothing).
    x = jnp.transpose(x_nchw, (0, 2, 3, 1))
    x = jnp.pad(x, ((0, 0), (0, 0), (0, 0), (0, C - x.shape[-1])))
    x = x.astype(jnp.bfloat16)

    out_nhwc = pl.pallas_call(
        _fused_kernel(H, W, n_layers),
        out_shape=jax.ShapeDtypeStruct((N, H, W, C), jnp.float32),
        grid_spec=pltpu.PrefetchScalarGridSpec(
            num_scalar_prefetch=0,
            grid=(N,),                                    # one image per step
            in_specs=[
                pl.BlockSpec((1, H, W, C), lambda b: (b, 0, 0, 0)),
                # whole weight / scale / bias stacks resident in VMEM
                pl.BlockSpec((n_layers, KW, KH * C, C), lambda b: (0, 0, 0, 0)),
                pl.BlockSpec((n_layers, 1, C), lambda b: (0, 0, 0)),
                pl.BlockSpec((n_layers, 1, C), lambda b: (0, 0, 0)),
            ],
            out_specs=pl.BlockSpec((1, H, W, C), lambda b: (b, 0, 0, 0)),
            scratch_shapes=[pltpu.VMEM((H, W, KH * C), jnp.bfloat16)],
        ),
        compiler_params=pltpu.CompilerParams(
            dimension_semantics=("parallel",)),           # batch across TCs (v7x)
    )(x, w_stack, s_stack, b_stack)

    # Channel 0 is the real single output channel; back to NCHW.
    return jnp.transpose(out_nhwc[..., 0:1], (0, 3, 1, 2))


def init_params(key, n_hidden=19):
    """Synthetic OverlapNet params.  BatchNorm folded in eval mode with random
    running stats.  Returns kernel-format stacks and f32 reference params."""
    eps = 1e-5
    specs = [(1, C)] + [(C, C)] * n_hidden + [(C, 1)]
    w_kernel, s_list, b_list, ref_params = [], [], [], []
    for i, (ci, co) in enumerate(specs):
        key, kw_, kb, kg, kbe, km, kv = jax.random.split(key, 7)
        w = 0.06 * jax.random.normal(kw_, (KH, KW, ci, co), jnp.float32)  # HWIO
        conv_b = 0.05 * jax.random.normal(kb, (co,), jnp.float32)
        if i < len(specs) - 1:                 # start + hidden blocks have BN
            gamma = 1.0 + 0.1 * jax.random.normal(kg, (co,), jnp.float32)
            beta = 0.1 * jax.random.normal(kbe, (co,), jnp.float32)
            r_mean = 0.1 * jax.random.normal(km, (co,), jnp.float32)
            r_var = 1.0 + 0.1 * jax.random.uniform(kv, (co,), jnp.float32)
            scale = gamma / jnp.sqrt(r_var + eps)
            bias = (conv_b - r_mean) * scale + beta
        else:                                  # end block: conv bias only
            scale = jnp.ones((co,), jnp.float32)
            bias = conv_b
        ref_params.append((w, scale, bias))
        # Zero-pad edge layers to (3,3,C,C)/(C,), regroup rows as (dx, (dy, cin))
        # to match the kernel's three K=192 matmuls (one per dx).
        wp = jnp.pad(w, ((0, 0), (0, 0), (0, C - ci), (0, C - co)))
        w_kernel.append(jnp.transpose(wp, (1, 0, 2, 3)).reshape(KW, KH * C, C))
        s_list.append(jnp.pad(scale, (0, C - co)))
        b_list.append(jnp.pad(bias, (0, C - co)))
    w_stack = jnp.stack(w_kernel).astype(jnp.bfloat16)        # (21, 3, 192, 64)
    s_stack = jnp.stack(s_list).reshape(len(specs), 1, C)     # (21, 1, 64) f32
    b_stack = jnp.stack(b_list).reshape(len(specs), 1, C)     # (21, 1, 64) f32
    return (w_stack, s_stack, b_stack), ref_params


def reference_forward(x_nchw, ref_params):
    """Plain-JAX f32 reference (returns thresholded output and raw sigmoid)."""
    x = jnp.transpose(x_nchw, (0, 2, 3, 1)).astype(jnp.float32)
    n = len(ref_params)
    sig = None
    for i, (w, s, b) in enumerate(ref_params):
        y = lax.conv_general_dilated(
            x, w, window_strides=(1, 1), padding="SAME",
            dimension_numbers=("NHWC", "HWIO", "NHWC"),
            precision=lax.Precision.HIGHEST)
        y = y * s + b
        if i < n - 1:
            x = jnp.maximum(y, 0.0)
        else:
            sig = jax.nn.sigmoid(y)
    out = jnp.where(sig > 0.5, sig, 0.0)
    return (jnp.transpose(out, (0, 3, 1, 2)),
            jnp.transpose(sig, (0, 3, 1, 2)))


if __name__ == "__main__":
    key = jax.random.PRNGKey(0)
    kx, kp = jax.random.split(key)
    # Shapes consistent with the module: batch=2, 1 input channel, 16x16 spatial.
    x = jax.random.normal(kx, (2, 1, 16, 16), jnp.float32)
    (w_stack, s_stack, b_stack), ref_params = init_params(kp)

    fwd = jax.jit(overlapnet_forward)
    out = fwd(x, w_stack, s_stack, b_stack)
    jax.block_until_ready(out)

    assert out.shape == (2, 1, 16, 16), out.shape
    assert bool(jnp.all(jnp.isfinite(out)))
    # Sigmoid + Threshold(0.5, 0): values lie in {0} U (0.5, 1].
    assert bool(jnp.all((out == 0.0) | ((out > 0.5) & (out <= 1.0))))

    # f32 reference check.  bf16 activations/weights can flip the 0/keep
    # classification of pixels whose sigmoid is near 0.5, so compare only where
    # the reference is confidently away from the threshold.
    ref_out, ref_sig = reference_forward(x, ref_params)
    confident = jnp.abs(ref_sig - 0.5) > 0.1
    err = jnp.max(jnp.where(confident, jnp.abs(out - ref_out), 0.0))
    assert float(err) < 0.1, f"max confident-pixel error {float(err)}"

    print("KERNEL_OK")
</pallas_src>

<mosaic_0001>
module attributes {stable_mosaic.version = 11 : i64} {
  func.func @kernel(%arg0: i32, %arg1: memref<1x16x16x64xbf16, #tpu.memory_space<vmem>>, %arg2: memref<21x3x192x64xbf16, #tpu.memory_space<vmem>>, %arg3: memref<21x1x64xf32, #tpu.memory_space<vmem>>, %arg4: memref<21x1x64xf32, #tpu.memory_space<vmem>>, %arg5: memref<1x16x16x64xf32, #tpu.memory_space<vmem>>, %arg6: memref<16x16x192xbf16, #tpu.memory_space<vmem>>) attributes {dimension_semantics = [#tpu.dimension_semantics<parallel>], iteration_bounds = array<i64: 2>, scalar_prefetch = 0 : i64, scratch_operands = 1 : i64, tpu.core_type = #tpu.core_type<tc>, window_params = [{transform_indices = @transform_0, window_bounds = array<i64: 1, 16, 16, 64>}, {pipeline_mode = #tpu.pipeline_mode<synchronous>, transform_indices = @transform_1, window_bounds = array<i64: 21, 3, 192, 64>}, {pipeline_mode = #tpu.pipeline_mode<synchronous>, transform_indices = @transform_2, window_bounds = array<i64: 21, 1, 64>}, {pipeline_mode = #tpu.pipeline_mode<synchronous>, transform_indices = @transform_3, window_bounds = array<i64: 21, 1, 64>}, {transform_indices = @transform_4, window_bounds = array<i64: 1, 16, 16, 64>}]} {
    %cst = arith.constant 0.000000e+00 : bf16
    %0 = vector.broadcast %cst : bf16 to vector<1x16x64xbf16>
    %1 = tpu.iota {dimensions = array<i32: 1>} : vector<16x16x64xi32>
    %c0_i32 = arith.constant 0 : i32
    %2 = vector.broadcast %c0_i32 : i32 to vector<16x16x64xi32>
    %3 = arith.cmpi ne, %1, %2 : vector<16x16x64xi32>
    %c15_i32 = arith.constant 15 : i32
    %4 = vector.broadcast %c15_i32 : i32 to vector<16x16x64xi32>
    %5 = arith.cmpi ne, %1, %4 : vector<16x16x64xi32>
    %c0 = arith.constant 0 : index
    %c0_0 = arith.constant 0 : index
    %c0_1 = arith.constant 0 : index
    %c0_2 = arith.constant 0 : index
    %6 = vector.load %arg1[%c0, %c0_0, %c0_1, %c0_2] : memref<1x16x16x64xbf16, #tpu.memory_space<vmem>>, vector<1x16x16x64xbf16>
    %7 = vector.shape_cast %6 : vector<1x16x16x64xbf16> to vector<16x16x64xbf16>
    %c0_3 = arith.constant 0 : index
    %c0_4 = arith.constant 0 : index
    %c64 = arith.constant 64 : index
    %8 = vector.load %arg6[%c0_3, %c0_4, %c64] : memref<16x16x192xbf16, #tpu.memory_space<vmem>>, vector<16x16x64xbf16>
    tpu.vector_store %arg6[%c0_3, %c0_4, %c64], %7 {strides = array<i32>} : memref<16x16x192xbf16, #tpu.memory_space<vmem>>, vector<16x16x64xbf16>,
    %9 = vector.extract_strided_slice %7 {offsets = [0, 0, 0], sizes = [15, 16, 64], strides = [1, 1, 1]} : vector<16x16x64xbf16> to vector<15x16x64xbf16>
    %c1 = arith.constant 1 : index
    %c0_5 = arith.constant 0 : index
    %c0_6 = arith.constant 0 : index
    %10 = vector.load %arg6[%c1, %c0_5, %c0_6] : memref<16x16x192xbf16, #tpu.memory_space<vmem>>, vector<15x16x64xbf16>
    tpu.vector_store %arg6[%c1, %c0_5, %c0_6], %9 {strides = array<i32>} : memref<16x16x192xbf16, #tpu.memory_space<vmem>>, vector<15x16x64xbf16>,
    %c0_7 = arith.constant 0 : index
    %c0_8 = arith.constant 0 : index
    %c0_9 = arith.constant 0 : index
    %11 = vector.load %arg6[%c0_7, %c0_8, %c0_9] : memref<16x16x192xbf16, #tpu.memory_space<vmem>>, vector<1x16x64xbf16>
    tpu.vector_store %arg6[%c0_7, %c0_8, %c0_9], %0 {strides = array<i32>} : memref<16x16x192xbf16, #tpu.memory_space<vmem>>, vector<1x16x64xbf16>,
    %12 = vector.extract_strided_slice %7 {offsets = [1, 0, 0], sizes = [15, 16, 64], strides = [1, 1, 1]} : vector<16x16x64xbf16> to vector<15x16x64xbf16>
    %c0_10 = arith.constant 0 : index
    %c0_11 = arith.constant 0 : index
    %c128 = arith.constant 128 : index
    %13 = vector.load %arg6[%c0_10, %c0_11, %c128] : memref<16x16x192xbf16, #tpu.memory_space<vmem>>, vector<15x16x64xbf16>
    tpu.vector_store %arg6[%c0_10, %c0_11, %c128], %12 {strides = array<i32>} : memref<16x16x192xbf16, #tpu.memory_space<vmem>>, vector<15x16x64xbf16>,
    %c15 = arith.constant 15 : index
    %c0_12 = arith.constant 0 : index
    %c128_13 = arith.constant 128 : index
    %14 = vector.load %arg6[%c15, %c0_12, %c128_13] : memref<16x16x192xbf16, #tpu.memory_space<vmem>>, vector<1x16x64xbf16>
    tpu.vector_store %arg6[%c15, %c0_12, %c128_13], %0 {strides = array<i32>} : memref<16x16x192xbf16, #tpu.memory_space<vmem>>, vector<1x16x64xbf16>,
    %c0_i32_14 = arith.constant 0 : i32
    %c20_i32 = arith.constant 20 : i32
    %15 = arith.addi %c0_i32_14, %c20_i32 : i32
    %c1_i32 = arith.constant 1 : i32
    scf.for %arg7 = %c0_i32_14 to %15 step %c1_i32  : i32 {
      %c0_49 = arith.constant 0 : index
      %c0_50 = arith.constant 0 : index
      %c0_51 = arith.constant 0 : index
      %60 = vector.load %arg6[%c0_49, %c0_50, %c0_51] : memref<16x16x192xbf16, #tpu.memory_space<vmem>>, vector<16x16x192xbf16>
      %61 = vector.shape_cast %60 : vector<16x16x192xbf16> to vector<256x192xbf16>
      %62 = arith.index_cast %arg7 : i32 to index
      %c0_52 = arith.constant 0 : index
      %c0_53 = arith.constant 0 : index
      %c0_54 = arith.constant 0 : index
      %63 = vector.load %arg2[%62, %c0_52, %c0_53, %c0_54] : memref<21x3x192x64xbf16, #tpu.memory_space<vmem>>, vector<1x1x192x64xbf16>
      %64 = vector.shape_cast %63 : vector<1x1x192x64xbf16> to vector<192x64xbf16>
      %cst_55 = arith.constant dense<0.000000e+00> : vector<256x64xf32>
      %65 = tpu.matmul %61, %64, %cst_55 {dimension_numbers = #tpu.dot_dimension_numbers<[1], [0], [0], [1], [0, 0, 1, 1], [], []>} : vector<256x192xbf16>, vector<192x64xbf16>, vector<256x64xf32> -> vector<256x64xf32>
      %66 = vector.shape_cast %65 : vector<256x64xf32> to vector<16x16x64xf32>
      %67 = arith.index_cast %arg7 : i32 to index
      %c1_56 = arith.constant 1 : index
      %c0_57 = arith.constant 0 : index
      %c0_58 = arith.constant 0 : index
      %68 = vector.load %arg2[%67, %c1_56, %c0_57, %c0_58] : memref<21x3x192x64xbf16, #tpu.memory_space<vmem>>, vector<1x1x192x64xbf16>
      %69 = vector.shape_cast %68 : vector<1x1x192x64xbf16> to vector<192x64xbf16>
      %cst_59 = arith.constant dense<0.000000e+00> : vector<256x64xf32>
      %70 = tpu.matmul %61, %69, %cst_59 {dimension_numbers = #tpu.dot_dimension_numbers<[1], [0], [0], [1], [0, 0, 1, 1], [], []>} : vector<256x192xbf16>, vector<192x64xbf16>, vector<256x64xf32> -> vector<256x64xf32>
      %71 = vector.shape_cast %70 : vector<256x64xf32> to vector<16x16x64xf32>
      %72 = arith.index_cast %arg7 : i32 to index
      %c2_60 = arith.constant 2 : index
      %c0_61 = arith.constant 0 : index
      %c0_62 = arith.constant 0 : index
      %73 = vector.load %arg2[%72, %c2_60, %c0_61, %c0_62] : memref<21x3x192x64xbf16, #tpu.memory_space<vmem>>, vector<1x1x192x64xbf16>
      %74 = vector.shape_cast %73 : vector<1x1x192x64xbf16> to vector<192x64xbf16>
      %cst_63 = arith.constant dense<0.000000e+00> : vector<256x64xf32>
      %75 = tpu.matmul %61, %74, %cst_63 {dimension_numbers = #tpu.dot_dimension_numbers<[1], [0], [0], [1], [0, 0, 1, 1], [], []>} : vector<256x192xbf16>, vector<192x64xbf16>, vector<256x64xf32> -> vector<256x64xf32>
      %76 = vector.shape_cast %75 : vector<256x64xf32> to vector<16x16x64xf32>
      %c1_i32_64 = arith.constant 1 : i32
      %77 = tpu.dynamic_rotate %66 by %c1_i32_64 dim 1 : vector<16x16x64xf32>, i32 -> vector<16x16x64xf32>
      %cst_65 = arith.constant 0.000000e+00 : f32
      %78 = vector.broadcast %cst_65 : f32 to vector<16x16x64xf32>
      %79 = arith.select %3, %77, %78 : vector<16x16x64xi1>, vector<16x16x64xf32>
      %c15_i32_66 = arith.constant 15 : i32
      %80 = tpu.dynamic_rotate %76 by %c15_i32_66 dim 1 : vector<16x16x64xf32>, i32 -> vector<16x16x64xf32>
      %cst_67 = arith.constant 0.000000e+00 : f32
      %81 = vector.broadcast %cst_67 : f32 to vector<16x16x64xf32>
      %82 = arith.select %5, %80, %81 : vector<16x16x64xi1>, vector<16x16x64xf32>
      %83 = arith.addf %71, %79 : vector<16x16x64xf32>
      %84 = arith.addf %83, %82 : vector<16x16x64xf32>
      %85 = arith.index_cast %arg7 : i32 to index
      %c0_68 = arith.constant 0 : index
      %c0_69 = arith.constant 0 : index
      %86 = vector.load %arg3[%85, %c0_68, %c0_69] : memref<21x1x64xf32, #tpu.memory_space<vmem>>, vector<1x1x64xf32>
      %87 = vector.shape_cast %86 : vector<1x1x64xf32> to vector<1x64xf32>
      %88 = vector.shape_cast %87 : vector<1x64xf32> to vector<1x1x64xf32>
      %89 = vector.broadcast %88 : vector<1x1x64xf32> to vector<16x16x64xf32>
      %90 = arith.mulf %84, %89 : vector<16x16x64xf32>
      %91 = arith.index_cast %arg7 : i32 to index
      %c0_70 = arith.constant 0 : index
      %c0_71 = arith.constant 0 : index
      %92 = vector.load %arg4[%91, %c0_70, %c0_71] : memref<21x1x64xf32, #tpu.memory_space<vmem>>, vector<1x1x64xf32>
      %93 = vector.shape_cast %92 : vector<1x1x64xf32> to vector<1x64xf32>
      %94 = vector.shape_cast %93 : vector<1x64xf32> to vector<1x1x64xf32>
      %95 = vector.broadcast %94 : vector<1x1x64xf32> to vector<16x16x64xf32>
      %96 = arith.addf %90, %95 : vector<16x16x64xf32>
      %cst_72 = arith.constant 0.000000e+00 : f32
      %97 = vector.broadcast %cst_72 : f32 to vector<16x16x64xf32>
      %98 = arith.maximumf %96, %97 : vector<16x16x64xf32>
      %99 = arith.truncf %98 : vector<16x16x64xf32> to vector<16x16x64xbf16>
      %c0_73 = arith.constant 0 : index
      %c0_74 = arith.constant 0 : index
      %c64_75 = arith.constant 64 : index
      %100 = vector.load %arg6[%c0_73, %c0_74, %c64_75] : memref<16x16x192xbf16, #tpu.memory_space<vmem>>, vector<16x16x64xbf16>
      tpu.vector_store %arg6[%c0_73, %c0_74, %c64_75], %99 {strides = array<i32>} : memref<16x16x192xbf16, #tpu.memory_space<vmem>>, vector<16x16x64xbf16>,
      %101 = vector.extract_strided_slice %99 {offsets = [0, 0, 0], sizes = [15, 16, 64], strides = [1, 1, 1]} : vector<16x16x64xbf16> to vector<15x16x64xbf16>
      %c1_76 = arith.constant 1 : index
      %c0_77 = arith.constant 0 : index
      %c0_78 = arith.constant 0 : index
      %102 = vector.load %arg6[%c1_76, %c0_77, %c0_78] : memref<16x16x192xbf16, #tpu.memory_space<vmem>>, vector<15x16x64xbf16>
      tpu.vector_store %arg6[%c1_76, %c0_77, %c0_78], %101 {strides = array<i32>} : memref<16x16x192xbf16, #tpu.memory_space<vmem>>, vector<15x16x64xbf16>,
      %c0_79 = arith.constant 0 : index
      %c0_80 = arith.constant 0 : index
      %c0_81 = arith.constant 0 : index
      %103 = vector.load %arg6[%c0_79, %c0_80, %c0_81] : memref<16x16x192xbf16, #tpu.memory_space<vmem>>, vector<1x16x64xbf16>
      tpu.vector_store %arg6[%c0_79, %c0_80, %c0_81], %0 {strides = array<i32>} : memref<16x16x192xbf16, #tpu.memory_space<vmem>>, vector<1x16x64xbf16>,
      %104 = vector.extract_strided_slice %99 {offsets = [1, 0, 0], sizes = [15, 16, 64], strides = [1, 1, 1]} : vector<16x16x64xbf16> to vector<15x16x64xbf16>
      %c0_82 = arith.constant 0 : index
      %c0_83 = arith.constant 0 : index
      %c128_84 = arith.constant 128 : index
      %105 = vector.load %arg6[%c0_82, %c0_83, %c128_84] : memref<16x16x192xbf16, #tpu.memory_space<vmem>>, vector<15x16x64xbf16>
      tpu.vector_store %arg6[%c0_82, %c0_83, %c128_84], %104 {strides = array<i32>} : memref<16x16x192xbf16, #tpu.memory_space<vmem>>, vector<15x16x64xbf16>,
      %c15_85 = arith.constant 15 : index
      %c0_86 = arith.constant 0 : index
      %c128_87 = arith.constant 128 : index
      %106 = vector.load %arg6[%c15_85, %c0_86, %c128_87] : memref<16x16x192xbf16, #tpu.memory_space<vmem>>, vector<1x16x64xbf16>
      tpu.vector_store %arg6[%c15_85, %c0_86, %c128_87], %0 {strides = array<i32>} : memref<16x16x192xbf16, #tpu.memory_space<vmem>>, vector<1x16x64xbf16>,
    }
    %c20_i32_15 = arith.constant 20 : i32
    %c0_16 = arith.constant 0 : index
    %c0_17 = arith.constant 0 : index
    %c0_18 = arith.constant 0 : index
    %16 = vector.load %arg6[%c0_16, %c0_17, %c0_18] : memref<16x16x192xbf16, #tpu.memory_space<vmem>>, vector<16x16x192xbf16>
    %17 = vector.shape_cast %16 : vector<16x16x192xbf16> to vector<256x192xbf16>
    %c20 = arith.constant 20 : index
    %c0_19 = arith.constant 0 : index
    %c0_20 = arith.constant 0 : index
    %c0_21 = arith.constant 0 : index
    %18 = vector.load %arg2[%c20, %c0_19, %c0_20, %c0_21] : memref<21x3x192x64xbf16, #tpu.memory_space<vmem>>, vector<1x1x192x64xbf16>
    %19 = vector.shape_cast %18 : vector<1x1x192x64xbf16> to vector<192x64xbf16>
    %cst_22 = arith.constant dense<0.000000e+00> : vector<256x64xf32>
    %20 = tpu.matmul %17, %19, %cst_22 {dimension_numbers = #tpu.dot_dimension_numbers<[1], [0], [0], [1], [0, 0, 1, 1], [], []>} : vector<256x192xbf16>, vector<192x64xbf16>, vector<256x64xf32> -> vector<256x64xf32>
    %21 = vector.shape_cast %20 : vector<256x64xf32> to vector<16x16x64xf32>
    %c20_23 = arith.constant 20 : index
    %c1_24 = arith.constant 1 : index
    %c0_25 = arith.constant 0 : index
    %c0_26 = arith.constant 0 : index
    %22 = vector.load %arg2[%c20_23, %c1_24, %c0_25, %c0_26] : memref<21x3x192x64xbf16, #tpu.memory_space<vmem>>, vector<1x1x192x64xbf16>
    %23 = vector.shape_cast %22 : vector<1x1x192x64xbf16> to vector<192x64xbf16>
    %cst_27 = arith.constant dense<0.000000e+00> : vector<256x64xf32>
    %24 = tpu.matmul %17, %23, %cst_27 {dimension_numbers = #tpu.dot_dimension_numbers<[1], [0], [0], [1], [0, 0, 1, 1], [], []>} : vector<256x192xbf16>, vector<192x64xbf16>, vector<256x64xf32> -> vector<256x64xf32>
    %25 = vector.shape_cast %24 : vector<256x64xf32> to vector<16x16x64xf32>
    %c20_28 = arith.constant 20 : index
    %c2 = arith.constant 2 : index
    %c0_29 = arith.constant 0 : index
    %c0_30 = arith.constant 0 : index
    %26 = vector.load %arg2[%c20_28, %c2, %c0_29, %c0_30] : memref<21x3x192x64xbf16, #tpu.memory_space<vmem>>, vector<1x1x192x64xbf16>
    %27 = vector.shape_cast %26 : vector<1x1x192x64xbf16> to vector<192x64xbf16>
    %cst_31 = arith.constant dense<0.000000e+00> : vector<256x64xf32>
    %28 = tpu.matmul %17, %27, %cst_31 {dimension_numbers = #tpu.dot_dimension_numbers<[1], [0], [0], [1], [0, 0, 1, 1], [], []>} : vector<256x192xbf16>, vector<192x64xbf16>, vector<256x64xf32> -> vector<256x64xf32>
    %29 = vector.shape_cast %28 : vector<256x64xf32> to vector<16x16x64xf32>
    %c1_i32_32 = arith.constant 1 : i32
    %30 = tpu.dynamic_rotate %21 by %c1_i32_32 dim 1 : vector<16x16x64xf32>, i32 -> vector<16x16x64xf32>
    %cst_33 = arith.constant 0.000000e+00 : f32
    %31 = vector.broadcast %cst_33 : f32 to vector<16x16x64xf32>
    %32 = arith.select %3, %30, %31 : vector<16x16x64xi1>, vector<16x16x64xf32>
    %c15_i32_34 = arith.constant 15 : i32
    %33 = tpu.dynamic_rotate %29 by %c15_i32_34 dim 1 : vector<16x16x64xf32>, i32 -> vector<16x16x64xf32>
    %cst_35 = arith.constant 0.000000e+00 : f32
    %34 = vector.broadcast %cst_35 : f32 to vector<16x16x64xf32>
    %35 = arith.select %5, %33, %34 : vector<16x16x64xi1>, vector<16x16x64xf32>
    %36 = arith.addf %25, %32 : vector<16x16x64xf32>
    %37 = arith.addf %36, %35 : vector<16x16x64xf32>
    %c20_36 = arith.constant 20 : index
    %c0_37 = arith.constant 0 : index
    %c0_38 = arith.constant 0 : index
    %38 = vector.load %arg3[%c20_36, %c0_37, %c0_38] : memref<21x1x64xf32, #tpu.memory_space<vmem>>, vector<1x1x64xf32>
    %39 = vector.shape_cast %38 : vector<1x1x64xf32> to vector<1x64xf32>
    %40 = vector.shape_cast %39 : vector<1x64xf32> to vector<1x1x64xf32>
    %41 = vector.broadcast %40 : vector<1x1x64xf32> to vector<16x16x64xf32>
    %42 = arith.mulf %37, %41 : vector<16x16x64xf32>
    %c20_39 = arith.constant 20 : index
    %c0_40 = arith.constant 0 : index
    %c0_41 = arith.constant 0 : index
    %43 = vector.load %arg4[%c20_39, %c0_40, %c0_41] : memref<21x1x64xf32, #tpu.memory_space<vmem>>, vector<1x1x64xf32>
    %44 = vector.shape_cast %43 : vector<1x1x64xf32> to vector<1x64xf32>
    %45 = vector.shape_cast %44 : vector<1x64xf32> to vector<1x1x64xf32>
    %46 = vector.broadcast %45 : vector<1x1x64xf32> to vector<16x16x64xf32>
    %47 = arith.addf %42, %46 : vector<16x16x64xf32>
    %48 = arith.negf %47 : vector<16x16x64xf32>
    %49 = math.exp %48 : vector<16x16x64xf32>
    %cst_42 = arith.constant 1.000000e+00 : f32
    %50 = vector.broadcast %cst_42 : f32 to vector<16x16x64xf32>
    %51 = arith.addf %50, %49 : vector<16x16x64xf32>
    %52 = arith.divf %50, %51 : vector<16x16x64xf32>
    %cst_43 = arith.constant 5.000000e-01 : f32
    %53 = vector.broadcast %cst_43 : f32 to vector<16x16x64xf32>
    %54 = arith.cmpf ogt, %52, %53 : vector<16x16x64xf32>
    %cst_44 = arith.constant 0.000000e+00 : f32
    %55 = vector.broadcast %cst_44 : f32 to vector<16x16x64xf32>
    %56 = arith.select %54, %52, %55 : vector<16x16x64xi1>, vector<16x16x64xf32>
    %c0_45 = arith.constant 0 : index
    %c0_46 = arith.constant 0 : index
    %c0_47 = arith.constant 0 : index
    %c0_48 = arith.constant 0 : index
    %57 = vector.load %arg5[%c0_45, %c0_46, %c0_47, %c0_48] : memref<1x16x16x64xf32, #tpu.memory_space<vmem>>, vector<1x16x16x64xf32>
    %58 = vector.shape_cast %57 : vector<1x16x16x64xf32> to vector<16x16x64xf32>
    %59 = vector.shape_cast %56 : vector<16x16x64xf32> to vector<1x16x16x64xf32>
    tpu.vector_store %arg5[%c0_45, %c0_46, %c0_47, %c0_48], %59 {strides = array<i32>} : memref<1x16x16x64xf32, #tpu.memory_space<vmem>>, vector<1x16x16x64xf32>,
    return
  }
  func.func @transform_0(%arg0: i32) -> (i32, i32, i32, i32) {
    %c0_i32 = arith.constant 0 : i32
    %c0_i32_0 = arith.constant 0 : i32
    %c0_i32_1 = arith.constant 0 : i32
    %c0_i32_2 = arith.constant 0 : i32
    return %arg0, %c0_i32, %c0_i32_0, %c0_i32_1 : i32, i32, i32, i32
  }
  func.func @transform_1(%arg0: i32) -> (i32, i32, i32, i32) {
    %c0_i32 = arith.constant 0 : i32
    %c0_i32_0 = arith.constant 0 : i32
    %c0_i32_1 = arith.constant 0 : i32
    %c0_i32_2 = arith.constant 0 : i32
    %c0_i32_3 = arith.constant 0 : i32
    return %c0_i32, %c0_i32_0, %c0_i32_1, %c0_i32_2 : i32, i32, i32, i32
  }
  func.func @transform_2(%arg0: i32) -> (i32, i32, i32) {
    %c0_i32 = arith.constant 0 : i32
    %c0_i32_0 = arith.constant 0 : i32
    %c0_i32_1 = arith.constant 0 : i32
    %c0_i32_2 = arith.constant 0 : i32
    return %c0_i32, %c0_i32_0, %c0_i32_1 : i32, i32, i32
  }
  func.func @transform_3(%arg0: i32) -> (i32, i32, i32) {
    %c0_i32 = arith.constant 0 : i32
    %c0_i32_0 = arith.constant 0 : i32
    %c0_i32_1 = arith.constant 0 : i32
    %c0_i32_2 = arith.constant 0 : i32
    return %c0_i32, %c0_i32_0, %c0_i32_1 : i32, i32, i32
  }
  func.func @transform_4(%arg0: i32) -> (i32, i32, i32, i32) {
    %c0_i32 = arith.constant 0 : i32
    %c0_i32_0 = arith.constant 0 : i32
    %c0_i32_1 = arith.constant 0 : i32
    %c0_i32_2 = arith.constant 0 : i32
    return %arg0, %c0_i32, %c0_i32_0, %c0_i32_1 : i32, i32, i32, i32
  }
}

</mosaic_0001>

<bundles_post_ra>
// kernel: overlapnet_forward.1
= control target key start
LH: loop header
LB: loop body
LE: loop exit
PB: predicated region body
PF: predicated region fallthrough
CT: control target
= control target key end

     0   :  { %s5468_s15 = smov 0   ;;  %s8375_s0 = inlined_call_operand.vmem [shape: bf16[2,16,16,64], index: 0, kind: input, shape index: {}]   ;;  %s8376_s1 = inlined_call_operand.vmem [shape: bf16[21,3,192,64], index: 1, kind: input, shape index: {}]   ;;  %s8377_s2 = inlined_call_operand.vmem [shape: f32[21,1,64], index: 2, kind: input, shape index: {}]   ;;  %s8378_s3 = inlined_call_operand.vmem [shape: f32[21,1,64], index: 3, kind: input, shape index: {}]   ;;  %s8379_s4 = inlined_call_operand.vmem [shape: f32[2,16,16,64], index: 4, kind: output, shape index: {}]  }
   0x1 LB: > { %s4306_s16 = sadd.s32 4294967295, %s5433_s15   ;;  %p4310_p0 = scmp.ge.s32.totalorder %s5433_s15, 1  ;;  %s5433_s15 = sphi %s5468_s15, %s14_s15  }
   0x2   : > { %p162_p1 = scmp.lt.s32.totalorder %s5433_s15, 3 }
   0x4   : > { %p163_p2 = pnand %p4310_p0, %p162_p1 }
   0x6   : > { %166 = sbr.rel (%p163_p2) target bundleno = 1527 (0x5f7), region = 36 }
   0xb   : > { %p188_p3 = scmp.lt.s32.totalorder %s4306_s16, 1  ;;  %vm400_vm0 = vcmask 519168   ;;  %s5439_s25 = smov 64   ;;  %v5440_v32 = vmov 0   ;;  %vm366_vm1 = vcmask 1043968   ;;  %v199_v54 = vlaneseq }
   0xc   : > { %464 = vst.msk [vmem:[#allocation2 + $0xf4] sm:$0xf] %vm400_vm0, %v5440_v32  ;;  %s5801_s26 = smov 0  }
   0xd   : > { %s8590_s16 = smov (!%p188_p3, %s4306_s16), 1  ;;  %465 = vst.msk [vmem:[#allocation2 + $0xfc] sm:$0xf] %vm400_vm0, %v5440_v32  ;;  %v5761_v57 = vshrl.u32 %v199_v54, 7 }
   0xe   : > { %s5114_s17 = sshll.u32 %s8590_s16, 7  ;;  %s5115_s18 = sshll.u32 %s8590_s16, 8 }
   0xf   : > { %s5479_s21 = scalar_lea.vmem %s8375_s0, %s5114_s17  ;;  %s5484_s24 = scalar_lea.vmem %s8379_s4, %s5115_s18  ;;  %v5767_v58 = vadd.s32 8, %v5761_v57  ;;  %vm202_vm2 = vcmp.ne.s32.totalorder %v5761_v57, 0 }
  0x10   : > { %v5487_v0 = vld [vmem:[%s5479_s21 + $0x8] sm:$0xf]  ;;  %v5490_v1 = vld [vmem:[%s5479_s21] sm:$0xf]  ;;  %v5499_v2 = vld [vmem:[%s5479_s21 + $0xc] sm:$0xf] }
  0x11   : > { %274 = vrot.lane.b32.xlu1 %v5487_v0, %s5439_s25  ;;  %433 = vst.msk [vmem:[#allocation2 + $0x4] sm:$0xf] %vm400_vm0, %v5487_v0  ;;  %270 = vrot.lane.b32.xlu0 %v5490_v1, %s5439_s25  ;;  %v5504_v3 = vld [vmem:[%s5479_s21 + $0x1c] sm:$0xf]  ;;  %v5509_v4 = vld [vmem:[%s5479_s21 + $0x18] sm:$0xf] }
  0x12   : > { %434 = vst.msk [vmem:[#allocation2 + $0xc] sm:$0xf] %vm400_vm0, %v5499_v2  ;;  %v5512_v5 = vld [vmem:[%s5479_s21 + $0x10] sm:$0xf]  ;;  %v5517_v6 = vld [vmem:[%s5479_s21 + $0x28] sm:$0xf] }
  0x13   : > { %438 = vst.msk [vmem:[#allocation2 + $0x2c] sm:$0xf] %vm400_vm0, %v5504_v3  ;;  %278 = vrot.lane.b32.xlu2 %v5512_v5, %s5439_s25  ;;  %v5524_v7 = vld [vmem:[%s5479_s21 + $0x24] sm:$0xf]  ;;  %v5534_v9 = vld [vmem:[%s5479_s21 + $0x34] sm:$0xf] }
  0x14   : > { %437 = vst.msk [vmem:[#allocation2 + $0x24] sm:$0xf] %vm400_vm0, %v5509_v4  ;;  %v5527_v8 = vld [vmem:[%s5479_s21 + $0x4] sm:$0xf]  ;;  %v5539_v10 = vld [vmem:[%s5479_s21 + $0x30] sm:$0xf] }
  0x15   : > { %441 = vst.msk [vmem:[#allocation2 + $0x44] sm:$0xf] %vm400_vm0, %v5517_v6  ;;  %v5548_v11 = vld [vmem:[%s5479_s21 + $0x14] sm:$0xf]  ;;  %v5553_v12 = vld [vmem:[%s5479_s21 + $0x40] sm:$0xf] }
  0x16   : > { %440 = vst.msk [vmem:[#allocation2 + $0x3c] sm:$0xf] %vm400_vm0, %v5524_v7  ;;  %v5558_v13 = vld [vmem:[%s5479_s21 + $0x3c] sm:$0xf]  ;;  %v5565_v14 = vld [vmem:[%s5479_s21 + $0x20] sm:$0xf] }
  0x17   : > { %435 = vst.msk [vmem:[#allocation2 + $0x14] sm:$0xf] %vm400_vm0, %v5512_v5  ;;  %v5570_v15 = vld [vmem:[%s5479_s21 + $0x4c] sm:$0xf]  ;;  %v5575_v16 = vld [vmem:[%s5479_s21 + $0x48] sm:$0xf] }
  0x18   : > { %444 = vst.msk [vmem:[#allocation2 + $0x5c] sm:$0xf] %vm400_vm0, %v5534_v9  ;;  %v5584_v17 = vld [vmem:[%s5479_s21 + $0x2c] sm:$0xf]  ;;  %v5589_v18 = vld [vmem:[%s5479_s21 + $0x58] sm:$0xf] }
  0x19   : > { %276 = vrot.lane.b32.xlu1 %v5499_v2, %s5439_s25  ;;  %272 = vrot.lane.b32.xlu0 %v5527_v8, %s5439_s25  ;;  %443 = vst.msk [vmem:[#allocation2 + $0x54] sm:$0xf] %vm400_vm0, %v5539_v10  ;;  %v5596_v19 = vld [vmem:[%s5479_s21 + $0x54] sm:$0xf]  ;;  %v5605_v20 = vld [vmem:[%s5479_s21 + $0x38] sm:$0xf] }
  0x1a   : > { %436 = vst.msk [vmem:[#allocation2 + $0x1c] sm:$0xf] %vm400_vm0, %v5548_v11  ;;  %v5610_v21 = vld [vmem:[%s5479_s21 + $0x64] sm:$0xf]  ;;  %v5617_v22 = vld [vmem:[%s5479_s21 + $0x60] sm:$0xf] }
  0x1b   : > { %447 = vst.msk [vmem:[#allocation2 + $0x74] sm:$0xf] %vm400_vm0, %v5553_v12  ;;  %280 = vrot.lane.b32.xlu2 %v5548_v11, %s5439_s25  ;;  %v5626_v23 = vld [vmem:[%s5479_s21 + $0x44] sm:$0xf]  ;;  %v5631_v24 = vld [vmem:[%s5479_s21 + $0x70] sm:$0xf] }
  0x1c   : > { %446 = vst.msk [vmem:[#allocation2 + $0x6c] sm:$0xf] %vm400_vm0, %v5558_v13  ;;  %v5638_v25 = vld [vmem:[%s5479_s21 + $0x6c] sm:$0xf]  ;;  %v5647_v26 = vld [vmem:[%s5479_s21 + $0x50] sm:$0xf] }
  0x1d   : > { %439 = vst.msk [vmem:[#allocation2 + $0x34] sm:$0xf] %vm400_vm0, %v5565_v14  ;;  %v237_v27 = vld [vmem:[%s5479_s21 + $0x7c] sm:$0xf]  ;;  %v236_v28 = vld [vmem:[%s5479_s21 + $0x78] sm:$0xf] }
  0x1e   : > { %450 = vst.msk [vmem:[#allocation2 + $0x8c] sm:$0xf] %vm400_vm0, %v5570_v15  ;;  %v5662_v29 = vld [vmem:[%s5479_s21 + $0x5c] sm:$0xf]  ;;  %v5667_v30 = vld [vmem:[%s5479_s21 + $0x68] sm:$0xf] }
  0x1f   : > { %449 = vst.msk [vmem:[#allocation2 + $0x84] sm:$0xf] %vm400_vm0, %v5575_v16  ;;  %v5672_v31 = vld [vmem:[%s5479_s21 + $0x74] sm:$0xf]  ;;  %vm205_vm3 = vcmp.ne.s32.totalorder %v5767_v58, 15 }
  0x20   : > { %442 = vst.msk [vmem:[#allocation2 + $0x4c] sm:$0xf] %vm400_vm0, %v5584_v17 }
  0x21   : > { %284 = vrot.lane.b32.xlu1 %v5504_v3, %s5439_s25  ;;  %282 = vrot.lane.b32.xlu0 %v5509_v4, %s5439_s25  ;;  %453 = vst.msk [vmem:[#allocation2 + $0xa4] sm:$0xf] %vm400_vm0, %v5589_v18 }
  0x22   : > { %452 = vst.msk [vmem:[#allocation2 + $0x9c] sm:$0xf] %vm400_vm0, %v5596_v19 }
  0x23   : > { %286 = vrot.lane.b32.xlu2 %v5565_v14, %s5439_s25  ;;  %445 = vst.msk [vmem:[#allocation2 + $0x64] sm:$0xf] %vm400_vm0, %v5605_v20 }
  0x24   : > { %456 = vst.msk [vmem:[#allocation2 + $0xbc] sm:$0xf] %vm400_vm0, %v5610_v21 }
  0x25   : > { %455 = vst.msk [vmem:[#allocation2 + $0xb4] sm:$0xf] %vm400_vm0, %v5617_v22 }
  0x26   : > { %448 = vst.msk [vmem:[#allocation2 + $0x7c] sm:$0xf] %vm400_vm0, %v5626_v23 }
  0x27   : > { %459 = vst.msk [vmem:[#allocation2 + $0xd4] sm:$0xf] %vm400_vm0, %v5631_v24 }
  0x28   : > { %458 = vst.msk [vmem:[#allocation2 + $0xcc] sm:$0xf] %vm400_vm0, %v5638_v25 }
  0x29   : > { %290 = vrot.lane.b32.xlu1 %v5517_v6, %s5439_s25  ;;  %288 = vrot.lane.b32.xlu0 %v5524_v7, %s5439_s25  ;;  %451 = vst.msk [vmem:[#allocation2 + $0x94] sm:$0xf] %vm400_vm0, %v5647_v26 }
  0x2a   : > { %462 = vst.msk [vmem:[#allocation2 + $0xec] sm:$0xf] %vm400_vm0, %v237_v27 }
  0x2b   : > { %292 = vrot.lane.b32.xlu2 %v5584_v17, %s5439_s25  ;;  %461 = vst.msk [vmem:[#allocation2 + $0xe4] sm:$0xf] %vm400_vm0, %v236_v28 }
  0x2c   : > { %454 = vst.msk [vmem:[#allocation2 + $0xac] sm:$0xf] %vm400_vm0, %v5662_v29 }
  0x2d   : > { %457 = vst.msk [vmem:[#allocation2 + $0xc4] sm:$0xf] %vm400_vm0, %v5667_v30 }
  0x2e   : > { %460 = vst.msk [vmem:[#allocation2 + $0xdc] sm:$0xf] %vm400_vm0, %v5672_v31 }
  0x2f   : > { %8389 = vst [vmem:[#allocation3_spill] sm:$0xff] %v5767_v58 }
  0x31   : > { %296 = vrot.lane.b32.xlu1 %v5534_v9, %s5439_s25  ;;  %294 = vrot.lane.b32.xlu0 %v5539_v10, %s5439_s25 }
  0x33   : > { %298 = vrot.lane.b32.xlu2 %v5605_v20, %s5439_s25 }
  0x39   : > { %302 = vrot.lane.b32.xlu1 %v5553_v12, %s5439_s25  ;;  %300 = vrot.lane.b32.xlu0 %v5558_v13, %s5439_s25 }
  0x3b   : > { %304 = vrot.lane.b32.xlu2 %v5626_v23, %s5439_s25 }
  0x41   : > { %308 = vrot.lane.b32.xlu1 %v5570_v15, %s5439_s25  ;;  %306 = vrot.lane.b32.xlu0 %v5575_v16, %s5439_s25 }
  0x43   : > { %310 = vrot.lane.b32.xlu2 %v5647_v26, %s5439_s25 }
  0x49   : > { %314 = vrot.lane.b32.xlu1 %v5589_v18, %s5439_s25  ;;  %312 = vrot.lane.b32.xlu0 %v5596_v19, %s5439_s25 }
  0x4b   : > { %316 = vrot.lane.b32.xlu2 %v5662_v29, %s5439_s25 }
  0x51   : > { %320 = vrot.lane.b32.xlu1 %v5610_v21, %s5439_s25  ;;  %318 = vrot.lane.b32.xlu0 %v5617_v22, %s5439_s25 }
  0x53   : > { %322 = vrot.lane.b32.xlu2 %v5667_v30, %s5439_s25 }
  0x59   : > { %326 = vrot.lane.b32.xlu1 %v5631_v24, %s5439_s25  ;;  %324 = vrot.lane.b32.xlu0 %v5638_v25, %s5439_s25 }
  0x5b   : > { %328 = vrot.lane.b32.xlu2 %v5672_v31, %s5439_s25 }
  0x61   : > { %332 = vrot.lane.b32.xlu1 %v237_v27, %s5439_s25  ;;  %330 = vrot.lane.b32.xlu0 %v236_v28, %s5439_s25 }
  0x6d   : > { %v279_v33 = vpop.permute.xlu2 %278 }
  0x6e   : > { %371 = vst.msk [vmem:[#allocation2 + $0x20] sm:$0xf] %vm366_vm1, %v279_v33 }
  0x6f   : > { %403 = vst.msk [vmem:[#allocation2 + $0x20] sm:$0xf] %vm400_vm0, %v5487_v0 }
  0x75   : > { %v281_v34 = vpop.permute.xlu2 %280 }
  0x76   : > { %372 = vst.msk [vmem:[#allocation2 + $0x28] sm:$0xf] %vm366_vm1, %v281_v34 }
  0x77   : > { %404 = vst.msk [vmem:[#allocation2 + $0x28] sm:$0xf] %vm400_vm0, %v5499_v2 }
  0x7d   : > { %v287_v35 = vpop.permute.xlu2 %286 }
  0x7e   : > { %375 = vst.msk [vmem:[#allocation2 + $0x40] sm:$0xf] %vm366_vm1, %v287_v35 }
  0x7f   : > { %407 = vst.msk [vmem:[#allocation2 + $0x40] sm:$0xf] %vm400_vm0, %v5509_v4 }
  0x83   : > { %v275_v36 = vpop.permute.xlu1 %274  ;;  %v271_v37 = vpop.permute.xlu0 %270 }
  0x84   : > { %369 = vst.msk [vmem:[#allocation2 + $0x10] sm:$0xf] %vm366_vm1, %v275_v36 }
  0x85   : > { %401 = vst.msk [vmem:[#allocation2 + $0x10] sm:$0xf] %vm400_vm0, %v5490_v1  ;;  %v293_v38 = vpop.permute.xlu2 %292 }
  0x86   : > { %367 = vst.msk [vmem:[#allocation2] sm:$0xf] %vm366_vm1, %v271_v37 }
  0x87   : > { %431 = vst.msk [vmem:[#allocation2] sm:$0xf] %vm400_vm0, %v5440_v32 }
  0x88   : > { %378 = vst.msk [vmem:[#allocation2 + $0x58] sm:$0xf] %vm366_vm1, %v293_v38 }
  0x89   : > { %410 = vst.msk [vmem:[#allocation2 + $0x58] sm:$0xf] %vm400_vm0, %v5524_v7 }
  0x8b   : > { %v277_v39 = vpop.permute.xlu1 %276  ;;  %v273_v40 = vpop.permute.xlu0 %272 }
  0x8c   : > { %370 = vst.msk [vmem:[#allocation2 + $0x18] sm:$0xf] %vm366_vm1, %v277_v39 }
  0x8d   : > { %402 = vst.msk [vmem:[#allocation2 + $0x18] sm:$0xf] %vm400_vm0, %v5527_v8  ;;  %v299_v41 = vpop.permute.xlu2 %298 }
  0x8e   : > { %368 = vst.msk [vmem:[#allocation2 + $0x8] sm:$0xf] %vm366_vm1, %v273_v40 }
  0x8f   : > { %432 = vst.msk [vmem:[#allocation2 + $0x8] sm:$0xf] %vm400_vm0, %v5440_v32 }
  0x90   : > { %381 = vst.msk [vmem:[#allocation2 + $0x70] sm:$0xf] %vm366_vm1, %v299_v41 }
  0x91   : > { %413 = vst.msk [vmem:[#allocation2 + $0x70] sm:$0xf] %vm400_vm0, %v5539_v10 }
  0x93   : > { %v285_v42 = vpop.permute.xlu1 %284  ;;  %v283_v43 = vpop.permute.xlu0 %282 }
  0x94   : > { %374 = vst.msk [vmem:[#allocation2 + $0x38] sm:$0xf] %vm366_vm1, %v285_v42 }
  0x95   : > { %406 = vst.msk [vmem:[#allocation2 + $0x38] sm:$0xf] %vm400_vm0, %v5548_v11  ;;  %v305_v44 = vpop.permute.xlu2 %304 }
  0x96   : > { %373 = vst.msk [vmem:[#allocation2 + $0x30] sm:$0xf] %vm366_vm1, %v283_v43 }
  0x97   : > { %405 = vst.msk [vmem:[#allocation2 + $0x30] sm:$0xf] %vm400_vm0, %v5512_v5 }
  0x98   : > { %384 = vst.msk [vmem:[#allocation2 + $0x88] sm:$0xf] %vm366_vm1, %v305_v44 }
  0x99   : > { %416 = vst.msk [vmem:[#allocation2 + $0x88] sm:$0xf] %vm400_vm0, %v5558_v13 }
  0x9b   : > { %v291_v45 = vpop.permute.xlu1 %290  ;;  %v289_v46 = vpop.permute.xlu0 %288 }
  0x9c   : > { %377 = vst.msk [vmem:[#allocation2 + $0x50] sm:$0xf] %vm366_vm1, %v291_v45 }
  0x9d   : > { %409 = vst.msk [vmem:[#allocation2 + $0x50] sm:$0xf] %vm400_vm0, %v5565_v14  ;;  %v311_v47 = vpop.permute.xlu2 %310 }
  0x9e   : > { %376 = vst.msk [vmem:[#allocation2 + $0x48] sm:$0xf] %vm366_vm1, %v289_v46 }
  0x9f   : > { %408 = vst.msk [vmem:[#allocation2 + $0x48] sm:$0xf] %vm400_vm0, %v5504_v3 }
  0xa0   : > { %387 = vst.msk [vmem:[#allocation2 + $0xa0] sm:$0xf] %vm366_vm1, %v311_v47 }
  0xa1   : > { %419 = vst.msk [vmem:[#allocation2 + $0xa0] sm:$0xf] %vm400_vm0, %v5575_v16 }
  0xa3   : > { %v297_v48 = vpop.permute.xlu1 %296  ;;  %v295_v49 = vpop.permute.xlu0 %294 }
  0xa4   : > { %380 = vst.msk [vmem:[#allocation2 + $0x68] sm:$0xf] %vm366_vm1, %v297_v48 }
  0xa5   : > { %412 = vst.msk [vmem:[#allocation2 + $0x68] sm:$0xf] %vm400_vm0, %v5584_v17  ;;  %v317_v50 = vpop.permute.xlu2 %316 }
  0xa6   : > { %379 = vst.msk [vmem:[#allocation2 + $0x60] sm:$0xf] %vm366_vm1, %v295_v49 }
  0xa7   : > { %411 = vst.msk [vmem:[#allocation2 + $0x60] sm:$0xf] %vm400_vm0, %v5517_v6 }
  0xa8   : > { %390 = vst.msk [vmem:[#allocation2 + $0xb8] sm:$0xf] %vm366_vm1, %v317_v50 }
  0xa9   : > { %422 = vst.msk [vmem:[#allocation2 + $0xb8] sm:$0xf] %vm400_vm0, %v5596_v19 }
  0xab   : > { %v303_v51 = vpop.permute.xlu1 %302  ;;  %v301_v52 = vpop.permute.xlu0 %300 }
  0xac   : > { %383 = vst.msk [vmem:[#allocation2 + $0x80] sm:$0xf] %vm366_vm1, %v303_v51 }
  0xad   : > { %415 = vst.msk [vmem:[#allocation2 + $0x80] sm:$0xf] %vm400_vm0, %v5605_v20  ;;  %v323_v53 = vpop.permute.xlu2 %322 }
  0xae   : > { %382 = vst.msk [vmem:[#allocation2 + $0x78] sm:$0xf] %vm366_vm1, %v301_v52 }
  0xaf   : > { %414 = vst.msk [vmem:[#allocation2 + $0x78] sm:$0xf] %vm400_vm0, %v5534_v9 }
  0xb0   : > { %393 = vst.msk [vmem:[#allocation2 + $0xd0] sm:$0xf] %vm366_vm1, %v323_v53 }
  0xb1   : > { %425 = vst.msk [vmem:[#allocation2 + $0xd0] sm:$0xf] %vm400_vm0, %v5617_v22 }
  0xb3   : > { %v309_v55 = vpop.permute.xlu1 %308  ;;  %v307_v56 = vpop.permute.xlu0 %306 }
  0xb4   : > { %386 = vst.msk [vmem:[#allocation2 + $0x98] sm:$0xf] %vm366_vm1, %v309_v55 }
  0xb5   : > { %418 = vst.msk [vmem:[#allocation2 + $0x98] sm:$0xf] %vm400_vm0, %v5626_v23  ;;  %v329_v59 = vpop.permute.xlu2 %328 }
  0xb6   : > { %385 = vst.msk [vmem:[#allocation2 + $0x90] sm:$0xf] %vm366_vm1, %v307_v56 }
  0xb7   : > { %417 = vst.msk [vmem:[#allocation2 + $0x90] sm:$0xf] %vm400_vm0, %v5553_v12 }
  0xb8   : > { %396 = vst.msk [vmem:[#allocation2 + $0xe8] sm:$0xf] %vm366_vm1, %v329_v59 }
  0xb9   : > { %428 = vst.msk [vmem:[#allocation2 + $0xe8] sm:$0xf] %vm400_vm0, %v5638_v25 }
  0xbb   : > { %v315_v60 = vpop.permute.xlu1 %314  ;;  %v313_v61 = vpop.permute.xlu0 %312 }
  0xbc   : > { %389 = vst.msk [vmem:[#allocation2 + $0xb0] sm:$0xf] %vm366_vm1, %v315_v60 }
  0xbd   : > { %421 = vst.msk [vmem:[#allocation2 + $0xb0] sm:$0xf] %vm400_vm0, %v5647_v26 }
  0xbe   : > { %388 = vst.msk [vmem:[#allocation2 + $0xa8] sm:$0xf] %vm366_vm1, %v313_v61 }
  0xbf   : > { %420 = vst.msk [vmem:[#allocation2 + $0xa8] sm:$0xf] %vm400_vm0, %v5570_v15 }
  0xc3   : > { %v321_v62 = vpop.permute.xlu1 %320  ;;  %v319_v63 = vpop.permute.xlu0 %318 }
  0xc4   : > { %392 = vst.msk [vmem:[#allocation2 + $0xc8] sm:$0xf] %vm366_vm1, %v321_v62 }
  0xc5   : > { %424 = vst.msk [vmem:[#allocation2 + $0xc8] sm:$0xf] %vm400_vm0, %v5662_v29 }
  0xc6   : > { %391 = vst.msk [vmem:[#allocation2 + $0xc0] sm:$0xf] %vm366_vm1, %v319_v63 }
  0xc7   : > { %423 = vst.msk [vmem:[#allocation2 + $0xc0] sm:$0xf] %vm400_vm0, %v5589_v18 }
  0xcb   : > { %v327_v0 = vpop.permute.xlu1 %326  ;;  %v325_v1 = vpop.permute.xlu0 %324 }
  0xcc   : > { %395 = vst.msk [vmem:[#allocation2 + $0xe0] sm:$0xf] %vm366_vm1, %v327_v0 }
  0xcd   : > { %427 = vst.msk [vmem:[#allocation2 + $0xe0] sm:$0xf] %vm400_vm0, %v5667_v30 }
  0xce   : > { %394 = vst.msk [vmem:[#allocation2 + $0xd8] sm:$0xf] %vm366_vm1, %v325_v1 }
  0xcf   : > { %426 = vst.msk [vmem:[#allocation2 + $0xd8] sm:$0xf] %vm400_vm0, %v5610_v21 }
  0xd3   : > { %v333_v2 = vpop.permute.xlu1 %332  ;;  %v331_v3 = vpop.permute.xlu0 %330 }
  0xd4   : > { %398 = vst.msk [vmem:[#allocation2 + $0xf8] sm:$0xf] %vm366_vm1, %v333_v2 }
  0xd5   : > { %430 = vst.msk [vmem:[#allocation2 + $0xf8] sm:$0xf] %vm400_vm0, %v5672_v31 }
  0xd6   : > { %397 = vst.msk [vmem:[#allocation2 + $0xf0] sm:$0xf] %vm366_vm1, %v331_v3 }
  0xd7   : > { %429 = vst.msk [vmem:[#allocation2 + $0xf0] sm:$0xf] %vm400_vm0, %v5631_v24 }
  0xd8 LB: >> { %s5148_s27 = smul.u32 288, %s5437_s26  ;;  %v5130_v16 = vld [vmem:[#allocation2 + $0x74] sm:$0xf]  ;;  %v4376_v19 = vld [vmem:[#allocation2 + $0x78] sm:$0xf0]  ;;  %vm747_vm4 = vcmask 523264   ;;  %s1786_s7 = scalar_lea.vmem %s8377_s2, %s5437_s26  ;;  %s5437_s26 = sphi %s5801_s26, %s471_s26  }
  0xd9   : >> { %v5845_v24 = vor.u32 %v5130_v16, %v4376_v19  ;;  %v4318_v34 = vld [vmem:[#allocation2] sm:$0xf]  ;;  %v5117_v35 = vld [vmem:[#allocation2 + $0x4] sm:$0xf0]  ;;  %v5132_v37 = vld [vmem:[#allocation2 + $0x84] sm:$0xf]  ;;  %s1823_s10 = scalar_lea.vmem %s8378_s3, %s5437_s26 }
  0xda   : >> { %s5810_s30 = scalar_lea.vmem %s8376_s1, %s5148_s27  ;;  %v4384_v38 = vld [vmem:[#allocation2 + $0x88] sm:$0xf0]  ;;  %v5862_v40 = vor.u32 %v5117_v35, %v4318_v34  ;;  %v4326_v43 = vld [vmem:[#allocation2 + $0x10] sm:$0xf]  ;;  %v5119_v44 = vld [vmem:[#allocation2 + $0x14] sm:$0xf0] }
  0xdb   : >> { %v5156_v4 = vld [vmem:[%s5810_s30 + $0x38] sm:$0xff]  ;;  %v5155_v8 = vld [vmem:[%s5810_s30 + $0x30] sm:$0xff]  ;;  %v5154_v12 = vld [vmem:[%s5810_s30 + $0x28] sm:$0xff]  ;;  %v5864_v41 = vor.u32 %v5132_v37, %v4384_v38  ;;  %v5878_v47 = vor.u32 %v5119_v44, %v4326_v43  ;;  %vm1560_vm5 = vcmp.lt.s32.totalorder %v5761_v57, 1  ;;  %vm8388_vm6 = vcmp.lt.s32.totalorder %v5761_v57, 7  ;;  %s5442_s16 = smov 64  }
  0xdc   : >> { %v5814_v5 = vld [vmem:[%s5810_s30 + $0x58] sm:$0xff]  ;;  %796 = vmatpush.bf16.msra.mxu0 %v5156_v4  ;;  %v5823_v9 = vld [vmem:[%s5810_s30 + $0x50] sm:$0xff]  ;;  %v5833_v13 = vld [vmem:[%s5810_s30 + $0x48] sm:$0xff]  ;;  %s471_s26 = sadd.s32 1, %s5437_s26  }
  0xdd   : >> { %v5168_v6 = vld [vmem:[%s5810_s30 + $0x98] sm:$0xff]  ;;  %5253 = vmatpush.bf16.msra.mxu1 %v5814_v5  ;;  %v5167_v10 = vld [vmem:[%s5810_s30 + $0x90] sm:$0xff]  ;;  %v5166_v14 = vld [vmem:[%s5810_s30 + $0x88] sm:$0xff]  ;;  %p468_p4 = scmp.ge.s32.totalorder %s471_s26, 20  }
  0xde   : >> { %v5818_v7 = vld [vmem:[%s5810_s30 + $0xb8] sm:$0xff]  ;;  %1073 = vmatpush.bf16.msra.mxu2 %v5168_v6  ;;  %v5828_v11 = vld [vmem:[%s5810_s30 + $0xb0] sm:$0xff]  ;;  %v5170_v15 = vld [vmem:[%s5810_s30 + $0xa8] sm:$0xff] }
  0xdf   : >> { %5257 = vmatpush.bf16.msra.mxu3 %v5818_v7  ;;  %v5153_v17 = vld [vmem:[%s5810_s30 + $0x20] sm:$0xff]  ;;  %v5184_v22 = vld [vmem:[%s5810_s30 + $0x118] sm:$0xff]  ;;  %v5179_v27 = vld [vmem:[%s5810_s30 + $0xf0] sm:$0xff] }
  0xe0   : >> { %797 = vmatpush.bf16.msra.mxu0 %v5155_v8  ;;  %v5157_v18 = vld [vmem:[%s5810_s30 + $0x40] sm:$0xff]  ;;  %v5180_v23 = vld [vmem:[%s5810_s30 + $0xf8] sm:$0xff]  ;;  %v5151_v28 = vld [vmem:[%s5810_s30 + $0x10] sm:$0xff] }
  0xe1   : >> { %5254 = vmatpush.bf16.msra.mxu1 %v5823_v9  ;;  %v5165_v20 = vld [vmem:[%s5810_s30 + $0x80] sm:$0xff]  ;;  %v5152_v25 = vld [vmem:[%s5810_s30 + $0x18] sm:$0xff]  ;;  %v5183_v29 = vld [vmem:[%s5810_s30 + $0x110] sm:$0xff] }
  0xe2   : >> { %1074 = vmatpush.bf16.msra.mxu2 %v5167_v10  ;;  %v5169_v21 = vld [vmem:[%s5810_s30 + $0xa0] sm:$0xff]  ;;  %v5164_v26 = vld [vmem:[%s5810_s30 + $0x78] sm:$0xff]  ;;  %v5163_v30 = vld [vmem:[%s5810_s30 + $0x70] sm:$0xff] }
  0xe3   : >> { %5258 = vmatpush.bf16.msra.mxu3 %v5828_v11  ;;  %v5178_v31 = vld [vmem:[%s5810_s30 + $0xe8] sm:$0xff]  ;;  %v5149_v36 = vld [vmem:[%s5810_s30] sm:$0xff]  ;;  %v5134_v45 = vld [vmem:[#allocation2 + $0x94] sm:$0xf] }
  0xe4   : >> { %798 = vmatpush.bf16.msra.mxu0 %v5154_v12  ;;  %v5150_v32 = vld [vmem:[%s5810_s30 + $0x8] sm:$0xff]  ;;  %v5161_v39 = vld [vmem:[%s5810_s30 + $0x60] sm:$0xff]  ;;  %v4392_v46 = vld [vmem:[#allocation2 + $0x98] sm:$0xf0] }
  0xe5   : >> { %5255 = vmatpush.bf16.msra.mxu1 %v5833_v13  ;;  %v5162_v33 = vld [vmem:[%s5810_s30 + $0x68] sm:$0xff]  ;;  %v5177_v42 = vld [vmem:[%s5810_s30 + $0xe0] sm:$0xff]  ;;  %v5880_v48 = vor.u32 %v5134_v45, %v4392_v46  ;;  %v5176_v50 = vld [vmem:[%s5810_s30 + $0xd8] sm:$0xff] }
  0xe6   : >> { %1075 = vmatpush.bf16.msra.mxu2 %v5166_v14  ;;  %v5182_v49 = vld [vmem:[%s5810_s30 + $0x108] sm:$0xff]  ;;  %v4334_v51 = vld [vmem:[#allocation2 + $0x20] sm:$0xf]  ;;  %v5136_v53 = vld [vmem:[#allocation2 + $0xa4] sm:$0xf] }
  0xe7   : >> { %5259 = vmatpush.bf16.msra.mxu3 %v5170_v15  ;;  %v5121_v52 = vld [vmem:[#allocation2 + $0x24] sm:$0xf0]  ;;  %v4400_v54 = vld [vmem:[#allocation2 + $0xa8] sm:$0xf0]  ;;  %v4342_v59 = vld [vmem:[#allocation2 + $0x30] sm:$0xf] }
  0xe8   : >> { %799 = vmatpush.bf16.msra.mxu0 %v5153_v17  ;;  %v5890_v55 = vor.u32 %v5121_v52, %v4334_v51  ;;  %v5892_v56 = vor.u32 %v5136_v53, %v4400_v54  ;;  %v5123_v60 = vld [vmem:[#allocation2 + $0x34] sm:$0xf0]  ;;  %v5138_v61 = vld [vmem:[#allocation2 + $0xb4] sm:$0xf]  ;;  %v4408_v62 = vld [vmem:[#allocation2 + $0xb8] sm:$0xf0] }
  0xe9   : >> { %5256 = vmatpush.bf16.msra.mxu1 %v5157_v18  ;;  %v5900_v63 = vor.u32 %v5123_v60, %v4342_v59  ;;  %v5902_v0 = vor.u32 %v5138_v61, %v4408_v62  ;;  %v5175_v1 = vld [vmem:[%s5810_s30 + $0xd0] sm:$0xff]  ;;  %v5181_v2 = vld [vmem:[%s5810_s30 + $0x100] sm:$0xff]  ;;  %v5125_v4 = vld [vmem:[#allocation2 + $0x44] sm:$0xf0] }
  0xea   : >> { %1076 = vmatpush.bf16.msra.mxu2 %v5165_v20  ;;  %v4350_v3 = vld [vmem:[#allocation2 + $0x40] sm:$0xf]  ;;  %v4416_v6 = vld [vmem:[#allocation2 + $0xc8] sm:$0xf0]  ;;  %v4358_v10 = vld [vmem:[#allocation2 + $0x50] sm:$0xf] }
  0xeb   : >> { %5260 = vmatpush.bf16.msra.mxu3 %v5169_v21  ;;  %v5142_v12 = vld [vmem:[#allocation2 + $0xd4] sm:$0xf]  ;;  %v4440_v17 = vld [vmem:[#allocation2 + $0xf8] sm:$0xf0]  ;;  %v5173_v19 = vld [vmem:[%s5810_s30 + $0xc0] sm:$0xff] }
  0xec   : >> { %4499 = vmatmul.msk.bf16.vlgmr.msra.gmra.mxu1 %vm747_vm4, %v5845_v24  ;;  %800 = vmatpush.bf16.msra.mxu0 %v5152_v25  ;;  %v5146_v16 = vld [vmem:[#allocation2 + $0xf4] sm:$0xf]  ;;  %v4366_v20 = vld [vmem:[#allocation2 + $0x60] sm:$0xf]  ;;  %v5133_v35 = vld [vmem:[#allocation2 + $0x84] sm:$0xf0] }
  0xed   : >> { %1350 = vmatpush.bf16.msrb.mxu1 %v5180_v23  ;;  %v4432_v23 = vld [vmem:[#allocation2 + $0xe8] sm:$0xf0]  ;;  %v4382_v34 = vld [vmem:[#allocation2 + $0x80] sm:$0xf]  ;;  %v4390_v51 = vld [vmem:[#allocation2 + $0x90] sm:$0xf] }
  0xee   : >> { %4588 = vmatmul.msk.bf16.vlgmr.msra.gmra.mxu3 %vm747_vm4, %v5845_v24  ;;  %1077 = vmatpush.bf16.msra.mxu2 %v5164_v26  ;;  %v4320_v37 = vld [vmem:[#allocation2 + $0x8] sm:$0xf0]  ;;  %v5135_v52 = vld [vmem:[#allocation2 + $0x94] sm:$0xf0]  ;;  %v5118_v53 = vld [vmem:[#allocation2 + $0x14] sm:$0xf] }
  0xef   : >> { %1443 = vmatpush.bf16.msrb.mxu3 %v5184_v22  ;;  %v5144_v22 = vld [vmem:[#allocation2 + $0xe4] sm:$0xf]  ;;  %v4328_v54 = vld [vmem:[#allocation2 + $0x18] sm:$0xf0]  ;;  %v5991_v60 = vor.u32 %v5135_v52, %v4390_v51 }
  0xf0   : >> { %801 = vmatpush.bf16.msra.mxu0 %v5151_v28  ;;  %v5940_v26 = vor.u32 %v5144_v22, %v4432_v23  ;;  %v5131_v28 = vld [vmem:[#allocation2 + $0x74] sm:$0xf0] }
  0xf1   : >> { %1351 = vmatpush.bf16.msrb.mxu1 %v5179_v27  ;;  %v4374_v27 = vld [vmem:[#allocation2 + $0x70] sm:$0xf] }
  0xf2   : >> { %1078 = vmatpush.bf16.msra.mxu2 %v5163_v30  ;;  %v5950_v30 = vor.u32 %v5146_v16, %v4440_v17 }
  0xf3   : >> { %1444 = vmatpush.bf16.msrb.mxu3 %v5183_v29  ;;  %v5948_v29 = vor.u32 %v5131_v28, %v4374_v27  ;;  %v4406_v27 = vld [vmem:[#allocation2 + $0xb0] sm:$0xf]  ;;  %v5139_v28 = vld [vmem:[#allocation2 + $0xb4] sm:$0xf0] }
  0xf4   : >> { %802 = vmatpush.bf16.msra.mxu0 %v5150_v32  ;;  %8390 = vst [vmem:[#allocation4_spill] sm:$0xff] %v5950_v30 }
  0xf5   : >> { %1352 = vmatpush.bf16.msrb.mxu1 %v5178_v31 }
  0xf6   : >> { %1079 = vmatpush.bf16.msra.mxu2 %v5162_v33 }
  0xf7   : >> { %1445 = vmatpush.bf16.msrb.mxu3 %v5182_v49 }
  0xf8   : >> { %803 = vmatpush.bf16.msra.mxu0 %v5149_v36  ;;  %v5116_v36 = vld [vmem:[#allocation2 + $0x4] sm:$0xf] }
  0xf9   : >> { %1353 = vmatpush.bf16.msrb.mxu1 %v5177_v42  ;;  %v5972_v44 = vor.u32 %v5116_v36, %v4320_v37  ;;  %v6041_v37 = vor.u32 %v5139_v28, %v4406_v27  ;;  %v5141_v27 = vld [vmem:[#allocation2 + $0xc4] sm:$0xf0]  ;;  %v5124_v28 = vld [vmem:[#allocation2 + $0x44] sm:$0xf] }
  0xfa   : >> { %1080 = vmatpush.bf16.msra.mxu2 %v5161_v39  ;;  %v5966_v39 = vor.u32 %v5133_v35, %v4382_v34  ;;  %v5122_v34 = vld [vmem:[#allocation2 + $0x34] sm:$0xf]  ;;  %v4344_v35 = vld [vmem:[#allocation2 + $0x38] sm:$0xf0] }
  0xfb   : >> { %804 = vmatmul.bf16.vlgmr.msra.gmra.mxu0 %v5862_v40  ;;  %1446 = vmatpush.bf16.msrb.mxu3 %v5181_v2 }
  0xfc   : >> { %889 = vmatpush.bf16.msrb.mxu0 %v5814_v5  ;;  %4500 = vmatmul.msk.bf16.gmra.mxu1 %vm747_vm4, %v5864_v41  ;;  %v5140_v5 = vld [vmem:[#allocation2 + $0xc4] sm:$0xf] }
  0xfd   : >> { %1081 = vmatmul.bf16.vlgmr.msra.gmra.mxu2 %v5862_v40  ;;  %1354 = vmatpush.bf16.msrb.mxu1 %v5176_v50  ;;  %v5914_v8 = vor.u32 %v5140_v5, %v4416_v6  ;;  %v4398_v6 = vld [vmem:[#allocation2 + $0xa0] sm:$0xf] }
  0xfe   : >> { %1166 = vmatpush.bf16.msrb.mxu2 %v5818_v7  ;;  %4589 = vmatmul.msk.bf16.gmra.mxu3 %vm747_vm4, %v5864_v41  ;;  %v5912_v7 = vor.u32 %v5125_v4, %v4350_v3 }
 0x100   : >> { %890 = vmatpush.bf16.msrb.mxu0 %v5823_v9  ;;  %v5174_v9 = vld [vmem:[%s5810_s30 + $0xc8] sm:$0xff] }
 0x101   : >> { %1355 = vmatpush.bf16.msrb.mxu1 %v5175_v1  ;;  %v5997_v1 = vor.u32 %v5118_v53, %v4328_v54  ;;  %v6047_v53 = vor.u32 %v5122_v34, %v4344_v35  ;;  %v4352_v34 = vld [vmem:[#allocation2 + $0x48] sm:$0xf0] }
 0x102   : >> { %1167 = vmatpush.bf16.msrb.mxu2 %v5828_v11  ;;  %v5127_v11 = vld [vmem:[#allocation2 + $0x54] sm:$0xf0] }
 0x103   : >> { %v5923_v14 = vor.u32 %v5127_v11, %v4358_v10  ;;  %v5120_v10 = vld [vmem:[#allocation2 + $0x24] sm:$0xf]  ;;  %v4336_v11 = vld [vmem:[#allocation2 + $0x28] sm:$0xf0] }
 0x104   : >> { %891 = vmatpush.bf16.msrb.mxu0 %v5833_v13  ;;  %v4424_v13 = vld [vmem:[#allocation2 + $0xd8] sm:$0xf0] }
 0x105   : >> { %1356 = vmatpush.bf16.msrb.mxu1 %v5174_v9  ;;  %v5137_v9 = vld [vmem:[#allocation2 + $0xa4] sm:$0xf0] }
 0x106   : >> { %1168 = vmatpush.bf16.msrb.mxu2 %v5170_v15  ;;  %v5925_v15 = vor.u32 %v5142_v12, %v4424_v13  ;;  %v6016_v13 = vor.u32 %v5137_v9, %v4398_v6 }
 0x108   : >> { %892 = vmatpush.bf16.msrb.mxu0 %v5157_v18  ;;  %v8380_v18 = vmov 0  }
 0x109   : >> { %2146 = vst.msk [vmem:[#allocation2 + $0xf4] sm:$0xf] %vm400_vm0, %v8380_v18  ;;  %1357 = vmatpush.bf16.msrb.mxu1 %v5173_v19  ;;  %v6022_v19 = vor.u32 %v5120_v10, %v4336_v11  ;;  %v4414_v11 = vld [vmem:[#allocation2 + $0xc0] sm:$0xf] }
 0x10a   : >> { %1169 = vmatpush.bf16.msrb.mxu2 %v5169_v21  ;;  %2147 = vst.msk [vmem:[#allocation2 + $0xfc] sm:$0xf] %vm400_vm0, %v8380_v18  ;;  %v5129_v21 = vld [vmem:[#allocation2 + $0x64] sm:$0xf0]  ;;  %v6066_v18 = vor.u32 %v5141_v27, %v4414_v11 }
 0x10b   : >> { %809 = vmatmul.bf16.gmra.mxu0 %v5878_v47  ;;  %v5938_v25 = vor.u32 %v5129_v21, %v4366_v20 }
 0x10c   : >> { %4501 = vmatmul.msk.bf16.gmra.mxu1 %vm747_vm4, %v5880_v48 }
 0x10d   : >> { %1086 = vmatmul.bf16.gmra.mxu2 %v5878_v47 }
 0x10e   : >> { %4590 = vmatmul.msk.bf16.gmra.mxu3 %vm747_vm4, %v5880_v48 }
 0x11b   : >> { %814 = vmatmul.bf16.gmra.mxu0 %v5890_v55 }
 0x11c   : >> { %4502 = vmatmul.msk.bf16.gmra.mxu1 %vm747_vm4, %v5892_v56 }
 0x11d   : >> { %1091 = vmatmul.bf16.gmra.mxu2 %v5890_v55 }
 0x11e   : >> { %4591 = vmatmul.msk.bf16.gmra.mxu3 %vm747_vm4, %v5892_v56 }
 0x12b   : >> { %819 = vmatmul.bf16.gmra.mxu0 %v5900_v63 }
 0x12c   : >> { %4503 = vmatmul.msk.bf16.gmra.mxu1 %vm747_vm4, %v5902_v0 }
 0x12d   : >> { %1096 = vmatmul.bf16.gmra.mxu2 %v5900_v63 }
 0x12e   : >> { %4592 = vmatmul.msk.bf16.gmra.mxu3 %vm747_vm4, %v5902_v0 }
 0x13b   : >> { %824 = vmatmul.bf16.gmra.mxu0 %v5912_v7 }
 0x13c   : >> { %4504 = vmatmul.msk.bf16.gmra.mxu1 %vm747_vm4, %v5914_v8 }
 0x13d   : >> { %1101 = vmatmul.bf16.gmra.mxu2 %v5912_v7 }
 0x13e   : >> { %4593 = vmatmul.msk.bf16.gmra.mxu3 %vm747_vm4, %v5914_v8 }
 0x14b   : >> { %829 = vmatmul.bf16.gmra.mxu0 %v5923_v14 }
 0x14c   : >> { %4505 = vmatmul.msk.bf16.gmra.mxu1 %vm747_vm4, %v5925_v15 }
 0x14d   : >> { %1106 = vmatmul.bf16.gmra.mxu2 %v5923_v14 }
 0x14e   : >> { %4594 = vmatmul.msk.bf16.gmra.mxu3 %vm747_vm4, %v5925_v15 }
 0x15b   : >> { %834 = vmatmul.bf16.gmra.mxu0 %v5938_v25 }
 0x15c   : >> { %4506 = vmatmul.msk.bf16.gmra.mxu1 %vm747_vm4, %v5940_v26 }
 0x15d   : >> { %1111 = vmatmul.bf16.gmra.mxu2 %v5938_v25 }
 0x15e   : >> { %4595 = vmatmul.msk.bf16.gmra.mxu3 %vm747_vm4, %v5940_v26 }
 0x169   : >> { %v5952_v31 = vpop.f32.mrf.mxu1 }
 0x16b   : >> { %839 = vmatmul.bf16.gmra.mxu0 %v5948_v29 }
 0x16c   : >> { %4507 = vmatmul.msk.bf16.gmra.mxu1 %vm747_vm4, %v5950_v30 }
 0x16d   : >> { %1116 = vmatmul.bf16.gmra.mxu2 %v5948_v29 }
 0x16e   : >> { %4596 = vmatmul.msk.bf16.gmra.mxu3 %vm747_vm4, %v5950_v30 }
 0x171   : >> { %v5960_v32 = vpop.f32.mrf.mxu3  ;;  %v5962_v33 = vpop.f32.mrf.mxu1 }
 0x178   : >> { %v5968_v42 = vpop.f32.mrf.mxu0 }
 0x179   : >> { %v5964_v38 = vpop.f32.mrf.mxu3  ;;  %8391 = vst [vmem:[#allocation5_spill] sm:$0xff] %v5968_v42  ;;  %v5970_v43 = vpop.f32.mrf.mxu1 }
 0x17b   : >> { %844 = vmatmul.bf16.gmra.mxu0 %v5966_v39 }
 0x17c   : >> { %1358 = vmatmul.bf16.vlgmr.msrb.gmra.mxu1 %v5862_v40 }
 0x17d   : >> { %1121 = vmatmul.bf16.gmra.mxu2 %v5966_v39 }
 0x17e   : >> { %4670 = vmatmul.msk.bf16.vlgmr.msrb.gmra.mxu3 %vm747_vm4, %v5972_v44 }
 0x180   : >> { %v5979_v45 = vpop.f32.mrf.mxu2  ;;  %v5983_v49 = vpop.f32.mrf.mxu0 }
 0x181   : >> { %8392 = vst [vmem:[#allocation6_spill] sm:$0xff] %v5979_v45  ;;  %v5981_v46 = vpop.f32.mrf.mxu3  ;;  %v5985_v50 = vpop.f32.mrf.mxu1 }
 0x182   : >> { %8393 = vst [vmem:[#allocation7_spill] sm:$0xff] %v5983_v49 }
 0x188   : >> { %v5987_v59 = vpop.f32.mrf.mxu2  ;;  %v5993_v61 = vpop.f32.mrf.mxu0 }
 0x189   : >> { %8394 = vst [vmem:[#allocation8_spill] sm:$0xff] %v5987_v59  ;;  %v5989_v40 = vpop.f32.mrf.mxu3  ;;  %v5995_v62 = vpop.f32.mrf.mxu1 }
 0x18a   : >> { %8395 = vst [vmem:[#allocation9_spill] sm:$0xff] %v5993_v61 }
 0x18b   : >> { %849 = vmatmul.bf16.gmra.mxu0 %v5991_v60 }
 0x18c   : >> { %1363 = vmatmul.bf16.gmra.mxu1 %v5878_v47 }
 0x18d   : >> { %1126 = vmatmul.bf16.gmra.mxu2 %v5991_v60 }
 0x18e   : >> { %4671 = vmatmul.msk.bf16.gmra.mxu3 %vm747_vm4, %v5997_v1 }
 0x190   : >> { %v6004_v2 = vpop.f32.mrf.mxu2  ;;  %v6008_v4 = vpop.f32.mrf.mxu0 }
 0x191   : >> { %8396 = vst [vmem:[#allocation10_spill] sm:$0xff] %v6004_v2  ;;  %v6006_v3 = vpop.f32.mrf.mxu3  ;;  %v6010_v5 = vpop.f32.mrf.mxu1 }
 0x192   : >> { %8397 = vst [vmem:[#allocation11_spill] sm:$0xff] %v6008_v4  ;;  %v4368_v4 = vld [vmem:[#allocation2 + $0x68] sm:$0xf0] }
 0x198   : >> { %v6012_v12 = vpop.f32.mrf.mxu2  ;;  %v6018_v16 = vpop.f32.mrf.mxu0 }
 0x199   : >> { %8398 = vst [vmem:[#allocation12_spill] sm:$0xff] %v6012_v12  ;;  %v6014_v47 = vpop.f32.mrf.mxu3  ;;  %v6020_v17 = vpop.f32.mrf.mxu1 }
 0x19a   : >> { %8399 = vst [vmem:[#allocation13_spill] sm:$0xff] %v6018_v16 }
 0x19b   : >> { %854 = vmatmul.bf16.gmra.mxu0 %v6016_v13 }
 0x19c   : >> { %1368 = vmatmul.bf16.gmra.mxu1 %v5890_v55 }
 0x19d   : >> { %1131 = vmatmul.bf16.gmra.mxu2 %v6016_v13 }
 0x19e   : >> { %4672 = vmatmul.msk.bf16.gmra.mxu3 %vm747_vm4, %v6022_v19 }
 0x1a0   : >> { %v6029_v20 = vpop.f32.mrf.mxu2  ;;  %v6033_v22 = vpop.f32.mrf.mxu0 }
 0x1a1   : >> { %8400 = vst [vmem:[#allocation14_spill] sm:$0xff] %v6029_v20  ;;  %v6031_v21 = vpop.f32.mrf.mxu3  ;;  %v6035_v23 = vpop.f32.mrf.mxu1  ;;  %v4360_v20 = vld [vmem:[#allocation2 + $0x58] sm:$0xf0] }
 0x1a2   : >> { %8401 = vst [vmem:[#allocation15_spill] sm:$0xff] %v6033_v22 }
 0x1a8   : >> { %v6037_v36 = vpop.f32.mrf.mxu2  ;;  %v6043_v51 = vpop.f32.mrf.mxu0 }
 0x1a9   : >> { %8402 = vst [vmem:[#allocation16_spill] sm:$0xff] %v6037_v36  ;;  %v6039_v55 = vpop.f32.mrf.mxu3  ;;  %v6045_v52 = vpop.f32.mrf.mxu1 }
 0x1aa   : >> { %8403 = vst [vmem:[#allocation17_spill] sm:$0xff] %v6043_v51 }
 0x1ab   : >> { %859 = vmatmul.bf16.gmra.mxu0 %v6041_v37 }
 0x1ac   : >> { %1373 = vmatmul.bf16.gmra.mxu1 %v5900_v63 }
 0x1ad   : >> { %1136 = vmatmul.bf16.gmra.mxu2 %v6041_v37 }
 0x1ae   : >> { %4673 = vmatmul.msk.bf16.gmra.mxu3 %vm747_vm4, %v6047_v53 }
 0x1b0   : >> { %v6054_v54 = vpop.f32.mrf.mxu2  ;;  %v6058_v9 = vpop.f32.mrf.mxu0 }
 0x1b1   : >> { %8404 = vst [vmem:[#allocation18_spill] sm:$0xff] %v6054_v54  ;;  %v6056_v6 = vpop.f32.mrf.mxu3  ;;  %v6060_v10 = vpop.f32.mrf.mxu1  ;;  %v6072_v54 = vor.u32 %v5124_v28, %v4352_v34  ;;  %v5143_v28 = vld [vmem:[#allocation2 + $0xd4] sm:$0xf0]  ;;  %v5126_v34 = vld [vmem:[#allocation2 + $0x54] sm:$0xf] }
 0x1b2   : >> { %8405 = vst [vmem:[#allocation19_spill] sm:$0xff] %v6058_v9 }
 0x1b8   : >> { %v6062_v35 = vpop.f32.mrf.mxu2  ;;  %v6068_v51 = vpop.f32.mrf.mxu0 }
 0x1b9   : >> { %8406 = vst [vmem:[#allocation20_spill] sm:$0xff] %v6062_v35  ;;  %v6064_v63 = vpop.f32.mrf.mxu3  ;;  %v6070_v36 = vpop.f32.mrf.mxu1 }
 0x1ba   : >> { %8407 = vst [vmem:[#allocation21_spill] sm:$0xff] %v6068_v51  ;;  %v4422_v51 = vld [vmem:[#allocation2 + $0xd0] sm:$0xf] }
 0x1bb   : >> { %864 = vmatmul.bf16.gmra.mxu0 %v6066_v18  ;;  %v6091_v16 = vor.u32 %v5143_v28, %v4422_v51 }
 0x1bc   : >> { %1378 = vmatmul.bf16.gmra.mxu1 %v5912_v7 }
 0x1bd   : >> { %1141 = vmatmul.bf16.gmra.mxu2 %v6066_v18 }
 0x1be   : >> { %4674 = vmatmul.msk.bf16.gmra.mxu3 %vm747_vm4, %v6072_v54 }
 0x1c0   : >> { %v6079_v35 = vpop.f32.mrf.mxu2  ;;  %v6083_v11 = vpop.f32.mrf.mxu0 }
 0x1c1   : >> { %8408 = vst [vmem:[#allocation22_spill] sm:$0xff] %v6079_v35  ;;  %v6081_v9 = vpop.f32.mrf.mxu3  ;;  %v6085_v27 = vpop.f32.mrf.mxu1  ;;  %v6097_v35 = vor.u32 %v5126_v34, %v4360_v20  ;;  %v5145_v20 = vld [vmem:[#allocation2 + $0xe4] sm:$0xf0]  ;;  %v5128_v34 = vld [vmem:[#allocation2 + $0x64] sm:$0xf] }
 0x1c2   : >> { %8409 = vst [vmem:[#allocation23_spill] sm:$0xff] %v6083_v11 }
 0x1c8   : >> { %v6087_v22 = vpop.f32.mrf.mxu2  ;;  %v6093_v12 = vpop.f32.mrf.mxu0 }
 0x1c9   : >> { %8410 = vst [vmem:[#allocation24_spill] sm:$0xff] %v6087_v22  ;;  %v6089_v7 = vpop.f32.mrf.mxu3  ;;  %v6095_v2 = vpop.f32.mrf.mxu1 }
 0x1ca   : >> { %8411 = vst [vmem:[#allocation25_spill] sm:$0xff] %v6093_v12  ;;  %v4430_v12 = vld [vmem:[#allocation2 + $0xe0] sm:$0xf] }
 0x1cb   : >> { %869 = vmatmul.bf16.gmra.mxu0 %v6091_v16  ;;  %v6116_v59 = vor.u32 %v5145_v20, %v4430_v12 }
 0x1cc   : >> { %1383 = vmatmul.bf16.gmra.mxu1 %v5923_v14 }
 0x1cd   : >> { %1146 = vmatmul.bf16.gmra.mxu2 %v6091_v16 }
 0x1ce   : >> { %4675 = vmatmul.msk.bf16.gmra.mxu3 %vm747_vm4, %v6097_v35 }
 0x1d0   : >> { %v6104_v22 = vpop.f32.mrf.mxu2  ;;  %v6108_v51 = vpop.f32.mrf.mxu0 }
 0x1d1   : >> { %8412 = vst [vmem:[#allocation26_spill] sm:$0xff] %v6104_v22  ;;  %v6106_v11 = vpop.f32.mrf.mxu3  ;;  %v6110_v28 = vpop.f32.mrf.mxu1  ;;  %v6122_v22 = vor.u32 %v5128_v34, %v4368_v4  ;;  %v5147_v4 = vld [vmem:[#allocation2 + $0xf4] sm:$0xf0] }
 0x1d2   : >> { %8413 = vst [vmem:[#allocation27_spill] sm:$0xff] %v6108_v51 }
 0x1d8   : >> { %v6112_v61 = vpop.f32.mrf.mxu2  ;;  %v6118_v45 = vpop.f32.mrf.mxu0 }
 0x1d9   : >> { %8414 = vst [vmem:[#allocation28_spill] sm:$0xff] %v6112_v61  ;;  %v6114_v14 = vpop.f32.mrf.mxu3  ;;  %v6120_v49 = vpop.f32.mrf.mxu1 }
 0x1da   : >> { %8415 = vst [vmem:[#allocation29_spill] sm:$0xff] %v6118_v45  ;;  %v4438_v45 = vld [vmem:[#allocation2 + $0xf0] sm:$0xf] }
 0x1db   : >> { %874 = vmatmul.bf16.gmra.mxu0 %v6116_v59 }
 0x1dc   : >> { %1388 = vmatmul.bf16.gmra.mxu1 %v5938_v25  ;;  %v6141_v25 = vor.u32 %v5147_v4, %v4438_v45 }
 0x1dd   : >> { %1151 = vmatmul.bf16.gmra.mxu2 %v6116_v59 }
 0x1de   : >> { %4676 = vmatmul.msk.bf16.gmra.mxu3 %vm747_vm4, %v6122_v22 }
 0x1e0   : >> { %v6129_v61 = vpop.f32.mrf.mxu2  ;;  %v6133_v12 = vpop.f32.mrf.mxu0 }
 0x1e1   : >> { %8416 = vst [vmem:[#allocation30_spill] sm:$0xff] %v6129_v61  ;;  %v6131_v51 = vpop.f32.mrf.mxu3  ;;  %v6135_v20 = vpop.f32.mrf.mxu1 }
 0x1e2   : >> { %8417 = vst [vmem:[#allocation31_spill] sm:$0xff] %v6131_v51 }
 0x1e3   : >> { %8418 = vst [vmem:[#allocation32_spill] sm:$0xff] %v6133_v12 }
 0x1e8   : >> { %v6137_v34 = vpop.f32.mrf.mxu2  ;;  %v840_v58 = vpop.f32.mrf.mxu0 }
 0x1e9   : >> { %8419 = vst [vmem:[#allocation33_spill] sm:$0xff] %v6137_v34  ;;  %v6139_v42 = vpop.f32.mrf.mxu3  ;;  %v6143_v30 = vpop.f32.mrf.mxu1  ;;  %v930_v61 = vadd.f32 %v5952_v31, %v840_v58 }
 0x1ea   : >> { %8420 = vst [vmem:[#allocation34_spill] sm:$0xff] %v6139_v42 }
 0x1eb   : >> { %8421 = vst [vmem:[#allocation35_spill] sm:$0xff] %v6143_v30  ;;  %879 = vmatmul.bf16.gmra.mxu0 %v6141_v25  ;;  %v1535_v30 = vrot.slane %v930_v61, 7 }
 0x1ec   : >> { %1393 = vmatmul.bf16.gmra.mxu1 %v5948_v29 }
 0x1ed   : >> { %1156 = vmatmul.bf16.gmra.mxu2 %v6141_v25 }
 0x1ee   : >> { %4677 = vmatmul.msk.bf16.gmra.mxu3 %vm747_vm4, %v5845_v24 }
 0x1f0   : >> { %v1117_v12 = vpop.f32.mrf.mxu2  ;;  %v842_v42 = vpop.f32.mrf.mxu0 }
 0x1f1   : >> { %v6151_v34 = vpop.f32.mrf.mxu3  ;;  %v6153_v45 = vpop.f32.mrf.mxu1  ;;  %v932_v4 = vadd.f32 %v5962_v33, %v842_v42  ;;  %v1207_v29 = vadd.f32 %v5960_v32, %v1117_v12 }
 0x1f2   : >> { %8422 = vst [vmem:[#allocation36_spill] sm:$0xff] %v6151_v34 }
 0x1f3   : >> { %8423 = vst [vmem:[#allocation37_spill] sm:$0xff] %v6153_v45  ;;  %v1551_v51 = vrot.slane %v932_v4, 7 }
 0x1f5   : >> { %v1584_v24 = vsel %vm1560_vm5, %v1551_v51, %v1535_v30  ;;  %v1568_v58 = vsel %vm1560_vm5, %v1535_v30, %v1551_v51 }
 0x1f6   : >> { %v1607_v31 = vsel %vm202_vm2, %v1584_v24, 0.0 }
 0x1f7   : >> { %v6164_v34 = vadd.f32 %v1607_v31, %v1207_v29 }
 0x1f8   : >> { %v1119_v33 = vpop.f32.mrf.mxu2  ;;  %v845_v4 = vpop.f32.mrf.mxu0 }
 0x1f9   : >> { %v6166_v42 = vpop.f32.mrf.mxu3  ;;  %v1209_v61 = vadd.f32 %v5964_v38, %v1119_v33  ;;  %v1359_v45 = vpop.f32.mrf.mxu1  ;;  %v935_v30 = vadd.f32 %v5970_v43, %v845_v4 }
 0x1fb   : >> { %v6169_v32 = vadd.f32 %v1568_v58, %v1209_v61  ;;  %4492 = vmatmul.msk.bf16.vlgmr.msrb.gmra.mxu0 %vm747_vm4, %v5972_v44  ;;  %v1536_v24 = vrot.slane %v935_v30, 7 }
 0x1fc   : >> { %1398 = vmatmul.bf16.gmra.mxu1 %v5966_v39 }
 0x1fd   : >> { %4581 = vmatmul.msk.bf16.vlgmr.msrb.gmra.mxu2 %vm747_vm4, %v5972_v44 }
 0x1fe   : >> { %4678 = vmatmul.msk.bf16.gmra.mxu3 %vm747_vm4, %v5864_v41 }
 0x200   : >> { %v1122_v38 = vpop.f32.mrf.mxu2  ;;  %v847_v39 = vpop.f32.mrf.mxu0 }
 0x201   : >> { %v1448_v51 = vpop.f32.mrf.mxu3  ;;  %v1361_v29 = vpop.f32.mrf.mxu1  ;;  %v937_v44 = vadd.f32 %v5985_v50, %v847_v39  ;;  %v1212_v41 = vadd.f32 %v5981_v46, %v1122_v38 }
 0x202   : >> { %v1449_v12 = vadd.f32 %v1448_v51, %v1359_v45 }
 0x203   : >> { %v1552_v58 = vrot.slane %v937_v44, 7 }
 0x204   : >> { %v1625_v46 = vrot.slane %v1449_v12, 1 }
 0x205   : >> { %v1585_v31 = vsel %vm1560_vm5, %v1552_v58, %v1536_v24  ;;  %v1569_v33 = vsel %vm1560_vm5, %v1536_v24, %v1552_v58 }
 0x206   : >> { %v1609_v43 = vsel %vm202_vm2, %v1585_v31, 0.0 }
 0x207   : >> { %v6195_v61 = vadd.f32 %v1609_v43, %v1212_v41 }
 0x208   : >> { %v1124_v45 = vpop.f32.mrf.mxu2  ;;  %v850_v30 = vpop.f32.mrf.mxu0 }
 0x209   : >> { %v1450_v4 = vpop.f32.mrf.mxu3  ;;  %v1214_v51 = vadd.f32 %v5989_v40, %v1124_v45  ;;  %v1364_v39 = vpop.f32.mrf.mxu1  ;;  %v940_v12 = vadd.f32 %v5995_v62, %v850_v30 }
 0x20a   : >> { %v1451_v50 = vadd.f32 %v1450_v4, %v1361_v29 }
 0x20b   : >> { %v6199_v38 = vadd.f32 %v1569_v33, %v1214_v51  ;;  %4493 = vmatmul.msk.bf16.gmra.mxu0 %vm747_vm4, %v5997_v1  ;;  %v1537_v43 = vrot.slane %v940_v12, 7 }
 0x20c   : >> { %v1641_v44 = vrot.slane %v1451_v50, 1  ;;  %1403 = vmatmul.bf16.gmra.mxu1 %v5991_v60 }
 0x20d   : >> { %4582 = vmatmul.msk.bf16.gmra.mxu2 %vm747_vm4, %v5997_v1 }
 0x20e   : >> { %v6206_v24 = vsel %vm8388_vm6, %v1625_v46, %v1641_v44  ;;  %4679 = vmatmul.msk.bf16.gmra.mxu3 %vm747_vm4, %v5880_v48  ;;  %v6214_v40 = vsel %vm8388_vm6, %v1641_v44, %v1625_v46 }
 0x210   : >> { %v1127_v29 = vpop.f32.mrf.mxu2  ;;  %v852_v60 = vpop.f32.mrf.mxu0 }
 0x211   : >> { %v1453_v58 = vpop.f32.mrf.mxu3  ;;  %v1366_v31 = vpop.f32.mrf.mxu1  ;;  %v942_v33 = vadd.f32 %v6010_v5, %v852_v60  ;;  %v1217_v1 = vadd.f32 %v6006_v3, %v1127_v29 }
 0x212   : >> { %v1454_v41 = vadd.f32 %v1453_v58, %v1364_v39 }
 0x213   : >> { %v1553_v45 = vrot.slane %v942_v33, 7 }
 0x214   : >> { %v1626_v12 = vrot.slane %v1454_v41, 1 }
 0x215   : >> { %v1586_v48 = vsel %vm1560_vm5, %v1553_v45, %v1537_v43  ;;  %v1570_v4 = vsel %vm1560_vm5, %v1537_v43, %v1553_v45 }
 0x216   : >> { %v1611_v62 = vsel %vm202_vm2, %v1586_v48, 0.0 }
 0x217   : >> { %v6225_v51 = vadd.f32 %v1611_v62, %v1217_v1 }
 0x218   : >> { %v1129_v50 = vpop.f32.mrf.mxu2  ;;  %v855_v46 = vpop.f32.mrf.mxu0 }
 0x219   : >> { %v1455_v30 = vpop.f32.mrf.mxu3  ;;  %v1219_v39 = vadd.f32 %v6014_v47, %v1129_v50  ;;  %v1369_v44 = vpop.f32.mrf.mxu1  ;;  %v945_v41 = vadd.f32 %v6020_v17, %v855_v46 }
 0x21a   : >> { %v1456_v5 = vadd.f32 %v1455_v30, %v1366_v31 }
 0x21b   : >> { %v6228_v3 = vadd.f32 %v1570_v4, %v1219_v39  ;;  %4494 = vmatmul.msk.bf16.gmra.mxu0 %vm747_vm4, %v6022_v19  ;;  %v1538_v1 = vrot.slane %v945_v41, 7 }
 0x21c   : >> { %v1642_v29 = vrot.slane %v1456_v5, 1  ;;  %1408 = vmatmul.bf16.gmra.mxu1 %v6016_v13 }
 0x21d   : >> { %4583 = vmatmul.msk.bf16.gmra.mxu2 %vm747_vm4, %v6022_v19 }
 0x21e   : >> { %v6235_v58 = vsel %vm8388_vm6, %v1626_v12, %v1642_v29  ;;  %4680 = vmatmul.msk.bf16.gmra.mxu3 %vm747_vm4, %v5892_v56  ;;  %v6243_v47 = vsel %vm8388_vm6, %v1642_v29, %v1626_v12 }
 0x220   : >> { %v1132_v60 = vpop.f32.mrf.mxu2  ;;  %v857_v13 = vpop.f32.mrf.mxu0 }
 0x221   : >> { %v1458_v31 = vpop.f32.mrf.mxu3  ;;  %v1371_v43 = vpop.f32.mrf.mxu1  ;;  %v947_v45 = vadd.f32 %v6035_v23, %v857_v13  ;;  %v1222_v19 = vadd.f32 %v6031_v21, %v1132_v60 }
 0x222   : >> { %v1459_v33 = vadd.f32 %v1458_v31, %v1369_v44 }
 0x223   : >> { %v1554_v48 = vrot.slane %v947_v45, 7 }
 0x224   : >> { %v1627_v44 = vrot.slane %v1459_v33, 1 }
 0x225   : >> { %v1587_v56 = vsel %vm1560_vm5, %v1554_v48, %v1538_v1  ;;  %v1571_v4 = vsel %vm1560_vm5, %v1538_v1, %v1554_v48 }
 0x226   : >> { %v1613_v17 = vsel %vm202_vm2, %v1587_v56, 0.0 }
 0x227   : >> { %v6254_v62 = vadd.f32 %v1613_v17, %v1222_v19 }
 0x228   : >> { %v1134_v50 = vpop.f32.mrf.mxu2  ;;  %v860_v5 = vpop.f32.mrf.mxu0 }
 0x229   : >> { %v1460_v30 = vpop.f32.mrf.mxu3  ;;  %v1224_v39 = vadd.f32 %v6039_v55, %v1134_v50  ;;  %v1374_v46 = vpop.f32.mrf.mxu1  ;;  %v950_v41 = vadd.f32 %v6045_v52, %v860_v5 }
 0x22a   : >> { %v1461_v23 = vadd.f32 %v1460_v30, %v1371_v43 }
 0x22b   : >> { %v6257_v21 = vadd.f32 %v1571_v4, %v1224_v39  ;;  %4495 = vmatmul.msk.bf16.gmra.mxu0 %vm747_vm4, %v6047_v53  ;;  %v1539_v45 = vrot.slane %v950_v41, 7 }
 0x22c   : >> { %v1643_v12 = vrot.slane %v1461_v23, 1  ;;  %1413 = vmatmul.bf16.gmra.mxu1 %v6041_v37 }
 0x22d   : >> { %4584 = vmatmul.msk.bf16.gmra.mxu2 %vm747_vm4, %v6047_v53 }
 0x22e   : >> { %v6264_v29 = vsel %vm8388_vm6, %v1627_v44, %v1643_v12  ;;  %4681 = vmatmul.msk.bf16.gmra.mxu3 %vm747_vm4, %v5902_v0  ;;  %v6272_v55 = vsel %vm8388_vm6, %v1643_v12, %v1627_v44 }
 0x230   : >> { %v1137_v60 = vpop.f32.mrf.mxu2  ;;  %v862_v37 = vpop.f32.mrf.mxu0 }
 0x231   : >> { %v1463_v31 = vpop.f32.mrf.mxu3  ;;  %v1376_v13 = vpop.f32.mrf.mxu1  ;;  %v952_v43 = vadd.f32 %v6060_v10, %v862_v37  ;;  %v1227_v53 = vadd.f32 %v6056_v6, %v1137_v60 }
 0x232   : >> { %v1464_v33 = vadd.f32 %v1463_v31, %v1374_v46 }
 0x233   : >> { %v1555_v1 = vrot.slane %v952_v43, 7 }
 0x234   : >> { %v1628_v39 = vrot.slane %v1464_v33, 1 }
 0x235   : >> { %v1588_v0 = vsel %vm1560_vm5, %v1555_v1, %v1539_v45  ;;  %v1572_v48 = vsel %vm1560_vm5, %v1539_v45, %v1555_v1 }
 0x236   : >> { %v1615_v52 = vsel %vm202_vm2, %v1588_v0, 0.0 }
 0x237   : >> { %v6283_v19 = vadd.f32 %v1615_v52, %v1227_v53 }
 0x238   : >> { %v1139_v56 = vpop.f32.mrf.mxu2  ;;  %v865_v50 = vpop.f32.mrf.mxu0 }
 0x239   : >> { %v1465_v4 = vpop.f32.mrf.mxu3  ;;  %v1229_v17 = vadd.f32 %v6064_v63, %v1139_v56  ;;  %v1379_v30 = vpop.f32.mrf.mxu1  ;;  %v955_v46 = vadd.f32 %v6070_v36, %v865_v50 }
 0x23a   : >> { %v1466_v10 = vadd.f32 %v1465_v4, %v1376_v13 }
 0x23b   : >> { %v6286_v6 = vadd.f32 %v1572_v48, %v1229_v17  ;;  %4496 = vmatmul.msk.bf16.gmra.mxu0 %vm747_vm4, %v6072_v54  ;;  %v1540_v33 = vrot.slane %v955_v46, 7 }
 0x23c   : >> { %v1644_v23 = vrot.slane %v1466_v10, 1  ;;  %1418 = vmatmul.bf16.gmra.mxu1 %v6066_v18 }
 0x23d   : >> { %4585 = vmatmul.msk.bf16.gmra.mxu2 %vm747_vm4, %v6072_v54 }
 0x23e   : >> { %v6293_v5 = vsel %vm8388_vm6, %v1628_v39, %v1644_v23  ;;  %4682 = vmatmul.msk.bf16.gmra.mxu3 %vm747_vm4, %v5914_v8  ;;  %v6301_v63 = vsel %vm8388_vm6, %v1644_v23, %v1628_v39 }
 0x240   : >> { %v1142_v44 = vpop.f32.mrf.mxu2  ;;  %v867_v18 = vpop.f32.mrf.mxu0 }
 0x241   : >> { %v1468_v12 = vpop.f32.mrf.mxu3  ;;  %v1381_v60 = vpop.f32.mrf.mxu1  ;;  %v957_v31 = vadd.f32 %v6085_v27, %v867_v18  ;;  %v1232_v54 = vadd.f32 %v6081_v9, %v1142_v44 }
 0x242   : >> { %v1469_v41 = vadd.f32 %v1468_v12, %v1379_v30 }
 0x243   : >> { %v1556_v37 = vrot.slane %v957_v31, 7 }
 0x244   : >> { %v1629_v52 = vrot.slane %v1469_v41, 1 }
 0x245   : >> { %v1589_v8 = vsel %vm1560_vm5, %v1556_v37, %v1540_v33  ;;  %v1573_v13 = vsel %vm1560_vm5, %v1540_v33, %v1556_v37 }
 0x246   : >> { %v1617_v36 = vsel %vm202_vm2, %v1589_v8, 0.0 }
 0x247   : >> { %v6312_v43 = vadd.f32 %v1617_v36, %v1232_v54 }
 0x248   : >> { %v1144_v45 = vpop.f32.mrf.mxu2  ;;  %v870_v0 = vpop.f32.mrf.mxu0 }
 0x249   : >> { %v1470_v1 = vpop.f32.mrf.mxu3  ;;  %v1234_v53 = vadd.f32 %v6089_v7, %v1144_v45  ;;  %v1384_v48 = vpop.f32.mrf.mxu1  ;;  %v960_v7 = vadd.f32 %v6095_v2, %v870_v0 }
 0x24a   : >> { %v1471_v27 = vadd.f32 %v1470_v1, %v1381_v60 }
 0x24b   : >> { %v6315_v9 = vadd.f32 %v1573_v13, %v1234_v53  ;;  %4497 = vmatmul.msk.bf16.gmra.mxu0 %vm747_vm4, %v6097_v35  ;;  %v1541_v46 = vrot.slane %v960_v7, 7 }
 0x24c   : >> { %v1645_v56 = vrot.slane %v1471_v27, 1  ;;  %1423 = vmatmul.bf16.gmra.mxu1 %v6091_v16 }
 0x24d   : >> { %4586 = vmatmul.msk.bf16.gmra.mxu2 %vm747_vm4, %v6097_v35 }
 0x24e   : >> { %v6322_v4 = vsel %vm8388_vm6, %v1629_v52, %v1645_v56  ;;  %v6326_v17 = vsel %vm8388_vm6, %v1645_v56, %v1629_v52  ;;  %4683 = vmatmul.msk.bf16.gmra.mxu3 %vm747_vm4, %v5925_v15  ;;  %v8424_v56 = vld [vmem:[#allocation31_spill] sm:$0xff] }
 0x250   : >> { %v1147_v10 = vpop.f32.mrf.mxu2  ;;  %v872_v16 = vpop.f32.mrf.mxu0 }
 0x251   : >> { %v1473_v50 = vpop.f32.mrf.mxu3  ;;  %v1386_v39 = vpop.f32.mrf.mxu1  ;;  %v962_v23 = vadd.f32 %v6110_v28, %v872_v16  ;;  %v1237_v12 = vadd.f32 %v6106_v11, %v1147_v10  ;;  %v8425_v16 = vld [vmem:[#allocation34_spill] sm:$0xff] }
 0x252   : >> { %v1474_v30 = vadd.f32 %v1473_v50, %v1384_v48 }
 0x253   : >> { %v1557_v44 = vrot.slane %v962_v23, 7 }
 0x254   : >> { %v1630_v54 = vrot.slane %v1474_v30, 1 }
 0x255   : >> { %v1590_v41 = vsel %vm1560_vm5, %v1557_v44, %v1541_v46  ;;  %v1574_v35 = vsel %vm1560_vm5, %v1541_v46, %v1557_v44 }
 0x256   : >> { %v1619_v15 = vsel %vm202_vm2, %v1590_v41, 0.0 }
 0x257   : >> { %v6341_v2 = vadd.f32 %v1619_v15, %v1237_v12 }
 0x258   : >> { %v1149_v18 = vpop.f32.mrf.mxu2  ;;  %v875_v33 = vpop.f32.mrf.mxu0 }
 0x259   : >> { %v1475_v60 = vpop.f32.mrf.mxu3  ;;  %v1239_v31 = vadd.f32 %v6114_v14, %v1149_v18  ;;  %v1389_v37 = vpop.f32.mrf.mxu1  ;;  %v965_v14 = vadd.f32 %v6120_v49, %v875_v33  ;;  %v8426_v18 = vld [vmem:[#allocation4_spill] sm:$0xff] }
 0x25a   : >> { %v1476_v28 = vadd.f32 %v1475_v60, %v1386_v39  ;;  %v8427_v60 = vld [vmem:[#allocation35_spill] sm:$0xff] }
 0x25b   : >> { %v6344_v11 = vadd.f32 %v1574_v35, %v1239_v31  ;;  %4498 = vmatmul.msk.bf16.gmra.mxu0 %vm747_vm4, %v6122_v22  ;;  %v1542_v48 = vrot.slane %v965_v14, 7 }
 0x25c   : >> { %v1646_v8 = vrot.slane %v1476_v28, 1  ;;  %1428 = vmatmul.bf16.gmra.mxu1 %v6116_v59 }
 0x25d   : >> { %4587 = vmatmul.msk.bf16.gmra.mxu2 %vm747_vm4, %v6122_v22 }
 0x25e   : >> { %v6351_v13 = vsel %vm8388_vm6, %v1630_v54, %v1646_v8  ;;  %v6355_v36 = vsel %vm8388_vm6, %v1646_v8, %v1630_v54  ;;  %4684 = vmatmul.msk.bf16.gmra.mxu3 %vm747_vm4, %v5940_v26  ;;  %v8428_v8 = vld [vmem:[#allocation37_spill] sm:$0xff] }
 0x260   : >> { %v1152_v45 = vpop.f32.mrf.mxu2  ;;  %v877_v59 = vpop.f32.mrf.mxu0 }
 0x261   : >> { %v1478_v1 = vpop.f32.mrf.mxu3  ;;  %v1391_v27 = vpop.f32.mrf.mxu1  ;;  %v967_v0 = vadd.f32 %v6135_v20, %v877_v59  ;;  %v1242_v7 = vadd.f32 %v8424_v56, %v1152_v45 }
 0x262   : >> { %v1479_v53 = vadd.f32 %v1478_v1, %v1389_v37  ;;  %v8429_v1 = vld [vmem:[#allocation36_spill] sm:$0xff] }
 0x263   : >> { %v1558_v52 = vrot.slane %v967_v0, 7 }
 0x264   : >> { %v1631_v44 = vrot.slane %v1479_v53, 1 }
 0x265   : >> { %v1591_v10 = vsel %vm1560_vm5, %v1558_v52, %v1542_v48  ;;  %v1575_v22 = vsel %vm1560_vm5, %v1542_v48, %v1558_v52 }
 0x266   : >> { %v1621_v26 = vsel %vm202_vm2, %v1591_v10, 0.0 }
 0x267   : >> { %v6370_v49 = vadd.f32 %v1621_v26, %v1242_v7 }
 0x268   : >> { %v1154_v50 = vpop.f32.mrf.mxu2  ;;  %v880_v23 = vpop.f32.mrf.mxu0 }
 0x269   : >> { %v1480_v30 = vpop.f32.mrf.mxu3  ;;  %v1244_v39 = vadd.f32 %v8425_v16, %v1154_v50  ;;  %v1394_v46 = vpop.f32.mrf.mxu1  ;;  %v970_v31 = vadd.f32 %v8427_v60, %v880_v23 }
 0x26a   : >> { %v1481_v20 = vadd.f32 %v1480_v30, %v1391_v27 }
 0x26b   : >> { %v6373_v12 = vadd.f32 %v1575_v22, %v1244_v39 }
 0x26c   : >> { %v1647_v41 = vrot.slane %v1481_v20, 1  ;;  %1433 = vmatmul.bf16.gmra.mxu1 %v6141_v25  ;;  %v1543_v25 = vrot.slane %v970_v31, 7  ;;  %v6405_v20 = vld [vmem:[%s1786_s7] ss:$0 sm:$0xff]  ;;  %v8431_v31 = vld [vmem:[#allocation5_spill] sm:$0xff] }
 0x26e   : >> { %v6378_v35 = vsel %vm8388_vm6, %v1631_v44, %v1647_v41  ;;  %v6382_v15 = vsel %vm8388_vm6, %v1647_v41, %v1631_v44  ;;  %4685 = vmatmul.msk.bf16.gmra.mxu3 %vm747_vm4, %v8426_v18  ;;  %v6419_v18 = vld [vmem:[%s1823_s10] ss:$0 sm:$0xff] }
 0x270   : >> { %v1157_v28 = vpop.f32.mrf.mxu2  ;;  %v882_v37 = vpop.f32.mrf.mxu0 }
 0x271   : >> { %v1483_v33 = vpop.f32.mrf.mxu3  ;;  %v1396_v54 = vpop.f32.mrf.mxu1  ;;  %v972_v14 = vadd.f32 %v8428_v8, %v882_v37  ;;  %v1247_v53 = vadd.f32 %v8429_v1, %v1157_v28 }
 0x272   : >> { %v1484_v0 = vadd.f32 %v1483_v33, %v1394_v46 }
 0x273   : >> { %v1559_v45 = vrot.slane %v972_v14, 7 }
 0x274   : >> { %v1632_v30 = vrot.slane %v1484_v0, 1 }
 0x275   : >> { %v1592_v59 = vsel %vm1560_vm5, %v1559_v45, %v1543_v25  ;;  %v1576_v27 = vsel %vm1560_vm5, %v1543_v25, %v1559_v45  ;;  %v8432_v45 = vld [vmem:[#allocation7_spill] sm:$0xff] }
 0x276   : >> { %v1623_v48 = vsel %vm202_vm2, %v1592_v59, 0.0 }
 0x277   : >> { %v6395_v52 = vadd.f32 %v1623_v48, %v1247_v53  ;;  %v8433_v48 = vld [vmem:[#allocation6_spill] sm:$0xff] }
 0x278   : >> { %v1159_v56 = vpop.f32.mrf.mxu2  ;;  %v894_v26 = vpop.f32.mrf.mxu0 }
 0x279   : >> { %v1485_v7 = vpop.f32.mrf.mxu3  ;;  %v1249_v10 = vadd.f32 %v6166_v42, %v1159_v56  ;;  %v1399_v50 = vpop.f32.mrf.mxu1  ;;  %v895_v28 = vadd.f32 %v894_v26, %v8431_v31 }
 0x27a   : >> { %v1486_v22 = vadd.f32 %v1485_v7, %v1396_v54 }
 0x27b   : >> { %v6398_v16 = vadd.f32 %v1576_v27, %v1249_v10  ;;  %v1528_v59 = vrot.slane %v895_v28, 7 }
 0x27c   : >> { %v1648_v39 = vrot.slane %v1486_v22, 1 }
 0x27e   : >> { %v1665_v23 = vsel %vm8388_vm6, %v1632_v30, %v1648_v39  ;;  %v1681_v46 = vsel %vm8388_vm6, %v1648_v39, %v1632_v30 }
 0x27f   : >> { %v1705_v44 = vsel %vm205_vm3, %v1681_v46, 0.0  ;;  %v1768_v41 = vadd.f32 %v6164_v34, %v1665_v23 }
 0x280   : >> { %v1769_v60 = vadd.f32 %v6169_v32, %v1705_v44  ;;  %v1171_v33 = vpop.f32.mrf.mxu2  ;;  %v896_v8 = vpop.f32.mrf.mxu0  ;;  %v8434_v44 = vld [vmem:[#allocation8_spill] sm:$0xff] }
 0x281   : >> { %v1488_v37 = vpop.f32.mrf.mxu3  ;;  %v1805_v54 = vmul.f32 %v6405_v20, %v1768_v41  ;;  %v1401_v14 = vpop.f32.mrf.mxu1  ;;  %v897_v34 = vadd.f32 %v896_v8, %v8432_v45  ;;  %v1172_v56 = vadd.f32 %v1171_v33, %v8433_v48 }
 0x282   : >> { %v1806_v25 = vmul.f32 %v6405_v20, %v1769_v60  ;;  %v1489_v22 = vadd.f32 %v1488_v37, %v1399_v50 }
 0x283   : >> { %v1842_v1 = vadd.f32 %v6419_v18, %v1805_v54  ;;  %v1544_v27 = vrot.slane %v897_v34, 7 }
 0x284   : >> { %v1843_v53 = vadd.f32 %v6419_v18, %v1806_v25  ;;  %v1633_v37 = vrot.slane %v1489_v22, 1 }
 0x285   : >> { %v1874_v0 = vmax.f32 %v1842_v1, 0.0  ;;  %v1577_v7 = vsel %vm1560_vm5, %v1544_v27, %v1528_v59  ;;  %v1561_v33 = vsel %vm1560_vm5, %v1528_v59, %v1544_v27 }
 0x286   : >> { %v1875_v32 = vmax.f32 %v1843_v53, 0.0  ;;  %v1593_v26 = vsel %vm202_vm2, %v1577_v7, 0.0 }
 0x287   : >> { %v6431_v10 = vpack.c.bf16 %v1874_v0, %v1874_v0  ;;  %v1722_v39 = vadd.f32 %v1593_v26, %v1172_v56  ;;  %v8435_v0 = vld [vmem:[#allocation9_spill] sm:$0xff] }
 0x288   : >> { %v6435_v30 = vpack.c.bf16 %v1875_v32, %v1875_v32  ;;  %v1173_v23 = vpop.f32.mrf.mxu2  ;;  %v899_v50 = vpop.f32.mrf.mxu0 }
 0x289   : >> { %v1490_v46 = vpop.f32.mrf.mxu3  ;;  %1984 = vrot.lane.b32.xlu2 %v6431_v10, %s5442_s16  ;;  %2128 = vst.msk [vmem:[#allocation2 + $0x64] sm:$0xf] %vm400_vm0, %v6431_v10  ;;  %v1174_v41 = vadd.f32 %v1173_v23, %v8434_v44  ;;  %v1404_v31 = vpop.f32.mrf.mxu1  ;;  %v1754_v28 = vadd.f32 %v1722_v39, %v6206_v24  ;;  %v900_v32 = vadd.f32 %v899_v50, %v8435_v0 }
 0x28a   : >> { %v1491_v60 = vadd.f32 %v1490_v46, %v1401_v14  ;;  %1986 = vrot.lane.b32.xlu0 %v6435_v30, %s5442_s16  ;;  %2129 = vst.msk [vmem:[#allocation2 + $0x6c] sm:$0xf] %vm400_vm0, %v6435_v30  ;;  %v1691_v14 = vsel %vm205_vm3, %v6214_v40, 0.0  ;;  %v8436_v46 = vld [vmem:[#allocation11_spill] sm:$0xff] }
 0x28b   : >> { %v1723_v54 = vadd.f32 %v1561_v33, %v1174_v41  ;;  %v1791_v25 = vmul.f32 %v6405_v20, %v1754_v28  ;;  %v1529_v50 = vrot.slane %v900_v32, 7 }
 0x28c   : >> { %v1649_v8 = vrot.slane %v1491_v60, 1 }
 0x28d   : >> { %v1755_v45 = vadd.f32 %v1723_v54, %v1691_v14  ;;  %v1828_v59 = vadd.f32 %v6419_v18, %v1791_v25  ;;  %v8437_v54 = vld [vmem:[#allocation10_spill] sm:$0xff] }
 0x28e   : >> { %v1666_v34 = vsel %vm8388_vm6, %v1633_v37, %v1649_v8  ;;  %v1682_v1 = vsel %vm8388_vm6, %v1649_v8, %v1633_v37 }
 0x28f   : >> { %v1707_v24 = vsel %vm205_vm3, %v1682_v1, 0.0  ;;  %v1770_v53 = vadd.f32 %v6195_v61, %v1666_v34  ;;  %v1792_v27 = vmul.f32 %v6405_v20, %v1755_v45  ;;  %v1860_v7 = vmax.f32 %v1828_v59, 0.0 }
 0x290   : >> { %v1771_v40 = vadd.f32 %v6199_v38, %v1707_v24  ;;  %v1176_v48 = vpop.f32.mrf.mxu2  ;;  %v901_v26 = vpop.f32.mrf.mxu0 }
 0x291   : >> { %v1493_v56 = vpop.f32.mrf.mxu3  ;;  %v1807_v22 = vmul.f32 %v6405_v20, %v1770_v53  ;;  %v1406_v39 = vpop.f32.mrf.mxu1  ;;  %v902_v44 = vadd.f32 %v901_v26, %v8436_v46  ;;  %v6467_v61 = vpack.c.bf16 %v1860_v7, %v1860_v7  ;;  %v1829_v60 = vadd.f32 %v6419_v18, %v1792_v27 }
 0x292   : >> { %v1808_v23 = vmul.f32 %v6405_v20, %v1771_v40  ;;  %v1177_v8 = vadd.f32 %v1176_v48, %v8437_v54  ;;  %v1494_v34 = vadd.f32 %v1493_v56, %v1404_v31  ;;  %v8438_v40 = vld [vmem:[#allocation12_spill] sm:$0xff] }
 0x293   : >> { %v1844_v41 = vadd.f32 %v6419_v18, %v1807_v22  ;;  %v1545_v28 = vrot.slane %v902_v44, 7  ;;  %1956 = vrot.lane.b32.xlu0 %v6467_v61, %s5442_s16  ;;  %v1861_v45 = vmax.f32 %v1829_v60, 0.0 }
 0x294   : >> { %v1845_v38 = vadd.f32 %v6419_v18, %v1808_v23  ;;  %v1634_v26 = vrot.slane %v1494_v34, 1 }
 0x295   : >> { %v1876_v33 = vmax.f32 %v1844_v41, 0.0  ;;  %v1578_v14 = vsel %vm1560_vm5, %v1545_v28, %v1529_v50  ;;  %v1562_v7 = vsel %vm1560_vm5, %v1529_v50, %v1545_v28  ;;  %v6495_v22 = vpack.c.bf16 %v1861_v45, %v1861_v45 }
 0x296   : >> { %v1877_v37 = vmax.f32 %v1845_v38, 0.0  ;;  %v1595_v1 = vsel %vm202_vm2, %v1578_v14, 0.0 }
 0x297   : >> { %v6477_v25 = vpack.c.bf16 %v1876_v33, %v1876_v33  ;;  %v1724_v53 = vadd.f32 %v1595_v1, %v1177_v8 }
 0x298   : >> { %v6481_v24 = vpack.c.bf16 %v1877_v37, %v1877_v37  ;;  %v1178_v59 = vpop.f32.mrf.mxu2  ;;  %v904_v31 = vpop.f32.mrf.mxu0  ;;  %v8439_v37 = vld [vmem:[#allocation13_spill] sm:$0xff] }
 0x299   : >> { %v1495_v27 = vpop.f32.mrf.mxu3  ;;  %1988 = vrot.lane.b32.xlu1 %v6477_v25, %s5442_s16  ;;  %2130 = vst.msk [vmem:[#allocation2 + $0x74] sm:$0xf] %vm400_vm0, %v6477_v25  ;;  %v1179_v0 = vadd.f32 %v1178_v59, %v8438_v40  ;;  %v1409_v48 = vpop.f32.mrf.mxu1  ;;  %v1756_v56 = vadd.f32 %v1724_v53, %v6235_v58  ;;  %v905_v54 = vadd.f32 %v904_v31, %v8439_v37  ;;  %v8442_v37 = vld [vmem:[#allocation16_spill] sm:$0xff] }
 0x29a   : >> { %v1496_v32 = vadd.f32 %v1495_v27, %v1406_v39  ;;  %1990 = vrot.lane.b32.xlu2 %v6481_v24, %s5442_s16  ;;  %2131 = vst.msk [vmem:[#allocation2 + $0x7c] sm:$0xf] %vm400_vm0, %v6481_v24  ;;  %v1693_v39 = vsel %vm205_vm3, %v6243_v47, 0.0 }
 0x29b   : >> { %v1725_v23 = vadd.f32 %v1562_v7, %v1179_v0  ;;  %1958 = vrot.lane.b32.xlu0 %v6495_v22, %s5442_s16  ;;  %v1793_v44 = vmul.f32 %v6405_v20, %v1756_v56  ;;  %v1530_v56 = vrot.slane %v905_v54, 7 }
 0x29c   : >> { %v1650_v46 = vrot.slane %v1496_v32, 1 }
 0x29d   : >> { %v1757_v41 = vadd.f32 %v1725_v23, %v1693_v39  ;;  %v1830_v28 = vadd.f32 %v6419_v18, %v1793_v44  ;;  %v8441_v39 = vld [vmem:[#allocation14_spill] sm:$0xff] }
 0x29e   : >> { %v1667_v58 = vsel %vm8388_vm6, %v1634_v26, %v1650_v46  ;;  %v1683_v60 = vsel %vm8388_vm6, %v1650_v46, %v1634_v26 }
 0x29f   : >> { %v1709_v38 = vsel %vm205_vm3, %v1683_v60, 0.0  ;;  %v1772_v50 = vadd.f32 %v6225_v51, %v1667_v58  ;;  %v1794_v47 = vmul.f32 %v6405_v20, %v1757_v41  ;;  %v1862_v45 = vmax.f32 %v1830_v28, 0.0  ;;  %v8440_v51 = vld [vmem:[#allocation15_spill] sm:$0xff] }
 0x2a0   : >> { %v1773_v33 = vadd.f32 %v6228_v3, %v1709_v38  ;;  %v1181_v8 = vpop.f32.mrf.mxu2  ;;  %v906_v1 = vpop.f32.mrf.mxu0 }
 0x2a1   : >> { %v1498_v14 = vpop.f32.mrf.mxu3  ;;  %v1809_v34 = vmul.f32 %v6405_v20, %v1772_v50  ;;  %v1411_v53 = vpop.f32.mrf.mxu1  ;;  %v1831_v59 = vadd.f32 %v6419_v18, %v1794_v47  ;;  %v907_v40 = vadd.f32 %v906_v1, %v8440_v51  ;;  %v6518_v0 = vpack.c.bf16 %v1862_v45, %v1862_v45 }
 0x2a2   : >> { %v1810_v27 = vmul.f32 %v6405_v20, %v1773_v33  ;;  %v1182_v44 = vadd.f32 %v1181_v8, %v8441_v39  ;;  %v1499_v60 = vadd.f32 %v1498_v14, %v1409_v48  ;;  %v1695_v51 = vsel %vm205_vm3, %v6272_v55, 0.0 }
 0x2a3   : >> { %v1846_v32 = vadd.f32 %v6419_v18, %v1809_v34  ;;  %v1863_v3 = vmax.f32 %v1831_v59, 0.0  ;;  %v1546_v7 = vrot.slane %v907_v40, 7  ;;  %1960 = vrot.lane.b32.xlu1 %v6518_v0, %s5442_s16  ;;  %2116 = vst.msk [vmem:[#allocation2 + $0x4] sm:$0xf] %vm400_vm0, %v6518_v0 }
 0x2a4   : >> { %v1847_v31 = vadd.f32 %v6419_v18, %v1810_v27  ;;  %v1635_v1 = vrot.slane %v1499_v60, 1 }
 0x2a5   : >> { %v1878_v26 = vmax.f32 %v1846_v32, 0.0  ;;  %v6526_v23 = vpack.c.bf16 %v1863_v3, %v1863_v3  ;;  %v1579_v41 = vsel %vm1560_vm5, %v1546_v7, %v1530_v56  ;;  %v1563_v34 = vsel %vm1560_vm5, %v1530_v56, %v1546_v7 }
 0x2a6   : >> { %v1879_v46 = vmax.f32 %v1847_v31, 0.0  ;;  %v1597_v38 = vsel %vm202_vm2, %v1579_v41, 0.0 }
 0x2a7   : >> { %v6531_v58 = vpack.c.bf16 %v1878_v26, %v1878_v26  ;;  %2117 = vst.msk [vmem:[#allocation2 + $0xc] sm:$0xf] %vm400_vm0, %v6526_v23  ;;  %v1726_v28 = vadd.f32 %v1597_v38, %v1182_v44  ;;  %v8443_v26 = vld [vmem:[#allocation17_spill] sm:$0xff] }
 0x2a8   : >> { %v6537_v50 = vpack.c.bf16 %v1879_v46, %v1879_v46  ;;  %v1183_v47 = vpop.f32.mrf.mxu2  ;;  %v909_v8 = vpop.f32.mrf.mxu0 }
 0x2a9   : >> { %v1500_v33 = vpop.f32.mrf.mxu3  ;;  %2132 = vst.msk [vmem:[#allocation2 + $0x84] sm:$0xf] %vm400_vm0, %v6531_v58  ;;  %1992 = vrot.lane.b32.xlu0 %v6531_v58, %s5442_s16  ;;  %v1184_v54 = vadd.f32 %v1183_v47, %v8442_v37  ;;  %v1414_v14 = vpop.f32.mrf.mxu1  ;;  %v1758_v45 = vadd.f32 %v1726_v28, %v6264_v29  ;;  %v910_v46 = vadd.f32 %v909_v8, %v8443_v26  ;;  %v8446_v26 = vld [vmem:[#allocation20_spill] sm:$0xff] }
 0x2aa   : >> { %v1501_v48 = vadd.f32 %v1500_v33, %v1411_v53  ;;  %2133 = vst.msk [vmem:[#allocation2 + $0x8c] sm:$0xf] %vm400_vm0, %v6537_v50 }
 0x2ab   : >> { %v1727_v59 = vadd.f32 %v1563_v34, %v1184_v54  ;;  %1962 = vrot.lane.b32.xlu1 %v6526_v23, %s5442_s16  ;;  %v1795_v53 = vmul.f32 %v6405_v20, %v1758_v45  ;;  %v1531_v45 = vrot.slane %v910_v46, 7 }
 0x2ac   : >> { %v1651_v27 = vrot.slane %v1501_v48, 1 }
 0x2ad   : >> { %v1759_v40 = vadd.f32 %v1727_v59, %v1695_v51  ;;  %v1832_v56 = vadd.f32 %v6419_v18, %v1795_v53  ;;  %v8445_v51 = vld [vmem:[#allocation18_spill] sm:$0xff] }
 0x2ae   : >> { %v1668_v32 = vsel %vm8388_vm6, %v1635_v1, %v1651_v27  ;;  %v1684_v29 = vsel %vm8388_vm6, %v1651_v27, %v1635_v1 }
 0x2af   : >> { %v1711_v3 = vsel %vm205_vm3, %v1684_v29, 0.0  ;;  %v1774_v31 = vadd.f32 %v6254_v62, %v1668_v32  ;;  %v1796_v55 = vmul.f32 %v6405_v20, %v1759_v40  ;;  %v1864_v41 = vmax.f32 %v1832_v56, 0.0  ;;  %v8444_v62 = vld [vmem:[#allocation19_spill] sm:$0xff] }
 0x2b0   : >> { %v1775_v7 = vadd.f32 %v6257_v21, %v1711_v3  ;;  %v1186_v39 = vpop.f32.mrf.mxu2  ;;  %v911_v38 = vpop.f32.mrf.mxu0 }
 0x2b1   : >> { %v1503_v44 = vpop.f32.mrf.mxu3  ;;  %v1811_v60 = vmul.f32 %v6405_v20, %v1774_v31  ;;  %v1416_v28 = vpop.f32.mrf.mxu1  ;;  %v1833_v33 = vadd.f32 %v6419_v18, %v1796_v55  ;;  %v912_v37 = vadd.f32 %v911_v38, %v8444_v62  ;;  %v6570_v54 = vpack.c.bf16 %v1864_v41, %v1864_v41 }
 0x2b2   : >> { %v1812_v47 = vmul.f32 %v6405_v20, %v1775_v7  ;;  %v1187_v53 = vadd.f32 %v1186_v39, %v8445_v51  ;;  %v1504_v29 = vadd.f32 %v1503_v44, %v1414_v14 }
 0x2b3   : >> { %v1848_v48 = vadd.f32 %v6419_v18, %v1811_v60  ;;  %v1865_v8 = vmax.f32 %v1833_v33, 0.0  ;;  %v1547_v34 = vrot.slane %v912_v37, 7  ;;  %1964 = vrot.lane.b32.xlu2 %v6570_v54, %s5442_s16  ;;  %2118 = vst.msk [vmem:[#allocation2 + $0x14] sm:$0xf] %vm400_vm0, %v6570_v54  ;;  %1994 = vrot.lane.b32.xlu1 %v6537_v50, %s5442_s16 }
 0x2b4   : >> { %v1849_v21 = vadd.f32 %v6419_v18, %v1812_v47  ;;  %v1636_v38 = vrot.slane %v1504_v29, 1 }
 0x2b5   : >> { %v1880_v1 = vmax.f32 %v1848_v48, 0.0  ;;  %v6580_v27 = vpack.c.bf16 %v1865_v8, %v1865_v8  ;;  %v1580_v40 = vsel %vm1560_vm5, %v1547_v34, %v1531_v45  ;;  %v1564_v60 = vsel %vm1560_vm5, %v1531_v45, %v1547_v34 }
 0x2b6   : >> { %v1881_v59 = vmax.f32 %v1849_v21, 0.0  ;;  %v1599_v3 = vsel %vm202_vm2, %v1580_v40, 0.0 }
 0x2b7   : >> { %v6585_v32 = vpack.c.bf16 %v1880_v1, %v1880_v1  ;;  %2119 = vst.msk [vmem:[#allocation2 + $0x1c] sm:$0xf] %vm400_vm0, %v6580_v27  ;;  %v1728_v56 = vadd.f32 %v1599_v3, %v1187_v53  ;;  %v8447_v1 = vld [vmem:[#allocation21_spill] sm:$0xff] }
 0x2b8   : >> { %v6589_v31 = vpack.c.bf16 %v1881_v59, %v1881_v59  ;;  %v1188_v55 = vpop.f32.mrf.mxu2  ;;  %v914_v14 = vpop.f32.mrf.mxu0 }
 0x2b9   : >> { %v1505_v7 = vpop.f32.mrf.mxu3  ;;  %2134 = vst.msk [vmem:[#allocation2 + $0x94] sm:$0xf] %vm400_vm0, %v6585_v32  ;;  %v1189_v46 = vadd.f32 %v1188_v55, %v8446_v26  ;;  %v1419_v44 = vpop.f32.mrf.mxu1  ;;  %v1760_v41 = vadd.f32 %v1728_v56, %v6293_v5  ;;  %v915_v59 = vadd.f32 %v914_v14, %v8447_v1  ;;  %v8450_v1 = vld [vmem:[#allocation24_spill] sm:$0xff] }
 0x2ba   : >> { %v1506_v39 = vadd.f32 %v1505_v7, %v1416_v28  ;;  %2135 = vst.msk [vmem:[#allocation2 + $0x9c] sm:$0xf] %vm400_vm0, %v6589_v31  ;;  %1998 = vrot.lane.b32.xlu0 %v6589_v31, %s5442_s16  ;;  %v1697_v28 = vsel %vm205_vm3, %v6301_v63, 0.0 }
 0x2bb   : >> { %v1729_v47 = vadd.f32 %v1564_v60, %v1189_v46  ;;  %1966 = vrot.lane.b32.xlu2 %v6580_v27, %s5442_s16  ;;  %v1797_v62 = vmul.f32 %v6405_v20, %v1760_v41  ;;  %v1532_v41 = vrot.slane %v915_v59, 7 }
 0x2bc   : >> { %v1652_v33 = vrot.slane %v1506_v39, 1 }
 0x2bd   : >> { %v1761_v37 = vadd.f32 %v1729_v47, %v1697_v28  ;;  %v1834_v45 = vadd.f32 %v6419_v18, %v1797_v62  ;;  %v8449_v28 = vld [vmem:[#allocation22_spill] sm:$0xff] }
 0x2be   : >> { %v1669_v48 = vsel %vm8388_vm6, %v1636_v38, %v1652_v33  ;;  %v1685_v5 = vsel %vm8388_vm6, %v1652_v33, %v1636_v38 }
 0x2bf   : >> { %v1713_v21 = vsel %vm205_vm3, %v1685_v5, 0.0  ;;  %v1776_v8 = vadd.f32 %v6283_v19, %v1669_v48  ;;  %v1798_v63 = vmul.f32 %v6405_v20, %v1761_v37  ;;  %v1866_v40 = vmax.f32 %v1834_v45, 0.0  ;;  %v8448_v19 = vld [vmem:[#allocation23_spill] sm:$0xff] }
 0x2c0   : >> { %v1777_v34 = vadd.f32 %v6286_v6, %v1713_v21  ;;  %v1191_v51 = vpop.f32.mrf.mxu2  ;;  %v916_v3 = vpop.f32.mrf.mxu0 }
 0x2c1   : >> { %v1508_v53 = vpop.f32.mrf.mxu3  ;;  %v1813_v29 = vmul.f32 %v6405_v20, %v1776_v8  ;;  %v1421_v56 = vpop.f32.mrf.mxu1  ;;  %v1835_v55 = vadd.f32 %v6419_v18, %v1798_v63  ;;  %v917_v26 = vadd.f32 %v916_v3, %v8448_v19  ;;  %v6624_v46 = vpack.c.bf16 %v1866_v40, %v1866_v40 }
 0x2c2   : >> { %v1814_v7 = vmul.f32 %v6405_v20, %v1777_v34  ;;  %v1192_v62 = vadd.f32 %v1191_v51, %v8449_v28  ;;  %v1509_v5 = vadd.f32 %v1508_v53, %v1419_v44  ;;  %v1699_v19 = vsel %vm205_vm3, %v6326_v17, 0.0 }
 0x2c3   : >> { %v1850_v39 = vadd.f32 %v6419_v18, %v1813_v29  ;;  %v1867_v6 = vmax.f32 %v1835_v55, 0.0  ;;  %v1548_v60 = vrot.slane %v917_v26, 7  ;;  %1996 = vrot.lane.b32.xlu2 %v6585_v32, %s5442_s16  ;;  %2120 = vst.msk [vmem:[#allocation2 + $0x24] sm:$0xf] %vm400_vm0, %v6624_v46  ;;  %1968 = vrot.lane.b32.xlu0 %v6624_v46, %s5442_s16 }
 0x2c4   : >> { %v1851_v14 = vadd.f32 %v6419_v18, %v1814_v7  ;;  %v1637_v3 = vrot.slane %v1509_v5, 1 }
 0x2c5   : >> { %v1882_v38 = vmax.f32 %v1850_v39, 0.0  ;;  %v6634_v47 = vpack.c.bf16 %v1867_v6, %v1867_v6  ;;  %v1581_v37 = vsel %vm1560_vm5, %v1548_v60, %v1532_v41  ;;  %v1565_v29 = vsel %vm1560_vm5, %v1532_v41, %v1548_v60 }
 0x2c6   : >> { %v1883_v33 = vmax.f32 %v1851_v14, 0.0  ;;  %v1601_v21 = vsel %vm202_vm2, %v1581_v37, 0.0 }
 0x2c7   : >> { %v6639_v48 = vpack.c.bf16 %v1882_v38, %v1882_v38  ;;  %2121 = vst.msk [vmem:[#allocation2 + $0x2c] sm:$0xf] %vm400_vm0, %v6634_v47  ;;  %1970 = vrot.lane.b32.xlu1 %v6634_v47, %s5442_s16  ;;  %v1730_v45 = vadd.f32 %v1601_v21, %v1192_v62  ;;  %v8451_v38 = vld [vmem:[#allocation25_spill] sm:$0xff] }
 0x2c8   : >> { %v6647_v8 = vpack.c.bf16 %v1883_v33, %v1883_v33  ;;  %v1193_v63 = vpop.f32.mrf.mxu2  ;;  %v919_v51 = vpop.f32.mrf.mxu0 }
 0x2c9   : >> { %v1510_v34 = vpop.f32.mrf.mxu3  ;;  %2136 = vst.msk [vmem:[#allocation2 + $0xa4] sm:$0xf] %vm400_vm0, %v6639_v48  ;;  %v1194_v59 = vadd.f32 %v1193_v63, %v8450_v1  ;;  %v1424_v53 = vpop.f32.mrf.mxu1  ;;  %v1762_v40 = vadd.f32 %v1730_v45, %v6322_v4  ;;  %v920_v33 = vadd.f32 %v919_v51, %v8451_v38  ;;  %v8454_v38 = vld [vmem:[#allocation28_spill] sm:$0xff] }
 0x2ca   : >> { %v1511_v44 = vadd.f32 %v1510_v34, %v1421_v56  ;;  %2137 = vst.msk [vmem:[#allocation2 + $0xac] sm:$0xf] %vm400_vm0, %v6647_v8  ;;  %v8452_v34 = vld [vmem:[#allocation27_spill] sm:$0xff] }
 0x2cb   : >> { %v1731_v55 = vadd.f32 %v1565_v29, %v1194_v59  ;;  %2002 = vrot.lane.b32.xlu2 %v6647_v8, %s5442_s16  ;;  %v1799_v56 = vmul.f32 %v6405_v20, %v1762_v40  ;;  %v1533_v40 = vrot.slane %v920_v33, 7 }
 0x2cc   : >> { %v1653_v7 = vrot.slane %v1511_v44, 1 }
 0x2cd   : >> { %v1763_v26 = vadd.f32 %v1731_v55, %v1699_v19  ;;  %v1836_v41 = vadd.f32 %v6419_v18, %v1799_v56  ;;  %v8453_v19 = vld [vmem:[#allocation26_spill] sm:$0xff] }
 0x2ce   : >> { %v1670_v39 = vsel %vm8388_vm6, %v1637_v3, %v1653_v7  ;;  %v1686_v4 = vsel %vm8388_vm6, %v1653_v7, %v1637_v3 }
 0x2cf   : >> { %v1715_v6 = vsel %vm205_vm3, %v1686_v4, 0.0  ;;  %v1778_v14 = vadd.f32 %v6312_v43, %v1670_v39  ;;  %v1800_v17 = vmul.f32 %v6405_v20, %v1763_v26  ;;  %2000 = vrot.lane.b32.xlu1 %v6639_v48, %s5442_s16  ;;  %v1868_v37 = vmax.f32 %v1836_v41, 0.0 }
 0x2d0   : >> { %v1779_v60 = vadd.f32 %v6315_v9, %v1715_v6  ;;  %v1196_v28 = vpop.f32.mrf.mxu2  ;;  %v921_v21 = vpop.f32.mrf.mxu0 }
 0x2d1   : >> { %v1513_v62 = vpop.f32.mrf.mxu3  ;;  %v1815_v5 = vmul.f32 %v6405_v20, %v1778_v14  ;;  %v1426_v45 = vpop.f32.mrf.mxu1  ;;  %v1837_v43 = vadd.f32 %v6419_v18, %v1800_v17  ;;  %v922_v1 = vadd.f32 %v921_v21, %v8452_v34  ;;  %v6680_v59 = vpack.c.bf16 %v1868_v37, %v1868_v37 }
 0x2d2   : >> { %v1816_v63 = vmul.f32 %v6405_v20, %v1779_v60  ;;  %v1197_v56 = vadd.f32 %v1196_v28, %v8453_v19  ;;  %v1514_v4 = vadd.f32 %v1513_v62, %v1424_v53 }
 0x2d3   : >> { %v1852_v9 = vadd.f32 %v6419_v18, %v1815_v5  ;;  %v1869_v44 = vmax.f32 %v1837_v43, 0.0  ;;  %v1549_v29 = vrot.slane %v922_v1, 7  ;;  %2122 = vst.msk [vmem:[#allocation2 + $0x34] sm:$0xf] %vm400_vm0, %v6680_v59  ;;  %1972 = vrot.lane.b32.xlu2 %v6680_v59, %s5442_s16 }
 0x2d4   : >> { %v1853_v51 = vadd.f32 %v6419_v18, %v1816_v63  ;;  %v1638_v21 = vrot.slane %v1514_v4, 1 }
 0x2d5   : >> { %v1884_v3 = vmax.f32 %v1852_v9, 0.0  ;;  %v6688_v55 = vpack.c.bf16 %v1869_v44, %v1869_v44  ;;  %v1582_v26 = vsel %vm1560_vm5, %v1549_v29, %v1533_v40  ;;  %v1566_v37 = vsel %vm1560_vm5, %v1533_v40, %v1549_v29 }
 0x2d6   : >> { %v1885_v7 = vmax.f32 %v1853_v51, 0.0  ;;  %v1603_v6 = vsel %vm202_vm2, %v1582_v26, 0.0 }
 0x2d7   : >> { %v6693_v39 = vpack.c.bf16 %v1884_v3, %v1884_v3  ;;  %2123 = vst.msk [vmem:[#allocation2 + $0x3c] sm:$0xf] %vm400_vm0, %v6688_v55  ;;  %1974 = vrot.lane.b32.xlu0 %v6688_v55, %s5442_s16  ;;  %v1732_v41 = vadd.f32 %v1603_v6, %v1197_v56  ;;  %v8455_v3 = vld [vmem:[#allocation29_spill] sm:$0xff] }
 0x2d8   : >> { %v6701_v14 = vpack.c.bf16 %v1885_v7, %v1885_v7  ;;  %v1198_v17 = vpop.f32.mrf.mxu2  ;;  %v924_v28 = vpop.f32.mrf.mxu0 }
 0x2d9   : >> { %v1515_v60 = vpop.f32.mrf.mxu3  ;;  %2138 = vst.msk [vmem:[#allocation2 + $0xb4] sm:$0xf] %vm400_vm0, %v6693_v39  ;;  %v1199_v33 = vadd.f32 %v1198_v17, %v8454_v38  ;;  %v1764_v62 = vadd.f32 %v1732_v41, %v6351_v13  ;;  %v1429_v5 = vpop.f32.mrf.mxu1  ;;  %v925_v7 = vadd.f32 %v924_v28, %v8455_v3 }
 0x2da   : >> { %v1516_v53 = vadd.f32 %v1515_v60, %v1426_v45  ;;  %2139 = vst.msk [vmem:[#allocation2 + $0xbc] sm:$0xf] %vm400_vm0, %v6701_v14  ;;  %2006 = vrot.lane.b32.xlu1 %v6701_v14, %s5442_s16  ;;  %v1701_v45 = vsel %vm205_vm3, %v6355_v36, 0.0  ;;  %v8456_v60 = vld [vmem:[#allocation32_spill] sm:$0xff] }
 0x2db   : >> { %v1733_v43 = vadd.f32 %v1566_v37, %v1199_v33  ;;  %v1801_v34 = vmul.f32 %v6405_v20, %v1764_v62  ;;  %v1534_v62 = vrot.slane %v925_v7, 7  ;;  %v8458_v7 = vld [vmem:[#allocation33_spill] sm:$0xff] }
 0x2dc   : >> { %v1654_v63 = vrot.slane %v1516_v53, 1 }
 0x2dd   : >> { %v1765_v1 = vadd.f32 %v1733_v43, %v1701_v45  ;;  %v1838_v40 = vadd.f32 %v6419_v18, %v1801_v34  ;;  %v8457_v34 = vld [vmem:[#allocation30_spill] sm:$0xff] }
 0x2de   : >> { %v1671_v9 = vsel %vm8388_vm6, %v1638_v21, %v1654_v63  ;;  %v1687_v13 = vsel %vm8388_vm6, %v1654_v63, %v1638_v21 }
 0x2df   : >> { %v1717_v44 = vsel %vm205_vm3, %v1687_v13, 0.0  ;;  %v1780_v51 = vadd.f32 %v6341_v2, %v1671_v9  ;;  %v1802_v29 = vmul.f32 %v6405_v20, %v1765_v1  ;;  %2004 = vrot.lane.b32.xlu0 %v6693_v39, %s5442_s16  ;;  %v1870_v26 = vmax.f32 %v1838_v40, 0.0 }
 0x2e0   : >> { %v1781_v36 = vadd.f32 %v6344_v11, %v1717_v44  ;;  %v1201_v19 = vpop.f32.mrf.mxu2  ;;  %v926_v6 = vpop.f32.mrf.mxu0 }
 0x2e1   : >> { %v1518_v56 = vpop.f32.mrf.mxu3  ;;  %v1817_v4 = vmul.f32 %v6405_v20, %v1780_v51  ;;  %v1839_v41 = vadd.f32 %v6419_v18, %v1802_v29  ;;  %v927_v38 = vadd.f32 %v926_v6, %v8456_v60  ;;  %v6734_v33 = vpack.c.bf16 %v1870_v26, %v1870_v26  ;;  %v1431_v37 = vpop.f32.mrf.mxu1 }
 0x2e2   : >> { %v1818_v2 = vmul.f32 %v6405_v20, %v1781_v36  ;;  %v1202_v1 = vadd.f32 %v1201_v19, %v8457_v34  ;;  %v1519_v44 = vadd.f32 %v1518_v56, %v1429_v5 }
 0x2e3   : >> { %v1985_v17 = vpop.permute.xlu2 %1984  ;;  %v1854_v11 = vadd.f32 %v6419_v18, %v1817_v4  ;;  %v1871_v53 = vmax.f32 %v1839_v41, 0.0  ;;  %v1550_v21 = vrot.slane %v927_v38, 7  ;;  %2124 = vst.msk [vmem:[#allocation2 + $0x44] sm:$0xf] %vm400_vm0, %v6734_v33  ;;  %1976 = vrot.lane.b32.xlu1 %v6734_v33, %s5442_s16 }
 0x2e4   : >> { %2066 = vst.msk [vmem:[#allocation2 + $0x70] sm:$0xf] %vm366_vm1, %v1985_v17  ;;  %v1855_v28 = vadd.f32 %v6419_v18, %v1818_v2  ;;  %v1639_v4 = vrot.slane %v1519_v44, 1  ;;  %v1703_v2 = vsel %vm205_vm3, %v6382_v15, 0.0 }
 0x2e5   : >> { %v1886_v43 = vmax.f32 %v1854_v11, 0.0  ;;  %v6743_v63 = vpack.c.bf16 %v1871_v53, %v1871_v53  ;;  %v1583_v9 = vsel %vm1560_vm5, %v1550_v21, %v1534_v62  ;;  %v1567_v26 = vsel %vm1560_vm5, %v1534_v62, %v1550_v21 }
 0x2e6   : >> { %v1887_v45 = vmax.f32 %v1855_v28, 0.0  ;;  %v1605_v51 = vsel %vm202_vm2, %v1583_v9, 0.0 }
 0x2e7   : >> { %v6748_v13 = vpack.c.bf16 %v1886_v43, %v1886_v43  ;;  %2125 = vst.msk [vmem:[#allocation2 + $0x4c] sm:$0xf] %vm400_vm0, %v6743_v63  ;;  %1978 = vrot.lane.b32.xlu2 %v6743_v63, %s5442_s16  ;;  %v1734_v29 = vadd.f32 %v1605_v51, %v1202_v1 }
 0x2e8   : >> { %v6756_v40 = vpack.c.bf16 %v1887_v45, %v1887_v45  ;;  %v1203_v36 = vpop.f32.mrf.mxu2 }
 0x2e9   : >> { %v1520_v3 = vpop.f32.mrf.mxu3  ;;  %2140 = vst.msk [vmem:[#allocation2 + $0xc4] sm:$0xf] %vm400_vm0, %v6748_v13  ;;  %v1204_v19 = vadd.f32 %v1203_v36, %v8458_v7  ;;  %v1766_v56 = vadd.f32 %v1734_v29, %v6378_v35  ;;  %v1434_v28 = vpop.f32.mrf.mxu1 }
 0x2ea   : >> { %v1521_v5 = vadd.f32 %v1520_v3, %v1431_v37  ;;  %2141 = vst.msk [vmem:[#allocation2 + $0xcc] sm:$0xf] %vm400_vm0, %v6756_v40  ;;  %2010 = vrot.lane.b32.xlu0 %v6756_v40, %s5442_s16 }
 0x2eb   : >> { %v1735_v6 = vadd.f32 %v1567_v26, %v1204_v19  ;;  %v1803_v17 = vmul.f32 %v6405_v20, %v1766_v56 }
 0x2ec   : >> { %v1655_v41 = vrot.slane %v1521_v5, 1 }
 0x2ed   : >> { %v1767_v60 = vadd.f32 %v1735_v6, %v1703_v2  ;;  %v1840_v62 = vadd.f32 %v6419_v18, %v1803_v17 }
 0x2ee   : >> { %v1672_v38 = vsel %vm8388_vm6, %v1639_v4, %v1655_v41  ;;  %v1688_v11 = vsel %vm8388_vm6, %v1655_v41, %v1639_v4 }
 0x2ef   : >> { %v1719_v35 = vsel %vm205_vm3, %v1688_v11, 0.0  ;;  %v1782_v53 = vadd.f32 %v6370_v49, %v1672_v38  ;;  %v1804_v37 = vmul.f32 %v6405_v20, %v1767_v60  ;;  %2008 = vrot.lane.b32.xlu2 %v6748_v13, %s5442_s16  ;;  %v1872_v43 = vmax.f32 %v1840_v62, 0.0 }
 0x2f0   : >> { %v1783_v15 = vadd.f32 %v6373_v12, %v1719_v35 }
 0x2f1   : >> { %v1523_v21 = vpop.f32.mrf.mxu3  ;;  %v1819_v45 = vmul.f32 %v6405_v20, %v1782_v53  ;;  %v1841_v34 = vadd.f32 %v6419_v18, %v1804_v37  ;;  %v1904_v9 = vpack.c.bf16 %v1872_v43, %v1872_v43  ;;  %v1436_v56 = vpop.f32.mrf.mxu1  ;;  %v8459_v43 = vmov 0  }
 0x2f2   : >> { %v1820_v1 = vmul.f32 %v6405_v20, %v1783_v15  ;;  %v1524_v19 = vadd.f32 %v1523_v21, %v1434_v28 }
 0x2f3   : >> { %v1856_v49 = vadd.f32 %v6419_v18, %v1819_v45  ;;  %v1873_v51 = vmax.f32 %v1841_v34, 0.0  ;;  %1980 = vrot.lane.b32.xlu0 %v1904_v9, %s5442_s16  ;;  %2096 = vst.msk [vmem:[#allocation2 + $0x70] sm:$0xf] %vm400_vm0, %v1904_v9 }
 0x2f4   : >> { %v1991_v44 = vpop.permute.xlu2 %1990  ;;  %v1857_v29 = vadd.f32 %v6419_v18, %v1820_v1  ;;  %2126 = vst.msk [vmem:[#allocation2 + $0x54] sm:$0xf] %vm400_vm0, %v1904_v9  ;;  %v6931_v9 = vld [vmem:[%s8376_s1 + $0x1738] sm:$0xff] (%p468_p4) }
 0x2f5   : >> { %2069 = vst.msk [vmem:[#allocation2 + $0x88] sm:$0xf] %vm366_vm1, %v1991_v44  ;;  %v1888_v12 = vmax.f32 %v1856_v49, 0.0  ;;  %v1905_v36 = vpack.c.bf16 %v1873_v51, %v1873_v51  ;;  %v5223_v49 = vld [vmem:[%s8376_s1 + $0x16b0] sm:$0xff] (%p468_p4)  ;;  %5265 = vmatpush.bf16.msra.mxu3 (%p468_p4), %v6931_v9 }
 0x2f6   : >> { %2099 = vst.msk [vmem:[#allocation2 + $0x88] sm:$0xf] %vm400_vm0, %v6435_v30  ;;  %v1889_v3 = vmax.f32 %v1857_v29, 0.0  ;;  %v1640_v30 = vrot.slane %v1524_v19, 1  ;;  %v6940_v44 = vld [vmem:[%s8376_s1 + $0x16d0] sm:$0xff] (%p468_p4)  ;;  %v5221_v19 = vld [vmem:[%s8376_s1 + $0x16a0] sm:$0xff] (%p468_p4) }
 0x2f7   : >> { %v6794_v7 = vpack.c.bf16 %v1888_v12, %v1888_v12  ;;  %1982 = vrot.lane.b32.xlu1 %v1905_v36, %s5442_s16  ;;  %2127 = vst.msk [vmem:[#allocation2 + $0x5c] sm:$0xf] %vm400_vm0, %v1905_v36  ;;  %v5235_v51 = vld [vmem:[%s8376_s1 + $0x1710] sm:$0xff] (%p468_p4)  ;;  %v5222_v12 = vld [vmem:[%s8376_s1 + $0x16a8] sm:$0xff] (%p468_p4) }
 0x2f8   : >> { %v6798_v5 = vpack.c.bf16 %v1889_v3, %v1889_v3  ;;  %v6949_v29 = vld [vmem:[%s8376_s1 + $0x1730] sm:$0xff] (%p468_p4)  ;;  %v5234_v3 = vld [vmem:[%s8376_s1 + $0x1708] sm:$0xff] (%p468_p4) }
 0x2f9   : >> { %v1525_v26 = vpop.f32.mrf.mxu3  ;;  %2142 = vst.msk [vmem:[#allocation2 + $0xd4] sm:$0xf] %vm400_vm0, %v6794_v7  ;;  %5266 = vmatpush.bf16.msra.mxu3 (%p468_p4), %v6949_v29 }
 0x2fa   : >> { %v1526_v4 = vadd.f32 %v1525_v26, %v1436_v56  ;;  %2143 = vst.msk [vmem:[#allocation2 + $0xdc] sm:$0xf] %vm400_vm0, %v6798_v5  ;;  %2014 = vrot.lane.b32.xlu2 %v6798_v5, %s5442_s16  ;;  %v5199_v56 = vld [vmem:[#allocation2 + $0x74] sm:$0xf] (%p468_p4)  ;;  %v4770_v26 = vld [vmem:[#allocation2 + $0x78] sm:$0xf0] (%p468_p4) }
 0x2fc   : >> { %v1656_v6 = vrot.slane %v1526_v4, 1  ;;  %v1987_v41 = vpop.permute.xlu0 %1986  ;;  %v5233_v4 = vld [vmem:[%s8376_s1 + $0x1700] sm:$0xff] (%p468_p4) }
 0x2fd   : >> { %2067 = vst.msk [vmem:[#allocation2 + $0x78] sm:$0xf] %vm366_vm1, %v1987_v41  ;;  %v5248_v41 = vld [vmem:[%s8376_s1 + $0x1778] sm:$0xff] (%p468_p4) }
 0x2fe   : >> { %v1673_v2 = vsel %vm8388_vm6, %v1640_v30, %v1656_v6  ;;  %v1689_v17 = vsel %vm8388_vm6, %v1656_v6, %v1640_v30  ;;  %2097 = vst.msk [vmem:[#allocation2 + $0x78] sm:$0xf] %vm400_vm0, %v1905_v36  ;;  %v6958_v36 = vld [vmem:[%s8376_s1 + $0x16c8] sm:$0xff] (%p468_p4)  ;;  %v5237_v30 = vld [vmem:[%s8376_s1 + $0x1720] sm:$0xff] (%p468_p4)  ;;  %v5252_v6 = vld [vmem:[%s8376_s1 + $0x1798] sm:$0xff] (%p468_p4) }
 0x2ff   : >> { %v1721_v60 = vsel %vm205_vm3, %v1689_v17, 0.0  ;;  %v1784_v38 = vadd.f32 %v6395_v52, %v1673_v2  ;;  %2012 = vrot.lane.b32.xlu1 %v6794_v7, %s5442_s16  ;;  %v6986_v2 = vor.u32 (%p468_p4), %v5199_v56, %v4770_v26  ;;  %v5220_v17 = vld [vmem:[%s8376_s1 + $0x1698] sm:$0xff] (%p468_p4) }
 0x300   : >> { %v1785_v11 = vadd.f32 %v6398_v16, %v1721_v60  ;;  %v5232_v60 = vld [vmem:[%s8376_s1 + $0x16f8] sm:$0xff] (%p468_p4) }
 0x301   : >> { %v1821_v35 = vmul.f32 %v6405_v20, %v1784_v38  ;;  %v5247_v38 = vld [vmem:[%s8376_s1 + $0x1770] sm:$0xff] (%p468_p4) }
 0x302   : >> { %v1822_v53 = vmul.f32 %v6405_v20, %v1785_v11  ;;  %v5219_v11 = vld [vmem:[%s8376_s1 + $0x1690] sm:$0xff] (%p468_p4) }
 0x303   : >> { %v1858_v28 = vadd.f32 %v6419_v18, %v1821_v35  ;;  %v5251_v35 = vld [vmem:[%s8376_s1 + $0x1790] sm:$0xff] (%p468_p4) }
 0x304   : >> { %v1859_v62 = vadd.f32 %v6419_v18, %v1822_v53  ;;  %v5231_v53 = vld [vmem:[%s8376_s1 + $0x16f0] sm:$0xff] (%p468_p4) }
 0x305   : >> { %v1890_v37 = vmax.f32 %v1858_v28, 0.0  ;;  %v1957_v21 = vpop.permute.xlu0 %1956  ;;  %v5246_v28 = vld [vmem:[%s8376_s1 + $0x1768] sm:$0xff] (%p468_p4) }
 0x306   : >> { %v1891_v15 = vmax.f32 %v1859_v62, 0.0  ;;  %2052 = vst.msk [vmem:[#allocation2] sm:$0xf] %vm366_vm1, %v1957_v21  ;;  %v5218_v62 = vld [vmem:[%s8376_s1 + $0x1688] sm:$0xff] (%p468_p4) }
 0x307   : >> { %v1922_v42 = vpack.c.bf16 %v1890_v37, %v1890_v37  ;;  %2114 = vst.msk [vmem:[#allocation2] sm:$0xf] %vm400_vm0, %v8459_v43  ;;  %v5230_v37 = vld [vmem:[%s8376_s1 + $0x16e8] sm:$0xff] (%p468_p4) }
 0x308   : >> { %v1923_v52 = vpack.c.bf16 %v1891_v15, %v1891_v15  ;;  %v5217_v15 = vld [vmem:[%s8376_s1 + $0x1680] sm:$0xff] (%p468_p4) }
 0x309   : >> { %2016 = vrot.lane.b32.xlu0 %v1922_v42, %s5442_s16  ;;  %2144 = vst.msk [vmem:[#allocation2 + $0xe4] sm:$0xf] %vm400_vm0, %v1922_v42 }
 0x30a   : >> { %2018 = vrot.lane.b32.xlu1 %v1923_v52, %s5442_s16  ;;  %2145 = vst.msk [vmem:[#allocation2 + $0xec] sm:$0xf] %vm400_vm0, %v1923_v52  ;;  %v5201_v52 = vld [vmem:[#allocation2 + $0x84] sm:$0xf] (%p468_p4) }
 0x30b   : >> { %v1989_v16 = vpop.permute.xlu1 %1988 }
 0x30c   : >> { %2068 = vst.msk [vmem:[#allocation2 + $0x80] sm:$0xf] %vm366_vm1, %v1989_v16  ;;  %v5229_v16 = vld [vmem:[%s8376_s1 + $0x16e0] sm:$0xff] (%p468_p4) }
 0x30d   : >> { %2098 = vst.msk [vmem:[#allocation2 + $0x80] sm:$0xf] %vm400_vm0, %v6431_v10  ;;  %v1965_v20 = vpop.permute.xlu2 %1964  ;;  %v1959_v18 = vpop.permute.xlu0 %1958 }
 0x30e   : >> { %2056 = vst.msk [vmem:[#allocation2 + $0x20] sm:$0xf] %vm366_vm1, %v1965_v20  ;;  %v4712_v21 = vld [vmem:[#allocation2] sm:$0xf] (%p468_p4) }
 0x30f   : >> { %2086 = vst.msk [vmem:[#allocation2 + $0x20] sm:$0xf] %vm400_vm0, %v6518_v0 }
 0x310   : >> { %2053 = vst.msk [vmem:[#allocation2 + $0x8] sm:$0xf] %vm366_vm1, %v1959_v18  ;;  %v5213_v56 = vld [vmem:[#allocation2 + $0xe4] sm:$0xf] (%p468_p4) }
 0x311   : >> { %2115 = vst.msk [vmem:[#allocation2 + $0x8] sm:$0xf] %vm400_vm0, %v8459_v43  ;;  %v4778_v43 = vld [vmem:[#allocation2 + $0x88] sm:$0xf0] (%p468_p4) }
 0x312   : > { %v7027_v18 = vor.u32 (%p468_p4), %v5201_v52, %v4778_v43  ;;  %v4826_v26 = vld [vmem:[#allocation2 + $0xe8] sm:$0xf0] (%p468_p4) }
 0x315   : >> { %v1967_v45 = vpop.permute.xlu2 %1966  ;;  %v1961_v34 = vpop.permute.xlu1 %1960 }
 0x316   : >> { %2057 = vst.msk [vmem:[#allocation2 + $0x28] sm:$0xf] %vm366_vm1, %v1967_v45  ;;  %v5245_v45 = vld [vmem:[%s8376_s1 + $0x1760] sm:$0xff] (%p468_p4) }
 0x317   : >> { %2087 = vst.msk [vmem:[#allocation2 + $0x28] sm:$0xf] %vm400_vm0, %v6526_v23 }
 0x318   : >> { %2054 = vst.msk [vmem:[#allocation2 + $0x10] sm:$0xf] %vm366_vm1, %v1961_v34  ;;  %v5186_v42 = vld [vmem:[#allocation2 + $0x4] sm:$0xf0] (%p468_p4) }
 0x319   : >> { %2084 = vst.msk [vmem:[#allocation2 + $0x10] sm:$0xf] %vm400_vm0, %v6467_v61  ;;  %v7025_v20 = vor.u32 (%p468_p4), %v5186_v42, %v4712_v21  ;;  %v4714_v21 = vld [vmem:[#allocation2 + $0x8] sm:$0xf0] (%p468_p4) }
 0x31b   : >> { %v1993_v10 = vpop.permute.xlu0 %1992 }
 0x31c   : >> { %2070 = vst.msk [vmem:[#allocation2 + $0x90] sm:$0xf] %vm366_vm1, %v1993_v10 }
 0x31d   : >> { %2100 = vst.msk [vmem:[#allocation2 + $0x90] sm:$0xf] %vm400_vm0, %v6477_v25  ;;  %v1997_v0 = vpop.permute.xlu2 %1996  ;;  %v1963_v1 = vpop.permute.xlu1 %1962 }
 0x31e   : >> { %2072 = vst.msk [vmem:[#allocation2 + $0xa0] sm:$0xf] %vm366_vm1, %v1997_v0  ;;  %v5203_v0 = vld [vmem:[#allocation2 + $0x94] sm:$0xf] (%p468_p4) }
 0x31f   : >> { %2102 = vst.msk [vmem:[#allocation2 + $0xa0] sm:$0xf] %vm400_vm0, %v6531_v58 }
 0x320   : >> { %2055 = vst.msk [vmem:[#allocation2 + $0x18] sm:$0xf] %vm366_vm1, %v1963_v1  ;;  %v4720_v34 = vld [vmem:[#allocation2 + $0x10] sm:$0xf] (%p468_p4)  ;;  %v4786_v1 = vld [vmem:[#allocation2 + $0x98] sm:$0xf0] (%p468_p4) }
 0x321   : >> { %2085 = vst.msk [vmem:[#allocation2 + $0x18] sm:$0xf] %vm400_vm0, %v6495_v22 }
 0x325   : >> { %v2003_v23 = vpop.permute.xlu2 %2002  ;;  %v1995_v61 = vpop.permute.xlu1 %1994 }
 0x326   : >> { %2075 = vst.msk [vmem:[#allocation2 + $0xb8] sm:$0xf] %vm366_vm1, %v2003_v23 }
 0x327   : >> { %2105 = vst.msk [vmem:[#allocation2 + $0xb8] sm:$0xf] %vm400_vm0, %v6589_v31 }
 0x328   : >> { %2071 = vst.msk [vmem:[#allocation2 + $0x98] sm:$0xf] %vm366_vm1, %v1995_v61  ;;  %v5188_v10 = vld [vmem:[#allocation2 + $0x14] sm:$0xf0] (%p468_p4)  ;;  %v7045_v61 = vor.u32 (%p468_p4), %v5203_v0, %v4786_v1 }
 0x329   : >> { %2101 = vst.msk [vmem:[#allocation2 + $0x98] sm:$0xf] %vm400_vm0, %v6481_v24  ;;  %v7043_v23 = vor.u32 (%p468_p4), %v5188_v10, %v4720_v34 }
 0x32c   : >> { %v1999_v25 = vpop.permute.xlu0 %1998 }
 0x32d   : >> { %2073 = vst.msk [vmem:[#allocation2 + $0xa8] sm:$0xf] %vm366_vm1, %v1999_v25  ;;  %v1973_v58 = vpop.permute.xlu2 %1972  ;;  %v5250_v25 = vld [vmem:[%s8376_s1 + $0x1788] sm:$0xff] (%p468_p4) }
 0x32e   : >> { %2103 = vst.msk [vmem:[#allocation2 + $0xa8] sm:$0xf] %vm400_vm0, %v6537_v50 }
 0x32f   : >> { %2060 = vst.msk [vmem:[#allocation2 + $0x40] sm:$0xf] %vm366_vm1, %v1973_v58  ;;  %v5244_v58 = vld [vmem:[%s8376_s1 + $0x1758] sm:$0xff] (%p468_p4) }
 0x330   : >> { %2090 = vst.msk [vmem:[#allocation2 + $0x40] sm:$0xf] %vm400_vm0, %v6624_v46 }
 0x335   : >> { %v1969_v22 = vpop.permute.xlu0 %1968 }
 0x336   : >> { %2058 = vst.msk [vmem:[#allocation2 + $0x30] sm:$0xf] %vm366_vm1, %v1969_v22  ;;  %v4728_v22 = vld [vmem:[#allocation2 + $0x20] sm:$0xf] (%p468_p4) }
 0x337   : >> { %2088 = vst.msk [vmem:[#allocation2 + $0x30] sm:$0xf] %vm400_vm0, %v6570_v54 }
 0x339   : >> { %v1971_v31 = vpop.permute.xlu1 %1970 }
 0x33a   : >> { %2059 = vst.msk [vmem:[#allocation2 + $0x38] sm:$0xf] %vm366_vm1, %v1971_v31  ;;  %v5190_v31 = vld [vmem:[#allocation2 + $0x24] sm:$0xf0] (%p468_p4) }
 0x33b   : >> { %2089 = vst.msk [vmem:[#allocation2 + $0x38] sm:$0xf] %vm400_vm0, %v6580_v27 }
 0x341   : >> { %v1979_v24 = vpop.permute.xlu2 %1978  ;;  %v2001_v50 = vpop.permute.xlu1 %2000 }
 0x342   : >> { %2063 = vst.msk [vmem:[#allocation2 + $0x58] sm:$0xf] %vm366_vm1, %v1979_v24  ;;  %v5205_v24 = vld [vmem:[#allocation2 + $0xa4] sm:$0xf] (%p468_p4) }
 0x343   : >> { %2093 = vst.msk [vmem:[#allocation2 + $0x58] sm:$0xf] %vm400_vm0, %v6688_v55 }
 0x344   : >> { %2074 = vst.msk [vmem:[#allocation2 + $0xb0] sm:$0xf] %vm366_vm1, %v2001_v50  ;;  %v4794_v50 = vld [vmem:[#allocation2 + $0xa8] sm:$0xf0] (%p468_p4) }
 0x345   : >> { %2104 = vst.msk [vmem:[#allocation2 + $0xb0] sm:$0xf] %vm400_vm0, %v6585_v32 }
 0x349   : >> { %v2009_v46 = vpop.permute.xlu2 %2008  ;;  %v1975_v54 = vpop.permute.xlu0 %1974 }
 0x34a   : >> { %2078 = vst.msk [vmem:[#allocation2 + $0xd0] sm:$0xf] %vm366_vm1, %v2009_v46  ;;  %v7059_v46 = vor.u32 (%p468_p4), %v5190_v31, %v4728_v22  ;;  %v5187_v22 = vld [vmem:[#allocation2 + $0x14] sm:$0xf] (%p468_p4)  ;;  %v4722_v31 = vld [vmem:[#allocation2 + $0x18] sm:$0xf0] (%p468_p4) }
 0x34b   : >> { %2108 = vst.msk [vmem:[#allocation2 + $0xd0] sm:$0xf] %vm400_vm0, %v6693_v39 }
 0x34c   : >> { %v2007_v27 = vpop.permute.xlu1 %2006  ;;  %2061 = vst.msk [vmem:[#allocation2 + $0x48] sm:$0xf] %vm366_vm1, %v1975_v54  ;;  %v7061_v54 = vor.u32 (%p468_p4), %v5205_v24, %v4794_v50 }
 0x34d   : >> { %2091 = vst.msk [vmem:[#allocation2 + $0x48] sm:$0xf] %vm400_vm0, %v6634_v47 }
 0x34e   : >> { %2077 = vst.msk [vmem:[#allocation2 + $0xc8] sm:$0xf] %vm366_vm1, %v2007_v27  ;;  %v4736_v27 = vld [vmem:[#allocation2 + $0x30] sm:$0xf] (%p468_p4) }
 0x34f   : >> { %2107 = vst.msk [vmem:[#allocation2 + $0xc8] sm:$0xf] %vm400_vm0, %v6647_v8 }
 0x351   : >> { %v2005_v55 = vpop.permute.xlu0 %2004 }
 0x352   : >> { %2076 = vst.msk [vmem:[#allocation2 + $0xc0] sm:$0xf] %vm366_vm1, %v2005_v55  ;;  %v5192_v55 = vld [vmem:[#allocation2 + $0x34] sm:$0xf0] (%p468_p4) }
 0x353   : >> { %2106 = vst.msk [vmem:[#allocation2 + $0xc0] sm:$0xf] %vm400_vm0, %v6639_v48 }
 0x354   : >> { %v2015_v32 = vpop.permute.xlu2 %2014 }
 0x355   : >> { %2081 = vst.msk [vmem:[#allocation2 + $0xe8] sm:$0xf] %vm366_vm1, %v2015_v32  ;;  %v1977_v39 = vpop.permute.xlu1 %1976  ;;  %v5207_v32 = vld [vmem:[#allocation2 + $0xb4] sm:$0xf] (%p468_p4) }
 0x356   : >> { %2111 = vst.msk [vmem:[#allocation2 + $0xe8] sm:$0xf] %vm400_vm0, %v6756_v40 }
 0x357   : >> { %2062 = vst.msk [vmem:[#allocation2 + $0x50] sm:$0xf] %vm366_vm1, %v1977_v39  ;;  %v4802_v39 = vld [vmem:[#allocation2 + $0xb8] sm:$0xf0] (%p468_p4) }
 0x358   : >> { %2092 = vst.msk [vmem:[#allocation2 + $0x50] sm:$0xf] %vm400_vm0, %v6680_v59 }
 0x35c   : >> { %v2011_v47 = vpop.permute.xlu0 %2010 }
 0x35d   : >> { %2079 = vst.msk [vmem:[#allocation2 + $0xd8] sm:$0xf] %vm366_vm1, %v2011_v47  ;;  %v7069_v47 = vor.u32 (%p468_p4), %v5192_v55, %v4736_v27 }
 0x35e   : >> { %2109 = vst.msk [vmem:[#allocation2 + $0xd8] sm:$0xf] %vm400_vm0, %v6701_v14 }
 0x365   : >> { %v1981_v8 = vpop.permute.xlu0 %1980 }
 0x366   : >> { %2064 = vst.msk [vmem:[#allocation2 + $0x60] sm:$0xf] %vm366_vm1, %v1981_v8  ;;  %v7071_v8 = vor.u32 (%p468_p4), %v5207_v32, %v4802_v39  ;;  %v7170_v32 = vor.u32 (%p468_p4), %v5187_v22, %v4722_v31 }
 0x367   : >> { %2094 = vst.msk [vmem:[#allocation2 + $0x60] sm:$0xf] %vm400_vm0, %v6734_v33  ;;  %v5224_v33 = vld [vmem:[%s8376_s1 + $0x16b8] sm:$0xff] (%p468_p4) }
 0x368   : > { %2470 = vmatpush.bf16.msra.mxu0 (%p468_p4), %v5224_v33  ;;  %v5209_v33 = vld [vmem:[#allocation2 + $0xc4] sm:$0xf] (%p468_p4) }
 0x369   : >> { %v1983_v48 = vpop.permute.xlu1 %1982 }
 0x36a   : >> { %2065 = vst.msk [vmem:[#allocation2 + $0x68] sm:$0xf] %vm366_vm1, %v1983_v48  ;;  %v5243_v48 = vld [vmem:[%s8376_s1 + $0x1750] sm:$0xff] (%p468_p4) }
 0x36b   : >> { %2095 = vst.msk [vmem:[#allocation2 + $0x68] sm:$0xf] %vm400_vm0, %v6743_v63  ;;  %v6923_v63 = vld [vmem:[%s8376_s1 + $0x16d8] sm:$0xff] (%p468_p4) }
 0x36c   : > { %5261 = vmatpush.bf16.msra.mxu1 (%p468_p4), %v6923_v63  ;;  %2471 = vmatpush.bf16.msra.mxu0 (%p468_p4), %v5223_v49  ;;  %v5242_v49 = vld [vmem:[%s8376_s1 + $0x1748] sm:$0xff] (%p468_p4) }
 0x370   : > { %5262 = vmatpush.bf16.msra.mxu1 (%p468_p4), %v6940_v44  ;;  %2472 = vmatpush.bf16.msra.mxu0 (%p468_p4), %v5222_v12  ;;  %v4818_v12 = vld [vmem:[#allocation2 + $0xd8] sm:$0xf0] (%p468_p4) }
 0x371   : >> { %v2013_v40 = vpop.permute.xlu1 %2012 }
 0x372   : >> { %2080 = vst.msk [vmem:[#allocation2 + $0xe0] sm:$0xf] %vm366_vm1, %v2013_v40  ;;  %v5249_v40 = vld [vmem:[%s8376_s1 + $0x1780] sm:$0xff] (%p468_p4) }
 0x373   : >> { %2110 = vst.msk [vmem:[#allocation2 + $0xe0] sm:$0xf] %vm400_vm0, %v6748_v13  ;;  %v5236_v13 = vld [vmem:[%s8376_s1 + $0x1718] sm:$0xff] (%p468_p4) }
 0x374   : > { %2745 = vmatpush.bf16.msra.mxu2 (%p468_p4), %v5236_v13  ;;  %5263 = vmatpush.bf16.msra.mxu1 (%p468_p4), %v6958_v36 }
 0x375   : > { %2473 = vmatpush.bf16.msra.mxu0 (%p468_p4), %v5221_v19  ;;  %v4760_v19 = vld [vmem:[#allocation2 + $0x60] sm:$0xf] (%p468_p4) }
 0x378   : > { %2746 = vmatpush.bf16.msra.mxu2 (%p468_p4), %v5235_v51  ;;  %v5196_v51 = vld [vmem:[#allocation2 + $0x54] sm:$0xf0] (%p468_p4) }
 0x379   : > { %2474 = vmatpush.bf16.msra.mxu0 (%p468_p4), %v5220_v17  ;;  %v5215_v17 = vld [vmem:[#allocation2 + $0xf4] sm:$0xf] (%p468_p4) }
 0x37b   : >> { %v2017_v59 = vpop.permute.xlu0 %2016  ;;  %470 = sbr.rel (!%p468_p4) target bundleno = 216 (0xd8), region = 85 }
 0x37c   : >> { %2082 = vst.msk [vmem:[#allocation2 + $0xf0] sm:$0xf] %vm366_vm1, %v2017_v59  ;;  %v2019_v14 = vpop.permute.xlu1 %2018  ;;  %2747 = vmatpush.bf16.msra.mxu2 (%p468_p4), %v5234_v3  ;;  %v4744_v59 = vld [vmem:[#allocation2 + $0x40] sm:$0xf] (%p468_p4) }
 0x37d   : >> { %2112 = vst.msk [vmem:[#allocation2 + $0xf0] sm:$0xf] %vm400_vm0, %v6794_v7  ;;  %v5238_v7 = vld [vmem:[%s8376_s1 + $0x1728] sm:$0xff] (%p468_p4)  ;;  %2475 = vmatpush.bf16.msra.mxu0 (%p468_p4), %v5219_v11 }
 0x37e   : >> { %2083 = vst.msk [vmem:[#allocation2 + $0xf8] sm:$0xf] %vm366_vm1, %v2019_v14  ;;  %5267 = vmatpush.bf16.msra.mxu3 (%p468_p4), %v5238_v7  ;;  %v5194_v14 = vld [vmem:[#allocation2 + $0x44] sm:$0xf0] (%p468_p4) }
 0x37f   : >> { %2113 = vst.msk [vmem:[#allocation2 + $0xf8] sm:$0xf] %vm400_vm0, %v6798_v5  ;;  %v5225_v5 = vld [vmem:[%s8376_s1 + $0x16c0] sm:$0xff] (%p468_p4)  ;;  %v7085_v13 = vor.u32 (%p468_p4), %v5194_v14, %v4744_v59 }
 0x380   : > { %5264 = vmatpush.bf16.msra.mxu1 %v5225_v5  ;;  %2748 = vmatpush.bf16.msra.mxu2 %v5233_v4  ;;  %v4792_v14 = vld [vmem:[#allocation2 + $0xa0] sm:$0xf] }
 0x381   : > { %2476 = vmatpush.bf16.msra.mxu0 %v5218_v62  ;;  %v4776_v62 = vld [vmem:[#allocation2 + $0x80] sm:$0xf] }
 0x382   : > { %5268 = vmatpush.bf16.msra.mxu3 %v5237_v30 }
 0x383   : > { %4893 = vmatmul.msk.bf16.vlgmr.msra.gmra.mxu1 %vm747_vm4, %v6986_v2 }
 0x384   : > { %3020 = vmatpush.bf16.msrb.mxu1 %v5248_v41  ;;  %2749 = vmatpush.bf16.msra.mxu2 %v5232_v60  ;;  %v5200_v41 = vld [vmem:[#allocation2 + $0x74] sm:$0xf0]  ;;  %v4834_v60 = vld [vmem:[#allocation2 + $0xf8] sm:$0xf0] }
 0x385   : > { %4981 = vmatmul.msk.bf16.vlgmr.msra.gmra.mxu3 %vm747_vm4, %v6986_v2  ;;  %2477 = vmatpush.bf16.msra.mxu0 %v5217_v15  ;;  %v7123_v11 = vor.u32 %v5215_v17, %v4834_v60  ;;  %v5185_v15 = vld [vmem:[#allocation2 + $0x4] sm:$0xf]  ;;  %v5191_v17 = vld [vmem:[#allocation2 + $0x34] sm:$0xf]  ;;  %v4738_v60 = vld [vmem:[#allocation2 + $0x38] sm:$0xf0] }
 0x386   : > { %3113 = vmatpush.bf16.msrb.mxu3 %v5252_v6  ;;  %v4768_v6 = vld [vmem:[#allocation2 + $0x70] sm:$0xf] }
 0x387   : > { %8460 = vst [vmem:[#allocation38_spill] sm:$0xff] %v7123_v11 }
 0x388   : > { %3021 = vmatpush.bf16.msrb.mxu1 %v5247_v38  ;;  %2750 = vmatpush.bf16.msra.mxu2 %v5231_v53  ;;  %v7121_v38 = vor.u32 %v5200_v41, %v4768_v6  ;;  %v4800_v6 = vld [vmem:[#allocation2 + $0xb0] sm:$0xf]  ;;  %v5208_v41 = vld [vmem:[#allocation2 + $0xb4] sm:$0xf0] }
 0x389   : > { %2563 = vmatpush.bf16.msrb.mxu0 %v6923_v63  ;;  %v4810_v63 = vld [vmem:[#allocation2 + $0xc8] sm:$0xf0] }
 0x38a   : > { %3114 = vmatpush.bf16.msrb.mxu3 %v5251_v35  ;;  %2478 = vmatmul.bf16.vlgmr.msra.gmra.mxu0 %v7025_v20 }
 0x38c   : > { %3022 = vmatpush.bf16.msrb.mxu1 %v5246_v28  ;;  %2751 = vmatpush.bf16.msra.mxu2 %v5230_v37  ;;  %v5202_v37 = vld [vmem:[#allocation2 + $0x84] sm:$0xf0] }
 0x38d   : > { %2564 = vmatpush.bf16.msrb.mxu0 %v6940_v44  ;;  %v4752_v44 = vld [vmem:[#allocation2 + $0x50] sm:$0xf]  ;;  %v7139_v52 = vor.u32 %v5202_v37, %v4776_v62  ;;  %v7214_v37 = vor.u32 %v5208_v41, %v4800_v6  ;;  %v4746_v6 = vld [vmem:[#allocation2 + $0x48] sm:$0xf0] }
 0x38e   : > { %3115 = vmatpush.bf16.msrb.mxu3 %v5250_v25  ;;  %v4784_v25 = vld [vmem:[#allocation2 + $0x90] sm:$0xf] }
 0x390   : > { %2752 = vmatpush.bf16.msra.mxu2 %v5229_v16  ;;  %3023 = vmatpush.bf16.msrb.mxu1 %v5245_v45  ;;  %v7145_v45 = vor.u32 %v5185_v15, %v4714_v21 }
 0x391   : > { %2565 = vmatpush.bf16.msrb.mxu0 %v6958_v36  ;;  %v7098_v36 = vor.u32 %v5196_v51, %v4752_v44 }
 0x392   : > { %3116 = vmatpush.bf16.msrb.mxu3 %v5249_v40 }
 0x393   : > { %4894 = vmatmul.msk.bf16.gmra.mxu1 %vm747_vm4, %v7027_v18  ;;  %2753 = vmatmul.bf16.vlgmr.msra.gmra.mxu2 %v7025_v20 }
 0x394   : > { %2838 = vmatpush.bf16.msrb.mxu2 %v6931_v9  ;;  %3024 = vmatpush.bf16.msrb.mxu1 %v5244_v58  ;;  %v7087_v9 = vor.u32 %v5209_v33, %v4810_v63  ;;  %v5204_v58 = vld [vmem:[#allocation2 + $0x94] sm:$0xf0]  ;;  %v5206_v33 = vld [vmem:[#allocation2 + $0xa4] sm:$0xf0]  ;;  %v5189_v63 = vld [vmem:[#allocation2 + $0x24] sm:$0xf] }
 0x395   : > { %4982 = vmatmul.msk.bf16.gmra.mxu3 %vm747_vm4, %v7027_v18  ;;  %2566 = vmatpush.bf16.msrb.mxu0 %v5225_v5  ;;  %v5198_v5 = vld [vmem:[#allocation2 + $0x64] sm:$0xf0]  ;;  %v7164_v50 = vor.u32 %v5204_v58, %v4784_v25  ;;  %v7189_v51 = vor.u32 %v5206_v33, %v4792_v14  ;;  %v7220_v25 = vor.u32 %v5191_v17, %v4738_v60  ;;  %v4808_v33 = vld [vmem:[#allocation2 + $0xc0] sm:$0xf] }
 0x396   : > { %v7111_v4 = vor.u32 %v5198_v5, %v4760_v19 }
 0x398   : > { %2839 = vmatpush.bf16.msrb.mxu2 %v6949_v29  ;;  %3025 = vmatpush.bf16.msrb.mxu1 %v5243_v48  ;;  %v5211_v29 = vld [vmem:[#allocation2 + $0xd4] sm:$0xf] }
 0x399   : > { %v7100_v3 = vor.u32 %v5211_v29, %v4818_v12 }
 0x39a   : > { %2483 = vmatmul.bf16.gmra.mxu0 %v7043_v23 }
 0x39c   : > { %2840 = vmatpush.bf16.msrb.mxu2 %v5238_v7  ;;  %3026 = vmatpush.bf16.msrb.mxu1 %v5242_v49  ;;  %v5241_v7 = vld [vmem:[%s8376_s1 + $0x1740] sm:$0xff]  ;;  %v4730_v49 = vld [vmem:[#allocation2 + $0x28] sm:$0xf0] }
 0x3a0   : > { %2841 = vmatpush.bf16.msrb.mxu2 %v5237_v30  ;;  %3027 = vmatpush.bf16.msrb.mxu1 %v5241_v7  ;;  %v7113_v30 = vor.u32 %v5213_v56, %v4826_v26  ;;  %v7195_v7 = vor.u32 %v5189_v63, %v4730_v49  ;;  %v5210_v63 = vld [vmem:[#allocation2 + $0xc4] sm:$0xf0]  ;;  %v5193_v49 = vld [vmem:[#allocation2 + $0x44] sm:$0xf] }
 0x3a1   : > { %v7239_v17 = vor.u32 %v5210_v63, %v4808_v33 }
 0x3a3   : > { %4895 = vmatmul.msk.bf16.gmra.mxu1 %vm747_vm4, %v7045_v61  ;;  %2758 = vmatmul.bf16.gmra.mxu2 %v7043_v23 }
 0x3a5   : > { %4983 = vmatmul.msk.bf16.gmra.mxu3 %vm747_vm4, %v7045_v61 }
 0x3aa   : > { %2488 = vmatmul.bf16.gmra.mxu0 %v7059_v46 }
 0x3b3   : > { %4896 = vmatmul.msk.bf16.gmra.mxu1 %vm747_vm4, %v7061_v54  ;;  %2763 = vmatmul.bf16.gmra.mxu2 %v7059_v46 }
 0x3b5   : > { %4984 = vmatmul.msk.bf16.gmra.mxu3 %vm747_vm4, %v7061_v54 }
 0x3ba   : > { %2493 = vmatmul.bf16.gmra.mxu0 %v7069_v47 }
 0x3c3   : > { %4897 = vmatmul.msk.bf16.gmra.mxu1 %vm747_vm4, %v7071_v8  ;;  %2768 = vmatmul.bf16.gmra.mxu2 %v7069_v47 }
 0x3c5   : > { %4985 = vmatmul.msk.bf16.gmra.mxu3 %vm747_vm4, %v7071_v8 }
 0x3ca   : > { %2498 = vmatmul.bf16.gmra.mxu0 %v7085_v13 }
 0x3d3   : > { %4898 = vmatmul.msk.bf16.gmra.mxu1 %vm747_vm4, %v7087_v9  ;;  %2773 = vmatmul.bf16.gmra.mxu2 %v7085_v13 }
 0x3d5   : > { %4986 = vmatmul.msk.bf16.gmra.mxu3 %vm747_vm4, %v7087_v9 }
 0x3da   : > { %2503 = vmatmul.bf16.gmra.mxu0 %v7098_v36 }
 0x3e3   : > { %4899 = vmatmul.msk.bf16.gmra.mxu1 %vm747_vm4, %v7100_v3  ;;  %2778 = vmatmul.bf16.gmra.mxu2 %v7098_v36 }
 0x3e5   : > { %4987 = vmatmul.msk.bf16.gmra.mxu3 %vm747_vm4, %v7100_v3 }
 0x3ea   : > { %2508 = vmatmul.bf16.gmra.mxu0 %v7111_v4 }
 0x3f3   : > { %4900 = vmatmul.msk.bf16.gmra.mxu1 %vm747_vm4, %v7113_v30  ;;  %2783 = vmatmul.bf16.gmra.mxu2 %v7111_v4 }
 0x3f5   : > { %4988 = vmatmul.msk.bf16.gmra.mxu3 %vm747_vm4, %v7113_v30 }
 0x3fa   : > { %2513 = vmatmul.bf16.gmra.mxu0 %v7121_v38 }
 0x400   : > { %v7125_v35 = vpop.f32.mrf.mxu1 }
 0x403   : > { %4901 = vmatmul.msk.bf16.gmra.mxu1 %vm747_vm4, %v7123_v11  ;;  %2788 = vmatmul.bf16.gmra.mxu2 %v7121_v38 }
 0x405   : > { %4989 = vmatmul.msk.bf16.gmra.mxu3 %vm747_vm4, %v7123_v11 }
 0x407   : > { %v7141_v43 = vpop.f32.mrf.mxu0 }
 0x408   : > { %v7133_v53 = vpop.f32.mrf.mxu3  ;;  %v7135_v28 = vpop.f32.mrf.mxu1  ;;  %8461 = vst [vmem:[#allocation39_spill] sm:$0xff] %v7141_v43 }
 0x40a   : > { %2518 = vmatmul.bf16.gmra.mxu0 %v7139_v52 }
 0x40f   : > { %v7156_v0 = vpop.f32.mrf.mxu0 }
 0x410   : > { %v7137_v42 = vpop.f32.mrf.mxu3  ;;  %v7143_v16 = vpop.f32.mrf.mxu1  ;;  %8463 = vst [vmem:[#allocation41_spill] sm:$0xff] %v7156_v0 }
 0x413   : > { %3028 = vmatmul.bf16.vlgmr.msrb.gmra.mxu1 %v7025_v20  ;;  %2793 = vmatmul.bf16.gmra.mxu2 %v7139_v52 }
 0x415   : > { %5062 = vmatmul.msk.bf16.vlgmr.msrb.gmra.mxu3 %vm747_vm4, %v7145_v45 }
 0x416   : > { %v7152_v34 = vpop.f32.mrf.mxu2 }
 0x417   : > { %8462 = vst [vmem:[#allocation40_spill] sm:$0xff] %v7152_v34  ;;  %v7166_v27 = vpop.f32.mrf.mxu0 }
 0x418   : > { %v7154_v10 = vpop.f32.mrf.mxu3  ;;  %v7158_v1 = vpop.f32.mrf.mxu1  ;;  %8465 = vst [vmem:[#allocation43_spill] sm:$0xff] %v7166_v27 }
 0x41a   : > { %2523 = vmatmul.bf16.gmra.mxu0 %v7164_v50 }
 0x41e   : > { %v7160_v24 = vpop.f32.mrf.mxu2 }
 0x41f   : > { %8464 = vst [vmem:[#allocation42_spill] sm:$0xff] %v7160_v24  ;;  %v7181_v40 = vpop.f32.mrf.mxu0 }
 0x420   : > { %v7162_v20 = vpop.f32.mrf.mxu3  ;;  %v7168_v55 = vpop.f32.mrf.mxu1  ;;  %8467 = vst [vmem:[#allocation45_spill] sm:$0xff] %v7181_v40 }
 0x423   : > { %3033 = vmatmul.bf16.gmra.mxu1 %v7043_v23  ;;  %2798 = vmatmul.bf16.gmra.mxu2 %v7164_v50 }
 0x425   : > { %5063 = vmatmul.msk.bf16.gmra.mxu3 %vm747_vm4, %v7170_v32 }
 0x426   : > { %v7177_v39 = vpop.f32.mrf.mxu2 }
 0x427   : > { %8466 = vst [vmem:[#allocation44_spill] sm:$0xff] %v7177_v39  ;;  %v7191_v29 = vpop.f32.mrf.mxu0 }
 0x428   : > { %v7179_v48 = vpop.f32.mrf.mxu3  ;;  %v7183_v59 = vpop.f32.mrf.mxu1  ;;  %8469 = vst [vmem:[#allocation47_spill] sm:$0xff] %v7191_v29 }
 0x42a   : > { %2528 = vmatmul.bf16.gmra.mxu0 %v7189_v51 }
 0x42e   : > { %v7185_v44 = vpop.f32.mrf.mxu2 }
 0x42f   : > { %8468 = vst [vmem:[#allocation46_spill] sm:$0xff] %v7185_v44  ;;  %v7206_v56 = vpop.f32.mrf.mxu0  ;;  %v4762_v44 = vld [vmem:[#allocation2 + $0x68] sm:$0xf0] }
 0x430   : > { %v7187_v23 = vpop.f32.mrf.mxu3  ;;  %v7193_v12 = vpop.f32.mrf.mxu1  ;;  %8471 = vst [vmem:[#allocation49_spill] sm:$0xff] %v7206_v56 }
 0x433   : > { %3038 = vmatmul.bf16.gmra.mxu1 %v7059_v46  ;;  %2803 = vmatmul.bf16.gmra.mxu2 %v7189_v51 }
 0x435   : > { %5064 = vmatmul.msk.bf16.gmra.mxu3 %vm747_vm4, %v7195_v7 }
 0x436   : > { %v7202_v19 = vpop.f32.mrf.mxu2 }
 0x437   : > { %8470 = vst [vmem:[#allocation48_spill] sm:$0xff] %v7202_v19  ;;  %v7216_v15 = vpop.f32.mrf.mxu0  ;;  %v4754_v19 = vld [vmem:[#allocation2 + $0x58] sm:$0xf0] }
 0x438   : > { %v7204_v5 = vpop.f32.mrf.mxu3  ;;  %v7208_v26 = vpop.f32.mrf.mxu1  ;;  %8473 = vst [vmem:[#allocation51_spill] sm:$0xff] %v7216_v15 }
 0x43a   : > { %2533 = vmatmul.bf16.gmra.mxu0 %v7214_v37 }
 0x43e   : > { %v7210_v62 = vpop.f32.mrf.mxu2 }
 0x43f   : > { %8472 = vst [vmem:[#allocation50_spill] sm:$0xff] %v7210_v62  ;;  %v7231_v31 = vpop.f32.mrf.mxu0 }
 0x440   : > { %v7212_v46 = vpop.f32.mrf.mxu3  ;;  %v7218_v21 = vpop.f32.mrf.mxu1  ;;  %8475 = vst [vmem:[#allocation53_spill] sm:$0xff] %v7231_v31 }
 0x443   : > { %3043 = vmatmul.bf16.gmra.mxu1 %v7069_v47  ;;  %2808 = vmatmul.bf16.gmra.mxu2 %v7214_v37 }
 0x445   : > { %5065 = vmatmul.msk.bf16.gmra.mxu3 %vm747_vm4, %v7220_v25 }
 0x446   : > { %v7227_v58 = vpop.f32.mrf.mxu2 }
 0x447   : > { %8474 = vst [vmem:[#allocation52_spill] sm:$0xff] %v7227_v58  ;;  %v7241_v60 = vpop.f32.mrf.mxu0  ;;  %v7245_v58 = vor.u32 %v5193_v49, %v4746_v6  ;;  %v5212_v49 = vld [vmem:[#allocation2 + $0xd4] sm:$0xf0]  ;;  %v5195_v6 = vld [vmem:[#allocation2 + $0x54] sm:$0xf] }
 0x448   : > { %v7229_v22 = vpop.f32.mrf.mxu3  ;;  %v7233_v14 = vpop.f32.mrf.mxu1  ;;  %8477 = vst [vmem:[#allocation55_spill] sm:$0xff] %v7241_v60  ;;  %v4816_v60 = vld [vmem:[#allocation2 + $0xd0] sm:$0xf] }
 0x449   : > { %v7264_v56 = vor.u32 %v5212_v49, %v4816_v60 }
 0x44a   : > { %2538 = vmatmul.bf16.gmra.mxu0 %v7239_v17 }
 0x44e   : > { %v7235_v41 = vpop.f32.mrf.mxu2 }
 0x44f   : > { %8476 = vst [vmem:[#allocation54_spill] sm:$0xff] %v7235_v41  ;;  %v7256_v33 = vpop.f32.mrf.mxu0 }
 0x450   : > { %v7237_v47 = vpop.f32.mrf.mxu3  ;;  %v7243_v15 = vpop.f32.mrf.mxu1  ;;  %8479 = vst [vmem:[#allocation57_spill] sm:$0xff] %v7256_v33 }
 0x453   : > { %3048 = vmatmul.bf16.gmra.mxu1 %v7085_v13  ;;  %2813 = vmatmul.bf16.gmra.mxu2 %v7239_v17 }
 0x455   : > { %5066 = vmatmul.msk.bf16.gmra.mxu3 %vm747_vm4, %v7245_v58 }
 0x456   : > { %v7252_v41 = vpop.f32.mrf.mxu2 }
 0x457   : > { %8478 = vst [vmem:[#allocation56_spill] sm:$0xff] %v7252_v41  ;;  %v7266_v29 = vpop.f32.mrf.mxu0  ;;  %v7270_v41 = vor.u32 %v5195_v6, %v4754_v19  ;;  %v5214_v19 = vld [vmem:[#allocation2 + $0xe4] sm:$0xf0]  ;;  %v5197_v6 = vld [vmem:[#allocation2 + $0x64] sm:$0xf] }
 0x458   : > { %v7254_v31 = vpop.f32.mrf.mxu3  ;;  %v7258_v63 = vpop.f32.mrf.mxu1  ;;  %8481 = vst [vmem:[#allocation59_spill] sm:$0xff] %v7266_v29  ;;  %v4824_v29 = vld [vmem:[#allocation2 + $0xe0] sm:$0xf] }
 0x459   : > { %v7289_v27 = vor.u32 %v5214_v19, %v4824_v29 }
 0x45a   : > { %2543 = vmatmul.bf16.gmra.mxu0 %v7264_v56 }
 0x45e   : > { %v7260_v62 = vpop.f32.mrf.mxu2 }
 0x45f   : > { %8480 = vst [vmem:[#allocation58_spill] sm:$0xff] %v7260_v62  ;;  %v7281_v60 = vpop.f32.mrf.mxu0 }
 0x460   : > { %v7262_v13 = vpop.f32.mrf.mxu3  ;;  %v7268_v39 = vpop.f32.mrf.mxu1  ;;  %8483 = vst [vmem:[#allocation61_spill] sm:$0xff] %v7281_v60 }
 0x463   : > { %3053 = vmatmul.bf16.gmra.mxu1 %v7098_v36  ;;  %2818 = vmatmul.bf16.gmra.mxu2 %v7264_v56 }
 0x465   : > { %5067 = vmatmul.msk.bf16.gmra.mxu3 %vm747_vm4, %v7270_v41 }
 0x466   : > { %v7277_v62 = vpop.f32.mrf.mxu2 }
 0x467   : > { %8482 = vst [vmem:[#allocation60_spill] sm:$0xff] %v7277_v62  ;;  %v7291_v24 = vpop.f32.mrf.mxu0  ;;  %v7295_v62 = vor.u32 %v5197_v6, %v4762_v44  ;;  %v5216_v44 = vld [vmem:[#allocation2 + $0xf4] sm:$0xf0] }
 0x468   : > { %v7279_v33 = vpop.f32.mrf.mxu3  ;;  %v7283_v49 = vpop.f32.mrf.mxu1  ;;  %8485 = vst [vmem:[#allocation63_spill] sm:$0xff] %v7291_v24  ;;  %v4832_v24 = vld [vmem:[#allocation2 + $0xf0] sm:$0xf] }
 0x46a   : > { %2548 = vmatmul.bf16.gmra.mxu0 %v7289_v27 }
 0x46e   : > { %v7285_v40 = vpop.f32.mrf.mxu2 }
 0x46f   : > { %8484 = vst [vmem:[#allocation62_spill] sm:$0xff] %v7285_v40  ;;  %v7306_v29 = vpop.f32.mrf.mxu0 }
 0x470   : > { %v7287_v36 = vpop.f32.mrf.mxu3  ;;  %v7293_v34 = vpop.f32.mrf.mxu1  ;;  %8488 = vst [vmem:[#allocation66_spill] sm:$0xff] %v7306_v29 }
 0x473   : > { %3058 = vmatmul.bf16.gmra.mxu1 %v7111_v4  ;;  %2823 = vmatmul.bf16.gmra.mxu2 %v7289_v27  ;;  %v7314_v4 = vor.u32 %v5216_v44, %v4832_v24 }
 0x475   : > { %5068 = vmatmul.msk.bf16.gmra.mxu3 %vm747_vm4, %v7295_v62  ;;  %8492 = vst [vmem:[#allocation70_spill] sm:$0xff] %v7314_v4 }
 0x476   : > { %v7302_v40 = vpop.f32.mrf.mxu2 }
 0x477   : > { %8486 = vst [vmem:[#allocation64_spill] sm:$0xff] %v7302_v40  ;;  %v2514_v43 = vpop.f32.mrf.mxu0 }
 0x478   : > { %v7304_v60 = vpop.f32.mrf.mxu3  ;;  %v7308_v19 = vpop.f32.mrf.mxu1  ;;  %v2604_v40 = vadd.f32 %v7125_v35, %v2514_v43 }
 0x479   : > { %8487 = vst [vmem:[#allocation65_spill] sm:$0xff] %v7304_v60 }
 0x47a   : > { %8489 = vst [vmem:[#allocation67_spill] sm:$0xff] %v7308_v19  ;;  %2553 = vmatmul.bf16.gmra.mxu0 %v7314_v4 }
 0x47e   : > { %v7310_v6 = vpop.f32.mrf.mxu2 }
 0x47f   : > { %8490 = vst [vmem:[#allocation68_spill] sm:$0xff] %v7310_v6 }
 0x480   : > { %v7312_v0 = vpop.f32.mrf.mxu3  ;;  %v7316_v11 = vpop.f32.mrf.mxu1 }
 0x481   : > { %8491 = vst [vmem:[#allocation69_spill] sm:$0xff] %v7312_v0  ;;  %v2516_v0 = vpop.f32.mrf.mxu0 }
 0x482   : > { %8493 = vst [vmem:[#allocation71_spill] sm:$0xff] %v7316_v11  ;;  %v2606_v44 = vadd.f32 %v7135_v28, %v2516_v0  ;;  %v3205_v11 = vrot.slane %v2604_v40, 7 }
 0x483   : > { %3063 = vmatmul.bf16.gmra.mxu1 %v7121_v38  ;;  %2828 = vmatmul.bf16.gmra.mxu2 %v7314_v4 }
 0x484   : > { %v3221_v60 = vrot.slane %v2606_v44, 7 }
 0x485   : > { %5069 = vmatmul.msk.bf16.gmra.mxu3 %vm747_vm4, %v6986_v2 }
 0x486   : > { %v2789_v29 = vpop.f32.mrf.mxu2  ;;  %v3238_v38 = vsel %vm1560_vm5, %v3205_v11, %v3221_v60  ;;  %v3254_v2 = vsel %vm1560_vm5, %v3221_v60, %v3205_v11 }
 0x487   : > { %v2879_v19 = vadd.f32 %v7133_v53, %v2789_v29  ;;  %v3277_v35 = vsel %vm202_vm2, %v3254_v2, 0.0 }
 0x488   : > { %v7324_v6 = vpop.f32.mrf.mxu3  ;;  %v7326_v24 = vpop.f32.mrf.mxu1 }
 0x489   : > { %8494 = vst [vmem:[#allocation72_spill] sm:$0xff] %v7324_v6  ;;  %v7336_v43 = vadd.f32 %v3277_v35, %v2879_v19  ;;  %v2519_v0 = vpop.f32.mrf.mxu0 }
 0x48a   : > { %4886 = vmatmul.msk.bf16.vlgmr.msrb.gmra.mxu0 %vm747_vm4, %v7145_v45  ;;  %v2609_v11 = vadd.f32 %v7143_v16, %v2519_v0 }
 0x48e   : > { %v2791_v6 = vpop.f32.mrf.mxu2 }
 0x48f   : > { %v2881_v28 = vadd.f32 %v7137_v42, %v2791_v6 }
 0x490   : > { %v7338_v4 = vpop.f32.mrf.mxu3  ;;  %v3029_v40 = vpop.f32.mrf.mxu1 }
 0x491   : > { %v7341_v44 = vadd.f32 %v3238_v38, %v2881_v28  ;;  %v2521_v29 = vpop.f32.mrf.mxu0  ;;  %v3206_v38 = vrot.slane %v2609_v11, 7 }
 0x492   : > { %v2611_v6 = vadd.f32 %v7158_v1, %v2521_v29 }
 0x493   : > { %3068 = vmatmul.bf16.gmra.mxu1 %v7139_v52  ;;  %4974 = vmatmul.msk.bf16.vlgmr.msrb.gmra.mxu2 %vm747_vm4, %v7145_v45 }
 0x494   : > { %v3222_v2 = vrot.slane %v2611_v6, 7 }
 0x495   : > { %5070 = vmatmul.msk.bf16.gmra.mxu3 %vm747_vm4, %v7027_v18 }
 0x496   : > { %v2794_v53 = vpop.f32.mrf.mxu2  ;;  %v3239_v52 = vsel %vm1560_vm5, %v3206_v38, %v3222_v2  ;;  %v3255_v45 = vsel %vm1560_vm5, %v3222_v2, %v3206_v38 }
 0x497   : > { %v2884_v35 = vadd.f32 %v7154_v10, %v2794_v53  ;;  %v3279_v18 = vsel %vm202_vm2, %v3255_v45, 0.0 }
 0x498   : > { %v3118_v60 = vpop.f32.mrf.mxu3  ;;  %v3031_v19 = vpop.f32.mrf.mxu1 }
 0x499   : > { %v3119_v42 = vadd.f32 %v3118_v60, %v3029_v40  ;;  %v7359_v16 = vadd.f32 %v3279_v18, %v2884_v35  ;;  %v2524_v11 = vpop.f32.mrf.mxu0 }
 0x49a   : > { %4887 = vmatmul.msk.bf16.gmra.mxu0 %vm747_vm4, %v7170_v32 }
 0x49b   : > { %v3295_v29 = vrot.slane %v3119_v42, 1 }
 0x49e   : > { %v2796_v28 = vpop.f32.mrf.mxu2 }
 0x49f   : > { %v2886_v40 = vadd.f32 %v7162_v20, %v2796_v28  ;;  %v2614_v20 = vadd.f32 %v7168_v55, %v2524_v11 }
 0x4a0   : > { %v3120_v0 = vpop.f32.mrf.mxu3  ;;  %v3034_v60 = vpop.f32.mrf.mxu1 }
 0x4a1   : > { %v3121_v1 = vadd.f32 %v3120_v0, %v3031_v19  ;;  %v7362_v10 = vadd.f32 %v3239_v52, %v2886_v40  ;;  %v3207_v45 = vrot.slane %v2614_v20, 7 }
 0x4a3   : > { %v3311_v53 = vrot.slane %v3121_v1, 1  ;;  %3073 = vmatmul.bf16.gmra.mxu1 %v7164_v50  ;;  %4975 = vmatmul.msk.bf16.gmra.mxu2 %vm747_vm4, %v7170_v32  ;;  %v2526_v50 = vpop.f32.mrf.mxu0 }
 0x4a4   : > { %v2616_v52 = vadd.f32 %v7183_v59, %v2526_v50 }
 0x4a5   : > { %v7369_v6 = vsel %vm8388_vm6, %v3295_v29, %v3311_v53  ;;  %v7373_v38 = vsel %vm8388_vm6, %v3311_v53, %v3295_v29  ;;  %5071 = vmatmul.msk.bf16.gmra.mxu3 %vm747_vm4, %v7045_v61 }
 0x4a6   : > { %v2799_v42 = vpop.f32.mrf.mxu2  ;;  %v3223_v18 = vrot.slane %v2616_v52, 7 }
 0x4a7   : > { %v2889_v28 = vadd.f32 %v7179_v48, %v2799_v42 }
 0x4a8   : > { %v3123_v19 = vpop.f32.mrf.mxu3  ;;  %v3036_v35 = vpop.f32.mrf.mxu1  ;;  %v3240_v0 = vsel %vm1560_vm5, %v3207_v45, %v3223_v18  ;;  %v3256_v32 = vsel %vm1560_vm5, %v3223_v18, %v3207_v45 }
 0x4a9   : > { %v3124_v2 = vadd.f32 %v3123_v19, %v3034_v60  ;;  %v3281_v61 = vsel %vm202_vm2, %v3256_v32, 0.0 }
 0x4aa   : > { %v7388_v55 = vadd.f32 %v3281_v61, %v2889_v28  ;;  %4888 = vmatmul.msk.bf16.gmra.mxu0 %vm747_vm4, %v7195_v7 }
 0x4ab   : > { %v2529_v60 = vpop.f32.mrf.mxu0  ;;  %v3296_v53 = vrot.slane %v3124_v2, 1 }
 0x4ae   : > { %v2801_v40 = vpop.f32.mrf.mxu2 }
 0x4af   : > { %v2891_v11 = vadd.f32 %v7187_v23, %v2801_v40  ;;  %v2619_v23 = vadd.f32 %v7193_v12, %v2529_v60 }
 0x4b0   : > { %v3125_v1 = vpop.f32.mrf.mxu3  ;;  %v3039_v29 = vpop.f32.mrf.mxu1 }
 0x4b1   : > { %v3126_v59 = vadd.f32 %v3125_v1, %v3036_v35  ;;  %v7391_v48 = vadd.f32 %v3240_v0, %v2891_v11  ;;  %v3208_v18 = vrot.slane %v2619_v23, 7 }
 0x4b3   : > { %v3312_v20 = vrot.slane %v3126_v59, 1  ;;  %3078 = vmatmul.bf16.gmra.mxu1 %v7189_v51  ;;  %4976 = vmatmul.msk.bf16.gmra.mxu2 %vm747_vm4, %v7195_v7  ;;  %v2531_v51 = vpop.f32.mrf.mxu0 }
 0x4b4   : > { %v2621_v45 = vadd.f32 %v7208_v26, %v2531_v51 }
 0x4b5   : > { %v7398_v42 = vsel %vm8388_vm6, %v3296_v53, %v3312_v20  ;;  %v7402_v19 = vsel %vm8388_vm6, %v3312_v20, %v3296_v53  ;;  %5072 = vmatmul.msk.bf16.gmra.mxu3 %vm747_vm4, %v7061_v54 }
 0x4b6   : > { %v2804_v2 = vpop.f32.mrf.mxu2  ;;  %v3224_v28 = vrot.slane %v2621_v45, 7 }
 0x4b7   : > { %v2894_v0 = vadd.f32 %v7204_v5, %v2804_v2 }
 0x4b8   : > { %v3128_v50 = vpop.f32.mrf.mxu3  ;;  %v3041_v52 = vpop.f32.mrf.mxu1  ;;  %v3241_v32 = vsel %vm1560_vm5, %v3208_v18, %v3224_v28  ;;  %v3257_v7 = vsel %vm1560_vm5, %v3224_v28, %v3208_v18 }
 0x4b9   : > { %v3129_v35 = vadd.f32 %v3128_v50, %v3039_v29  ;;  %v3283_v54 = vsel %vm202_vm2, %v3257_v7, 0.0 }
 0x4ba   : > { %v7417_v12 = vadd.f32 %v3283_v54, %v2894_v0  ;;  %4889 = vmatmul.msk.bf16.gmra.mxu0 %vm747_vm4, %v7220_v25 }
 0x4bb   : > { %v2534_v11 = vpop.f32.mrf.mxu0  ;;  %v3297_v60 = vrot.slane %v3129_v35, 1 }
 0x4be   : > { %v2806_v61 = vpop.f32.mrf.mxu2 }
 0x4bf   : > { %v2896_v1 = vadd.f32 %v7212_v46, %v2806_v61  ;;  %v2624_v46 = vadd.f32 %v7218_v21, %v2534_v11 }
 0x4c0   : > { %v3130_v40 = vpop.f32.mrf.mxu3  ;;  %v3044_v59 = vpop.f32.mrf.mxu1 }
 0x4c1   : > { %v3131_v26 = vadd.f32 %v3130_v40, %v3041_v52  ;;  %v7420_v5 = vadd.f32 %v3241_v32, %v2896_v1  ;;  %v3209_v52 = vrot.slane %v2624_v46, 7 }
 0x4c3   : > { %v3313_v29 = vrot.slane %v3131_v26, 1  ;;  %3083 = vmatmul.bf16.gmra.mxu1 %v7214_v37  ;;  %4977 = vmatmul.msk.bf16.gmra.mxu2 %vm747_vm4, %v7220_v25  ;;  %v2536_v37 = vpop.f32.mrf.mxu0 }
 0x4c4   : > { %v2626_v51 = vadd.f32 %v7233_v14, %v2536_v37 }
 0x4c5   : > { %v7427_v53 = vsel %vm8388_vm6, %v3297_v60, %v3313_v29  ;;  %v7431_v20 = vsel %vm8388_vm6, %v3313_v29, %v3297_v60  ;;  %5073 = vmatmul.msk.bf16.gmra.mxu3 %vm747_vm4, %v7071_v8 }
 0x4c6   : > { %v2809_v23 = vpop.f32.mrf.mxu2  ;;  %v3225_v45 = vrot.slane %v2626_v51, 7 }
 0x4c7   : > { %v2899_v18 = vadd.f32 %v7229_v22, %v2809_v23 }
 0x4c8   : > { %v3133_v2 = vpop.f32.mrf.mxu3  ;;  %v3046_v35 = vpop.f32.mrf.mxu1  ;;  %v3242_v28 = vsel %vm1560_vm5, %v3209_v52, %v3225_v45  ;;  %v3258_v25 = vsel %vm1560_vm5, %v3225_v45, %v3209_v52 }
 0x4c9   : > { %v3134_v50 = vadd.f32 %v3133_v2, %v3044_v59  ;;  %v3285_v8 = vsel %vm202_vm2, %v3258_v25, 0.0 }
 0x4ca   : > { %v7446_v21 = vadd.f32 %v3285_v8, %v2899_v18  ;;  %4890 = vmatmul.msk.bf16.gmra.mxu0 %vm747_vm4, %v7245_v58 }
 0x4cb   : > { %v2539_v54 = vpop.f32.mrf.mxu0  ;;  %v3298_v40 = vrot.slane %v3134_v50, 1 }
 0x4ce   : > { %v2811_v0 = vpop.f32.mrf.mxu2 }
 0x4cf   : > { %v2901_v7 = vadd.f32 %v7237_v47, %v2811_v0  ;;  %v2629_v47 = vadd.f32 %v7243_v15, %v2539_v54 }
 0x4d0   : > { %v3135_v32 = vpop.f32.mrf.mxu3  ;;  %v3049_v61 = vpop.f32.mrf.mxu1 }
 0x4d1   : > { %v3136_v14 = vadd.f32 %v3135_v32, %v3046_v35  ;;  %v7449_v22 = vadd.f32 %v3242_v28, %v2901_v7  ;;  %v3210_v2 = vrot.slane %v2629_v47, 7 }
 0x4d3   : > { %v3314_v1 = vrot.slane %v3136_v14, 1  ;;  %3088 = vmatmul.bf16.gmra.mxu1 %v7239_v17  ;;  %4978 = vmatmul.msk.bf16.gmra.mxu2 %vm747_vm4, %v7245_v58  ;;  %v2541_v17 = vpop.f32.mrf.mxu0 }
 0x4d4   : > { %v2631_v23 = vadd.f32 %v7258_v63, %v2541_v17 }
 0x4d5   : > { %v7456_v26 = vsel %vm8388_vm6, %v3298_v40, %v3314_v1  ;;  %v7460_v11 = vsel %vm8388_vm6, %v3314_v1, %v3298_v40  ;;  %5074 = vmatmul.msk.bf16.gmra.mxu3 %vm747_vm4, %v7087_v9 }
 0x4d6   : > { %v2814_v59 = vpop.f32.mrf.mxu2  ;;  %v3226_v50 = vrot.slane %v2631_v23, 7 }
 0x4d7   : > { %v2904_v37 = vadd.f32 %v7254_v31, %v2814_v59 }
 0x4d8   : > { %v3138_v60 = vpop.f32.mrf.mxu3  ;;  %v3051_v46 = vpop.f32.mrf.mxu1  ;;  %v3243_v35 = vsel %vm1560_vm5, %v3210_v2, %v3226_v50  ;;  %v3259_v58 = vsel %vm1560_vm5, %v3226_v50, %v3210_v2 }
 0x4d9   : > { %v3139_v29 = vadd.f32 %v3138_v60, %v3049_v61  ;;  %v3287_v9 = vsel %vm202_vm2, %v3259_v58, 0.0 }
 0x4da   : > { %v7475_v15 = vadd.f32 %v3287_v9, %v2904_v37  ;;  %4891 = vmatmul.msk.bf16.gmra.mxu0 %vm747_vm4, %v7270_v41 }
 0x4db   : > { %v2544_v18 = vpop.f32.mrf.mxu0  ;;  %v3299_v25 = vrot.slane %v3139_v29, 1 }
 0x4de   : > { %v2816_v51 = vpop.f32.mrf.mxu2 }
 0x4df   : > { %v2906_v45 = vadd.f32 %v7262_v13, %v2816_v51  ;;  %v2634_v13 = vadd.f32 %v7268_v39, %v2544_v18 }
 0x4e0   : > { %v3140_v52 = vpop.f32.mrf.mxu3  ;;  %v3054_v28 = vpop.f32.mrf.mxu1 }
 0x4e1   : > { %v3141_v63 = vadd.f32 %v3140_v52, %v3051_v46  ;;  %v7478_v31 = vadd.f32 %v3243_v35, %v2906_v45  ;;  %v3211_v1 = vrot.slane %v2634_v13, 7 }
 0x4e3   : > { %v3315_v8 = vrot.slane %v3141_v63, 1  ;;  %3093 = vmatmul.bf16.gmra.mxu1 %v7264_v56  ;;  %4979 = vmatmul.msk.bf16.gmra.mxu2 %vm747_vm4, %v7270_v41  ;;  %v2546_v56 = vpop.f32.mrf.mxu0  ;;  %v8495_v63 = vld [vmem:[#allocation67_spill] sm:$0xff] }
 0x4e4   : > { %v2636_v40 = vadd.f32 %v7283_v49, %v2546_v56  ;;  %v8497_v56 = vld [vmem:[#allocation69_spill] sm:$0xff] }
 0x4e5   : > { %v7485_v0 = vsel %vm8388_vm6, %v3299_v25, %v3315_v8  ;;  %v7489_v32 = vsel %vm8388_vm6, %v3315_v8, %v3299_v25  ;;  %5075 = vmatmul.msk.bf16.gmra.mxu3 %vm747_vm4, %v7100_v3  ;;  %v8496_v8 = vld [vmem:[#allocation65_spill] sm:$0xff] }
 0x4e6   : > { %v2819_v7 = vpop.f32.mrf.mxu2  ;;  %v3227_v47 = vrot.slane %v2636_v40, 7 }
 0x4e7   : > { %v2909_v59 = vadd.f32 %v7279_v33, %v2819_v7 }
 0x4e8   : > { %v3143_v14 = vpop.f32.mrf.mxu3  ;;  %v3056_v61 = vpop.f32.mrf.mxu1  ;;  %v3244_v60 = vsel %vm1560_vm5, %v3211_v1, %v3227_v47  ;;  %v3260_v41 = vsel %vm1560_vm5, %v3227_v47, %v3211_v1 }
 0x4e9   : > { %v3144_v54 = vadd.f32 %v3143_v14, %v3054_v28  ;;  %v3289_v3 = vsel %vm202_vm2, %v3260_v41, 0.0 }
 0x4ea   : > { %v7504_v39 = vadd.f32 %v3289_v3, %v2909_v59  ;;  %4892 = vmatmul.msk.bf16.gmra.mxu0 %vm747_vm4, %v7295_v62  ;;  %v8498_v3 = vld [vmem:[#allocation70_spill] sm:$0xff] }
 0x4eb   : > { %v2549_v23 = vpop.f32.mrf.mxu0  ;;  %v3300_v50 = vrot.slane %v3144_v54, 1 }
 0x4ee   : > { %v2821_v29 = vpop.f32.mrf.mxu2 }
 0x4ef   : > { %v2911_v46 = vadd.f32 %v7287_v36, %v2821_v29  ;;  %v2639_v36 = vadd.f32 %v7293_v34, %v2549_v23 }
 0x4f0   : > { %v3145_v17 = vpop.f32.mrf.mxu3  ;;  %v3059_v2 = vpop.f32.mrf.mxu1 }
 0x4f1   : > { %v3146_v49 = vadd.f32 %v3145_v17, %v3056_v61  ;;  %v7507_v33 = vadd.f32 %v3244_v60, %v2911_v46  ;;  %v3212_v28 = vrot.slane %v2639_v36, 7  ;;  %v8499_v46 = vld [vmem:[#allocation38_spill] sm:$0xff] }
 0x4f3   : > { %v3316_v37 = vrot.slane %v3146_v49, 1  ;;  %3098 = vmatmul.bf16.gmra.mxu1 %v7289_v27  ;;  %4980 = vmatmul.msk.bf16.gmra.mxu2 %vm747_vm4, %v7295_v62  ;;  %v2551_v27 = vpop.f32.mrf.mxu0  ;;  %v8500_v49 = vld [vmem:[#allocation71_spill] sm:$0xff] }
 0x4f4   : > { %v2641_v18 = vadd.f32 %v8495_v63, %v2551_v27  ;;  %v8501_v27 = vld [vmem:[#allocation72_spill] sm:$0xff] }
 0x4f5   : > { %v7514_v35 = vsel %vm8388_vm6, %v3300_v50, %v3316_v37  ;;  %v7518_v58 = vsel %vm8388_vm6, %v3316_v37, %v3300_v50  ;;  %5076 = vmatmul.msk.bf16.gmra.mxu3 %vm747_vm4, %v7113_v30 }
 0x4f6   : > { %v2824_v9 = vpop.f32.mrf.mxu2  ;;  %v3228_v25 = vrot.slane %v2641_v18, 7 }
 0x4f7   : > { %v2914_v13 = vadd.f32 %v8496_v8, %v2824_v9 }
 0x4f8   : > { %v3148_v51 = vpop.f32.mrf.mxu3  ;;  %v3061_v45 = vpop.f32.mrf.mxu1  ;;  %v3245_v7 = vsel %vm1560_vm5, %v3212_v28, %v3228_v25  ;;  %v3261_v62 = vsel %vm1560_vm5, %v3228_v25, %v3212_v28 }
 0x4f9   : > { %v3149_v52 = vadd.f32 %v3148_v51, %v3059_v2  ;;  %v3291_v30 = vsel %vm202_vm2, %v3261_v62, 0.0 }
 0x4fa   : > { %v7533_v34 = vadd.f32 %v3291_v30, %v2914_v13 }
 0x4fb   : > { %v2554_v1 = vpop.f32.mrf.mxu0  ;;  %v3301_v59 = vrot.slane %v3149_v52, 1 }
 0x4fc   : > { %v2644_v23 = vadd.f32 %v8500_v49, %v2554_v1 }
 0x4fe   : > { %v2826_v14 = vpop.f32.mrf.mxu2  ;;  %v3213_v51 = vrot.slane %v2644_v23, 7  ;;  %v8503_v23 = vld [vmem:[#allocation39_spill] sm:$0xff] }
 0x4ff   : > { %v2916_v61 = vadd.f32 %v8497_v56, %v2826_v14 }
 0x500   : > { %v3150_v54 = vpop.f32.mrf.mxu3  ;;  %v3064_v47 = vpop.f32.mrf.mxu1 }
 0x501   : > { %v3151_v40 = vadd.f32 %v3150_v54, %v3061_v45  ;;  %v7536_v60 = vadd.f32 %v3245_v7, %v2916_v61  ;;  %v7566_v61 = vld [vmem:[%s8377_s2 + $0x14] ss:$0 sm:$0xff] }
 0x503   : > { %v3317_v41 = vrot.slane %v3151_v40, 1  ;;  %3103 = vmatmul.bf16.gmra.mxu1 %v8498_v3  ;;  %v2556_v37 = vpop.f32.mrf.mxu0  ;;  %v7578_v3 = vld [vmem:[%s8378_s3 + $0x14] ss:$0 sm:$0xff] }
 0x504   : > { %v2646_v36 = vadd.f32 %v7326_v24, %v2556_v37 }
 0x505   : > { %v7541_v29 = vsel %vm8388_vm6, %v3301_v59, %v3317_v41  ;;  %v7545_v17 = vsel %vm8388_vm6, %v3317_v41, %v3301_v59  ;;  %5077 = vmatmul.msk.bf16.gmra.mxu3 %vm747_vm4, %v8499_v46 }
 0x506   : > { %v2829_v2 = vpop.f32.mrf.mxu2  ;;  %v3229_v52 = vrot.slane %v2646_v36, 7 }
 0x507   : > { %v2919_v45 = vadd.f32 %v8501_v27, %v2829_v2 }
 0x508   : > { %v3153_v50 = vpop.f32.mrf.mxu3  ;;  %v3066_v9 = vpop.f32.mrf.mxu1  ;;  %v3246_v63 = vsel %vm1560_vm5, %v3213_v51, %v3229_v52  ;;  %v3262_v18 = vsel %vm1560_vm5, %v3229_v52, %v3213_v51  ;;  %v8504_v52 = vld [vmem:[#allocation41_spill] sm:$0xff] }
 0x509   : > { %v3154_v28 = vadd.f32 %v3153_v50, %v3064_v47  ;;  %v3293_v25 = vsel %vm202_vm2, %v3262_v18, 0.0 }
 0x50a   : > { %v7558_v8 = vadd.f32 %v3293_v25, %v2919_v45 }
 0x50b   : > { %v2568_v30 = vpop.f32.mrf.mxu0  ;;  %v3302_v14 = vrot.slane %v3154_v28, 1 }
 0x50c   : > { %v2569_v2 = vadd.f32 %v2568_v30, %v8503_v23 }
 0x50e   : > { %v2831_v13 = vpop.f32.mrf.mxu2 }
 0x50f   : > { %v2921_v24 = vadd.f32 %v7338_v4, %v2831_v13 }
 0x510   : > { %v3155_v7 = vpop.f32.mrf.mxu3  ;;  %v3069_v47 = vpop.f32.mrf.mxu1 }
 0x511   : > { %v3156_v62 = vadd.f32 %v3155_v7, %v3066_v9  ;;  %v7561_v54 = vadd.f32 %v3246_v63, %v2921_v24  ;;  %v3198_v63 = vrot.slane %v2569_v2, 7 }
 0x513   : > { %v3318_v56 = vrot.slane %v3156_v62, 1  ;;  %v2570_v9 = vpop.f32.mrf.mxu0 }
 0x515   : > { %v3335_v40 = vsel %vm8388_vm6, %v3302_v14, %v3318_v56  ;;  %v3351_v1 = vsel %vm8388_vm6, %v3318_v56, %v3302_v14 }
 0x516   : > { %v3375_v4 = vsel %vm205_vm3, %v3351_v1, 0.0  ;;  %v3438_v41 = vadd.f32 %v7336_v43, %v3335_v40  ;;  %v2843_v50 = vpop.f32.mrf.mxu2  ;;  %v2571_v43 = vadd.f32 %v2570_v9, %v8504_v52  ;;  %v8506_v40 = vld [vmem:[#allocation42_spill] sm:$0xff] }
 0x517   : > { %v3439_v46 = vadd.f32 %v7341_v44, %v3375_v4  ;;  %v8505_v44 = vld [vmem:[#allocation40_spill] sm:$0xff] }
 0x518   : > { %v3475_v49 = vmul.f32 %v7566_v61, %v3438_v41  ;;  %v3158_v37 = vpop.f32.mrf.mxu3  ;;  %v3214_v18 = vrot.slane %v2571_v43, 7  ;;  %v2844_v25 = vadd.f32 %v2843_v50, %v8505_v44  ;;  %v3071_v62 = vpop.f32.mrf.mxu1 }
 0x519   : > { %v3476_v36 = vmul.f32 %v7566_v61, %v3439_v46  ;;  %v3159_v7 = vadd.f32 %v3158_v37, %v3069_v47  ;;  %v3361_v37 = vsel %vm205_vm3, %v7373_v38, 0.0 }
 0x51a   : > { %v3512_v51 = vadd.f32 %v7578_v3, %v3475_v49  ;;  %v3247_v13 = vsel %vm1560_vm5, %v3214_v18, %v3198_v63  ;;  %v3231_v46 = vsel %vm1560_vm5, %v3198_v63, %v3214_v18  ;;  %v8507_v18 = vld [vmem:[#allocation43_spill] sm:$0xff] }
 0x51b   : > { %v3513_v27 = vadd.f32 %v7578_v3, %v3476_v36  ;;  %v3263_v24 = vsel %vm202_vm2, %v3247_v13, 0.0  ;;  %v2573_v41 = vpop.f32.mrf.mxu0  ;;  %v3303_v23 = vrot.slane %v3159_v7, 1 }
 0x51c   : > { %v5094_v45 = vmul.f32 -1.442695, %v3512_v51  ;;  %v3392_v30 = vadd.f32 %v3263_v24, %v2844_v25 }
 0x51d   : > { %v5095_v28 = vmul.f32 -1.442695, %v3513_v27 }
 0x51e   : > { %5293 = vpow2.f32 %v5094_v45  ;;  %v2845_v14 = vpop.f32.mrf.mxu2  ;;  %v3424_v49 = vadd.f32 %v3392_v30, %v7369_v6 }
 0x51f   : > { %5295 = vpow2.f32 %v5095_v28  ;;  %v2846_v1 = vadd.f32 %v2845_v14, %v8506_v40  ;;  %v2574_v28 = vadd.f32 %v2573_v41, %v8507_v18 }
 0x520   : > { %v3160_v56 = vpop.f32.mrf.mxu3  ;;  %v3461_v36 = vmul.f32 %v7566_v61, %v3424_v49 }
 0x521   : > { %v3161_v4 = vadd.f32 %v3160_v56, %v3071_v62  ;;  %v3393_v2 = vadd.f32 %v3231_v46, %v2846_v1  ;;  %v7619_v62 = vsel %vm205_vm3, %v7402_v19, 0.0  ;;  %v3199_v40 = vrot.slane %v2574_v28, 7  ;;  %v3074_v1 = vpop.f32.mrf.mxu1  ;;  %v8508_v46 = vld [vmem:[#allocation45_spill] sm:$0xff] }
 0x522   : > { %v3498_v45 = vadd.f32 %v7578_v3, %v3461_v36 }
 0x523   : > { %v3319_v50 = vrot.slane %v3161_v4, 1  ;;  %v3425_v52 = vadd.f32 %v3393_v2, %v3361_v37  ;;  %v2575_v24 = vpop.f32.mrf.mxu0 }
 0x524   : > { %v5294_v47 = vpop.eup %5293  ;;  %v5080_v25 = vmul.f32 -1.442695, %v3498_v45  ;;  %v2576_v19 = vadd.f32 %v2575_v24, %v8508_v46  ;;  %v8511_v24 = vld [vmem:[#allocation46_spill] sm:$0xff] }
 0x525   : > { %v5296_v9 = vpop.eup %5295  ;;  %v7600_v51 = vadd.f32 1.0, %v5294_v47  ;;  %v3336_v43 = vsel %vm8388_vm6, %v3303_v23, %v3319_v50  ;;  %v3352_v6 = vsel %vm8388_vm6, %v3319_v50, %v3303_v23  ;;  %v3462_v13 = vmul.f32 %v7566_v61, %v3425_v52 }
 0x526   : > { %v7606_v27 = vadd.f32 1.0, %v5296_v9  ;;  %v3440_v63 = vadd.f32 %v7359_v16, %v3336_v43  ;;  %v3377_v38 = vsel %vm205_vm3, %v3352_v6, 0.0  ;;  %v2848_v44 = vpop.f32.mrf.mxu2  ;;  %v3215_v6 = vrot.slane %v2576_v19, 7 }
 0x527   : > { %5297 = vrcp.f32 %v7600_v51  ;;  %v3441_v16 = vadd.f32 %v7362_v10, %v3377_v38  ;;  %v3877_v14 = vand.u32 2147483647, %v7600_v51  ;;  %v3499_v56 = vadd.f32 %v7578_v3, %v3462_v13 }
 0x528   : > { %5299 = vrcp.f32 %v7606_v27  ;;  %v3163_v7 = vpop.f32.mrf.mxu3  ;;  %v3477_v30 = vmul.f32 %v7566_v61, %v3440_v63  ;;  %vm3873_vm7 = vweird.f32 %v7600_v51  ;;  %v3879_v10 = vand.u32 2147483648, %v7600_v51 }
 0x529   : > { %5301 = vpow2.f32 %v5080_v25  ;;  %v3478_v4 = vmul.f32 %v7566_v61, %v3441_v16  ;;  %vm3888_vm8 = vweird.f32 %v7606_v27  ;;  %v3892_v23 = vand.u32 2147483647, %v7606_v27 }
 0x52a   : > { %v3514_v41 = vadd.f32 %v7578_v3, %v3477_v30  ;;  %v5081_v2 = vmul.f32 -1.442695, %v3499_v56  ;;  %v3894_v37 = vand.u32 2147483648, %v7606_v27  ;;  %vm7635_vm9 = vcmp.eq.f32.partialorder %v3877_v14, 8.507059e+37 }
 0x52b   : > { %v3515_v36 = vadd.f32 %v7578_v3, %v3478_v4  ;;  %v7640_v38 = vadd.f32 %v3163_v7, %v3074_v1  ;;  %v3248_v13 = vsel %vm1560_vm5, %v3215_v6, %v3199_v40  ;;  %v3880_v4 = vor.u32 1.1754944e-38, %v3879_v10  ;;  %v8512_v7 = vld [vmem:[#allocation44_spill] sm:$0xff] }
 0x52c   : > { %v5096_v9 = vmul.f32 -1.442695, %v3514_v41  ;;  %5303 = vpow2.f32 %v5081_v2  ;;  %v3265_v56 = vsel %vm202_vm2, %v3248_v13, 0.0  ;;  %v2849_v1 = vadd.f32 %v2848_v44, %v8512_v7  ;;  %v3076_v44 = vpop.f32.mrf.mxu1 }
 0x52d   : > { %v5298_v49 = vpop.eup %5297  ;;  %v5097_v63 = vmul.f32 -1.442695, %v3515_v36  ;;  %vm7650_vm12 = vcmp.eq.f32.partialorder %v3892_v23, 8.507059e+37 }
 0x52e   : > { %v5300_v50 = vpop.eup %5299  ;;  %v3869_v47 = vmul.f32 %v5298_v49, %v7600_v51  ;;  %5305 = vpow2.f32 %v5096_v9  ;;  %v2850_v18 = vpop.f32.mrf.mxu2  ;;  %vm3874_vm10 = vweird.f32 %v5298_v49  ;;  %v3895_v9 = vor.u32 1.1754944e-38, %v3894_v37 }
 0x52f   : > { %v3884_v43 = vmul.f32 %v5300_v50, %v7606_v27  ;;  %v5302_v28 = vpop.eup %5301  ;;  %v2851_v16 = vadd.f32 %v2850_v18, %v8511_v24  ;;  %5307 = vpow2.f32 %v5097_v63  ;;  %vm3889_vm11 = vweird.f32 %v5300_v50  ;;  %vm3875_vm13 = vmor %vm3873_vm7, %vm3874_vm10 }
 0x530   : > { %v3870_v45 = vsub.f32 1.0, %v3869_v47  ;;  %v7645_v14 = vadd.f32 1.0, %v5302_v28  ;;  %v3165_v46 = vpop.f32.mrf.mxu3  ;;  %v3232_v47 = vsel %vm1560_vm5, %v3199_v40, %v3215_v6  ;;  %vm3890_vm14 = vmor %vm3888_vm8, %vm3889_vm11  ;;  %v3304_v40 = vrot.slane %v7640_v38, 1 }
 0x531   : > { %v3885_v25 = vsub.f32 1.0, %v3884_v43  ;;  %v3394_v43 = vadd.f32 %v3265_v56, %v2849_v1  ;;  %v3166_v6 = vadd.f32 %v3165_v46, %v3076_v44 }
 0x532   : > { %v3871_v30 = vmul.f32 %v5298_v49, %v3870_v45  ;;  %5309 = vrcp.f32 %v7645_v14  ;;  %v5304_v36 = vpop.eup %5303  ;;  %v3395_v45 = vadd.f32 %v3232_v47, %v2851_v16  ;;  %v3667_v37 = vand.u32 2147483647, %v7645_v14 }
 0x533   : > { %v3886_v41 = vmul.f32 %v5300_v50, %v3885_v25  ;;  %v7663_v18 = vadd.f32 1.0, %v5304_v36  ;;  %v3669_v13 = vand.u32 2147483648, %v7645_v14  ;;  %v3426_v52 = vadd.f32 %v3394_v43, %v7398_v42 }
 0x534   : > { %v3872_v19 = vadd.f32 %v5298_v49, %v3871_v30  ;;  %v5306_v63 = vpop.eup %5305  ;;  %vm3663_vm1 = vweird.f32 %v7645_v14  ;;  %vm7688_vm7 = vcmp.eq.f32.partialorder %v3667_v37, 8.507059e+37 }
 0x535   : > { %v3887_v10 = vadd.f32 %v5300_v50, %v3886_v41  ;;  %v7669_v25 = vadd.f32 1.0, %v5306_v63  ;;  %5311 = vrcp.f32 %v7663_v18  ;;  %v3684_v30 = vand.u32 2147483648, %v7663_v18 }
 0x536   : > { %v3876_v23 = vsel %vm3875_vm13, %v5298_v49, %v3872_v19  ;;  %v5308_v49 = vpop.eup %5307  ;;  %v3682_v42 = vand.u32 2147483647, %v7663_v18  ;;  %v3320_v41 = vrot.slane %v3166_v6, 1  ;;  %v3670_v7 = vor.u32 1.1754944e-38, %v3669_v13  ;;  %v7708_v6 = vpop.f32.mrf.mxu0 }
 0x537   : > { %v3881_v51 = vsel %vm7635_vm9, %v3880_v4, %v3876_v23  ;;  %v3891_v28 = vsel %vm3890_vm14, %v5300_v50, %v3887_v10  ;;  %v3427_v50 = vadd.f32 %v3395_v45, %v7619_v62  ;;  %v7680_v56 = vadd.f32 1.0, %v5308_v49 }
 0x538   : > { %v3896_v27 = vsel %vm7650_vm12, %v3895_v9, %v3891_v28  ;;  %vm4152_vm15 = vcmp.gt.f32.partialorder %v3881_v51, 0.5  ;;  %v5310_v24 = vpop.eup %5309  ;;  %5313 = vrcp.f32 %v7669_v25  ;;  %v3909_v1 = vand.u32 2147483648, %v7669_v25 }
 0x539   : > { %vm4153_vm0 = vcmp.gt.f32.partialorder %v3896_v27, 0.5  ;;  %v4184_v38 = vsel %vm4152_vm15, %v3881_v51, 0.0  ;;  %v3659_v4 = vmul.f32 %v5310_v24, %v7645_v14  ;;  %5315 = vrcp.f32 %v7680_v56 }
 0x53a   : > { %v4185_v16 = vsel %vm4153_vm0, %v3896_v27, 0.0  ;;  %4216 = vst.msk [vmem:[%s5484_s24 + $0x70] sm:$0xff] %vm747_vm4, %v4184_v38  ;;  %vm3678_vm8 = vweird.f32 %v7663_v18  ;;  %v3907_v19 = vand.u32 2147483647, %v7669_v25  ;;  %v3463_v2 = vmul.f32 %v7566_v61, %v3426_v52 }
 0x53b   : > { %4217 = vst.msk [vmem:[%s5484_s24 + $0x78] sm:$0xff] %vm747_vm4, %v4185_v16  ;;  %v3660_v46 = vsub.f32 1.0, %v3659_v4  ;;  %v5312_v47 = vpop.eup %5311  ;;  %vm3664_vm9 = vweird.f32 %v5310_v24  ;;  %v3685_v36 = vor.u32 1.1754944e-38, %v3684_v30  ;;  %v3922_v10 = vand.u32 2147483647, %v7680_v56 }
 0x53c   : > { %v3464_v9 = vmul.f32 %v7566_v61, %v3427_v50  ;;  %v3674_v44 = vmul.f32 %v5312_v47, %v7663_v18  ;;  %vm7700_vm10 = vcmp.eq.f32.partialorder %v3682_v42, 8.507059e+37  ;;  %vm3903_vm11 = vweird.f32 %v7669_v25  ;;  %vm3665_vm15 = vmor %vm3663_vm1, %vm3664_vm9 }
 0x53d   : > { %v3661_v43 = vmul.f32 %v5310_v24, %v3660_v46  ;;  %v3924_v63 = vand.u32 2147483648, %v7680_v56  ;;  %v3337_v23 = vsel %vm8388_vm6, %v3304_v40, %v3320_v41  ;;  %v3910_v28 = vor.u32 1.1754944e-38, %v3909_v1 }
 0x53e   : > { %v5314_v51 = vpop.eup %5313  ;;  %v3500_v37 = vadd.f32 %v7578_v3, %v3463_v2  ;;  %v3501_v49 = vadd.f32 %v7578_v3, %v3464_v9  ;;  %v3353_v27 = vsel %vm8388_vm6, %v3320_v41, %v3304_v40  ;;  %v3675_v38 = vsub.f32 1.0, %v3674_v44  ;;  %v7726_v41 = vpop.f32.mrf.mxu2 }
 0x53f   : > { %v3662_v13 = vadd.f32 %v5310_v24, %v3661_v43  ;;  %vm3679_vm12 = vweird.f32 %v5312_v47  ;;  %v3899_v52 = vmul.f32 %v5314_v51, %v7669_v25  ;;  %vm7715_vm13 = vcmp.eq.f32.partialorder %v3907_v19, 8.507059e+37  ;;  %v5316_v16 = vpop.eup %5315 }
 0x540   : > { %vm3918_vm14 = vweird.f32 %v7680_v56  ;;  %v5082_v30 = vmul.f32 -1.442695, %v3500_v37  ;;  %v5083_v4 = vmul.f32 -1.442695, %v3501_v49  ;;  %v3379_v40 = vsel %vm205_vm3, %v3353_v27, 0.0  ;;  %vm3680_vm9 = vmor %vm3678_vm8, %vm3679_vm12  ;;  %v3079_v27 = vpop.f32.mrf.mxu1 }
 0x541   : > { %v3442_v42 = vadd.f32 %v7388_v55, %v3337_v23  ;;  %v3666_v1 = vsel %vm3665_vm15, %v5310_v24, %v3662_v13  ;;  %v3676_v46 = vmul.f32 %v5312_v47, %v3675_v38  ;;  %v3900_v19 = vsub.f32 1.0, %v3899_v52  ;;  %v3168_v55 = vpop.f32.mrf.mxu3 }
 0x542   : > { %v3914_v2 = vmul.f32 %v5316_v16, %v7680_v56  ;;  %v3671_v9 = vsel %vm7688_vm7, %v3670_v7, %v3666_v1  ;;  %vm3904_vm0 = vweird.f32 %v5314_v51  ;;  %5317 = vpow2.f32 %v5082_v30  ;;  %v8524_v56 = vld [vmem:[#allocation49_spill] sm:$0xff] }
 0x543   : > { %v3443_v14 = vadd.f32 %v7391_v48, %v3379_v40  ;;  %vm4138_vm1 = vcmp.gt.f32.partialorder %v3671_v9, 0.5  ;;  %v3677_v43 = vadd.f32 %v5312_v47, %v3676_v46  ;;  %v3901_v44 = vmul.f32 %v5314_v51, %v3900_v19  ;;  %vm3905_vm8 = vmor %vm3903_vm11, %vm3904_vm0  ;;  %v2580_v40 = vpop.f32.mrf.mxu0 }
 0x544   : > { %v3915_v37 = vsub.f32 1.0, %v3914_v2  ;;  %v4170_v23 = vsel %vm4138_vm1, %v3671_v9, 0.0  ;;  %5319 = vpow2.f32 %v5083_v4  ;;  %v3479_v24 = vmul.f32 %v7566_v61, %v3442_v42 }
 0x545   : > { %v3480_v62 = vmul.f32 %v7566_v61, %v3443_v14  ;;  %4202 = vst.msk [vmem:[%s5484_s24] sm:$0xff] %vm747_vm4, %v4170_v23  ;;  %v3681_v7 = vsel %vm3680_vm9, %v5312_v47, %v3677_v43  ;;  %v3902_v49 = vadd.f32 %v5314_v51, %v3901_v44  ;;  %vm3919_vm7 = vweird.f32 %v5316_v16  ;;  %v8525_v44 = vld [vmem:[#allocation50_spill] sm:$0xff] }
 0x546   : > { %v3916_v48 = vmul.f32 %v5316_v16, %v3915_v37  ;;  %v3686_v13 = vsel %vm7700_vm10, %v3685_v36, %v3681_v7  ;;  %vm7744_vm12 = vcmp.eq.f32.partialorder %v3922_v10, 8.507059e+37  ;;  %v3516_v38 = vadd.f32 %v7578_v3, %v3479_v24  ;;  %vm3920_vm10 = vmor %vm3918_vm14, %vm3919_vm7  ;;  %v2855_v9 = vpop.f32.mrf.mxu2 }
 0x547   : > { %v3517_v47 = vadd.f32 %v7578_v3, %v3480_v62  ;;  %vm4139_vm15 = vcmp.gt.f32.partialorder %v3686_v13, 0.5  ;;  %v3906_v52 = vsel %vm3905_vm8, %v5314_v51, %v3902_v49  ;;  %v3925_v4 = vor.u32 1.1754944e-38, %v3924_v63  ;;  %v8523_v63 = vld [vmem:[#allocation47_spill] sm:$0xff]  ;;  %v8526_v49 = vld [vmem:[#allocation48_spill] sm:$0xff] }
 0x548   : > { %v3917_v30 = vadd.f32 %v5316_v16, %v3916_v48  ;;  %v5318_v45 = vpop.eup %5317  ;;  %v4171_v36 = vsel %vm4139_vm15, %v3686_v13, 0.0  ;;  %v3911_v25 = vsel %vm7715_vm13, %v3910_v28, %v3906_v52  ;;  %v5098_v10 = vmul.f32 -1.442695, %v3516_v38  ;;  %v3081_v38 = vpop.f32.mrf.mxu1 }
 0x549   : > { %v5099_v42 = vmul.f32 -1.442695, %v3517_v47  ;;  %4203 = vst.msk [vmem:[%s5484_s24 + $0x8] sm:$0xff] %vm747_vm4, %v4171_v36  ;;  %vm4154_vm11 = vcmp.gt.f32.partialorder %v3911_v25, 0.5  ;;  %v7757_v51 = vadd.f32 1.0, %v5318_v45  ;;  %v2579_v46 = vadd.f32 %v7708_v6, %v8523_v63  ;;  %v3170_v23 = vpop.f32.mrf.mxu3 }
 0x54a   : > { %v3921_v1 = vsel %vm3920_vm10, %v5316_v16, %v3917_v30  ;;  %v5320_v19 = vpop.eup %5319  ;;  %v4186_v50 = vsel %vm4154_vm11, %v3911_v25, 0.0  ;;  %5321 = vpow2.f32 %v5098_v10  ;;  %v2581_v2 = vadd.f32 %v2580_v40, %v8524_v56 }
 0x54b   : > { %v3926_v28 = vsel %vm7744_vm12, %v3925_v4, %v3921_v1  ;;  %4218 = vst.msk [vmem:[%s5484_s24 + $0x80] sm:$0xff] %vm747_vm4, %v4186_v50  ;;  %5323 = vrcp.f32 %v7757_v51  ;;  %v7767_v14 = vadd.f32 1.0, %v5320_v19  ;;  %v3200_v6 = vrot.slane %v2579_v46, 7  ;;  %v2583_v63 = vpop.f32.mrf.mxu0 }
 0x54c   : > { %vm4155_vm13 = vcmp.gt.f32.partialorder %v3926_v28, 0.5  ;;  %5325 = vpow2.f32 %v5099_v42  ;;  %v3216_v43 = vrot.slane %v2581_v2, 7  ;;  %v2856_v37 = vadd.f32 %v2855_v9, %v8525_v44 }
 0x54d   : > { %v4187_v16 = vsel %vm4155_vm13, %v3926_v28, 0.0  ;;  %v3697_v24 = vand.u32 2147483647, %v7757_v51  ;;  %5327 = vrcp.f32 %v7767_v14  ;;  %v3169_v62 = vadd.f32 %v3168_v55, %v3079_v27 }
 0x54e   : > { %4219 = vst.msk [vmem:[%s5484_s24 + $0x88] sm:$0xff] %vm747_vm4, %v4187_v16  ;;  %v3699_v7 = vand.u32 2147483648, %v7757_v51  ;;  %v2854_v48 = vadd.f32 %v7726_v41, %v8526_v49  ;;  %v3233_v13 = vsel %vm1560_vm5, %v3200_v6, %v3216_v43  ;;  %v3249_v18 = vsel %vm1560_vm5, %v3216_v43, %v3200_v6  ;;  %v8531_v43 = vld [vmem:[#allocation51_spill] sm:$0xff] }
 0x54f   : > { %v3365_v52 = vsel %vm205_vm3, %v7431_v20, 0.0  ;;  %v3267_v55 = vsel %vm202_vm2, %v3249_v18, 0.0  ;;  %v3397_v27 = vadd.f32 %v3233_v13, %v2856_v37  ;;  %v3171_v30 = vadd.f32 %v3170_v23, %v3081_v38  ;;  %v7819_v38 = vpop.f32.mrf.mxu2 }
 0x550   : > { %v5322_v47 = vpop.eup %5321  ;;  %vm3693_vm14 = vweird.f32 %v7757_v51  ;;  %v3712_v41 = vand.u32 2147483647, %v7767_v14  ;;  %v3396_v45 = vadd.f32 %v3267_v55, %v2854_v48  ;;  %vm7791_vm0 = vcmp.eq.f32.partialorder %v3697_v24, 8.507059e+37 }
 0x551   : > { %v5324_v4 = vpop.eup %5323  ;;  %v7788_v40 = vadd.f32 1.0, %v5322_v47  ;;  %v3714_v20 = vand.u32 2147483648, %v7767_v14  ;;  %v3305_v42 = vrot.slane %v3169_v62, 1  ;;  %v3429_v1 = vadd.f32 %v3397_v27, %v3365_v52 }
 0x552   : > { %v5326_v36 = vpop.eup %5325  ;;  %v3689_v25 = vmul.f32 %v5324_v4, %v7757_v51  ;;  %v3700_v46 = vor.u32 1.1754944e-38, %v3699_v7  ;;  %vm3708_vm1 = vweird.f32 %v7767_v14  ;;  %v3428_v56 = vadd.f32 %v3396_v45, %v7427_v53 }
 0x553   : > { %v7797_v19 = vadd.f32 1.0, %v5326_v36  ;;  %5329 = vrcp.f32 %v7788_v40  ;;  %v5328_v28 = vpop.eup %5327  ;;  %v3466_v2 = vmul.f32 %v7566_v61, %v3429_v1  ;;  %v3321_v9 = vrot.slane %v3171_v30, 1 }
 0x554   : > { %v3690_v50 = vsub.f32 1.0, %v3689_v25  ;;  %v3704_v16 = vmul.f32 %v5328_v28, %v7767_v14  ;;  %vm7803_vm9 = vcmp.eq.f32.partialorder %v3712_v41, 8.507059e+37  ;;  %v7809_v44 = vadd.f32 %v2583_v63, %v8531_v43  ;;  %v3173_v41 = vpop.f32.mrf.mxu3 }
 0x555   : > { %5331 = vrcp.f32 %v7797_v19  ;;  %vm3694_vm7 = vweird.f32 %v5324_v4  ;;  %v3715_v23 = vor.u32 1.1754944e-38, %v3714_v20  ;;  %v3937_v24 = vand.u32 2147483647, %v7788_v40 }
 0x556   : > { %v3691_v37 = vmul.f32 %v5324_v4, %v3690_v50  ;;  %v3705_v53 = vsub.f32 1.0, %v3704_v16  ;;  %v3939_v62 = vand.u32 2147483648, %v7788_v40  ;;  %v3465_v7 = vmul.f32 %v7566_v61, %v3428_v56  ;;  %vm3695_vm15 = vmor %vm3693_vm14, %vm3694_vm7 }
 0x557   : > { %v3503_v49 = vadd.f32 %v7578_v3, %v3466_v2  ;;  %vm3709_vm8 = vweird.f32 %v5328_v28  ;;  %vm3933_vm12 = vweird.f32 %v7788_v40  ;;  %v3952_v13 = vand.u32 2147483647, %v7797_v19 }
 0x558   : > { %v3692_v48 = vadd.f32 %v5324_v4, %v3691_v37  ;;  %v3354_v18 = vsel %vm8388_vm6, %v3321_v9, %v3305_v42  ;;  %v3706_v52 = vmul.f32 %v5328_v28, %v3705_v53  ;;  %v3954_v55 = vand.u32 2147483648, %v7797_v19  ;;  %vm3710_vm13 = vmor %vm3708_vm1, %vm3709_vm8 }
 0x559   : > { %v5330_v47 = vpop.eup %5329  ;;  %v3502_v27 = vadd.f32 %v7578_v3, %v3465_v7  ;;  %v5085_v30 = vmul.f32 -1.442695, %v3503_v49  ;;  %vm7826_vm10 = vcmp.eq.f32.partialorder %v3937_v24, 8.507059e+37  ;;  %v3338_v20 = vsel %vm8388_vm6, %v3305_v42, %v3321_v9  ;;  %v2585_v9 = vpop.f32.mrf.mxu0 }
 0x55a   : > { %v3696_v45 = vsel %vm3695_vm15, %v5324_v4, %v3692_v48  ;;  %v3929_v36 = vmul.f32 %v5330_v47, %v7788_v40  ;;  %v3381_v51 = vsel %vm205_vm3, %v3354_v18, 0.0  ;;  %v3707_v50 = vadd.f32 %v5328_v28, %v3706_v52  ;;  %v3084_v4 = vpop.f32.mrf.mxu1 }
 0x55b   : > { %v5332_v1 = vpop.eup %5331  ;;  %v3701_v63 = vsel %vm7791_vm0, %v3700_v46, %v3696_v45  ;;  %v5084_v56 = vmul.f32 -1.442695, %v3502_v27  ;;  %5333 = vpow2.f32 %v5085_v30  ;;  %vm3934_vm14 = vweird.f32 %v5330_v47 }
 0x55c   : > { %vm4140_vm11 = vcmp.gt.f32.partialorder %v3701_v63, 0.5  ;;  %v3930_v2 = vsub.f32 1.0, %v3929_v36  ;;  %v3944_v42 = vmul.f32 %v5332_v1, %v7797_v19  ;;  %v3711_v43 = vsel %vm3710_vm13, %v5328_v28, %v3707_v50  ;;  %v2860_v36 = vpop.f32.mrf.mxu2 }
 0x55d   : > { %v4172_v16 = vsel %vm4140_vm11, %v3701_v63, 0.0  ;;  %5335 = vpow2.f32 %v5084_v56  ;;  %v3444_v10 = vadd.f32 %v7417_v12, %v3338_v20  ;;  %v3716_v46 = vsel %vm7803_vm9, %v3715_v23, %v3711_v43  ;;  %vm3935_vm9 = vmor %vm3933_vm12, %vm3934_vm14  ;;  %v8536_v23 = vld [vmem:[#allocation53_spill] sm:$0xff]  ;;  %v3175_v63 = vpop.f32.mrf.mxu3 }
 0x55e   : > { %4204 = vst.msk [vmem:[%s5484_s24 + $0x10] sm:$0xff] %vm747_vm4, %v4172_v16  ;;  %v3931_v37 = vmul.f32 %v5330_v47, %v3930_v2  ;;  %v3945_v24 = vsub.f32 1.0, %v3944_v42  ;;  %v3445_v14 = vadd.f32 %v7420_v5, %v3381_v51  ;;  %vm4141_vm0 = vcmp.gt.f32.partialorder %v3716_v46, 0.5  ;;  %v8537_v42 = vld [vmem:[#allocation54_spill] sm:$0xff] }
 0x55f   : > { %v3940_v53 = vor.u32 1.1754944e-38, %v3939_v62  ;;  %vm3949_vm1 = vweird.f32 %v5332_v1  ;;  %v3481_v7 = vmul.f32 %v7566_v61, %v3444_v10  ;;  %v4173_v49 = vsel %vm4141_vm0, %v3716_v46, 0.0  ;;  %v8538_v46 = vld [vmem:[#allocation52_spill] sm:$0xff] }
 0x560   : > { %v3932_v28 = vadd.f32 %v5330_v47, %v3931_v37  ;;  %v3946_v48 = vmul.f32 %v5332_v1, %v3945_v24  ;;  %v3482_v18 = vmul.f32 %v7566_v61, %v3445_v14  ;;  %4205 = vst.msk [vmem:[%s5484_s24 + $0x18] sm:$0xff] %vm747_vm4, %v4173_v49  ;;  %vm3948_vm7 = vweird.f32 %v7797_v19 }
 0x561   : > { %v5334_v12 = vpop.eup %5333  ;;  %vm7854_vm8 = vcmp.eq.f32.partialorder %v3952_v13, 8.507059e+37  ;;  %v3518_v6 = vadd.f32 %v7578_v3, %v3481_v7  ;;  %v2586_v62 = vadd.f32 %v2585_v9, %v8536_v23  ;;  %v3955_v30 = vor.u32 1.1754944e-38, %v3954_v55  ;;  %vm3950_vm12 = vmor %vm3948_vm7, %vm3949_vm1  ;;  %v2588_v43 = vpop.f32.mrf.mxu0 }
 0x562   : > { %v3936_v52 = vsel %vm3935_vm9, %v5330_v47, %v3932_v28  ;;  %v3947_v27 = vadd.f32 %v5332_v1, %v3946_v48  ;;  %v7860_v45 = vadd.f32 1.0, %v5334_v12  ;;  %v3519_v19 = vadd.f32 %v7578_v3, %v3482_v18  ;;  %v3086_v2 = vpop.f32.mrf.mxu1 }
 0x563   : > { %v5336_v20 = vpop.eup %5335  ;;  %v3941_v40 = vsel %vm7826_vm10, %v3940_v53, %v3936_v52  ;;  %v5100_v13 = vmul.f32 -1.442695, %v3518_v6  ;;  %v3217_v51 = vrot.slane %v2586_v62, 7  ;;  %v3174_v56 = vadd.f32 %v3173_v41, %v3084_v4 }
 0x564   : > { %v3951_v50 = vsel %vm3950_vm12, %v5332_v1, %v3947_v27  ;;  %vm4156_vm15 = vcmp.gt.f32.partialorder %v3941_v40, 0.5  ;;  %v7866_v47 = vadd.f32 1.0, %v5336_v20  ;;  %5337 = vrcp.f32 %v7860_v45 }
 0x565   : > { %v3956_v55 = vsel %vm7854_vm8, %v3955_v30, %v3951_v50  ;;  %v4188_v25 = vsel %vm4156_vm15, %v3941_v40, 0.0  ;;  %v2861_v9 = vadd.f32 %v2860_v36, %v8537_v42  ;;  %v3201_v1 = vrot.slane %v7809_v44, 7  ;;  %v8543_v50 = vld [vmem:[#allocation55_spill] sm:$0xff] }
 0x566   : > { %vm4157_vm10 = vcmp.gt.f32.partialorder %v3956_v55, 0.5  ;;  %4220 = vst.msk [vmem:[%s5484_s24 + $0x90] sm:$0xff] %vm747_vm4, %v4188_v25  ;;  %5339 = vrcp.f32 %v7866_v47  ;;  %v3176_v16 = vadd.f32 %v3175_v63, %v3086_v2  ;;  %v3367_v10 = vsel %vm205_vm3, %v7460_v11, 0.0 }
 0x567   : > { %v7882_v41 = vsel %vm205_vm3, %v7489_v32, 0.0  ;;  %v4189_v4 = vsel %vm4157_vm10, %v3956_v55, 0.0  ;;  %v2859_v37 = vadd.f32 %v7819_v38, %v8538_v46  ;;  %v3742_v24 = vand.u32 2147483647, %v7860_v45 }
 0x568   : > { %4221 = vst.msk [vmem:[%s5484_s24 + $0x98] sm:$0xff] %vm747_vm4, %v4189_v4  ;;  %5341 = vpow2.f32 %v5100_v13  ;;  %v5101_v44 = vmul.f32 -1.442695, %v3519_v19  ;;  %v3234_v14 = vsel %vm1560_vm5, %v3201_v1, %v3217_v51  ;;  %v3727_v11 = vand.u32 2147483647, %v7866_v47  ;;  %v3178_v19 = vpop.f32.mrf.mxu3 }
 0x569   : > { %v3306_v53 = vrot.slane %v3174_v56, 1  ;;  %v3250_v32 = vsel %vm1560_vm5, %v3217_v51, %v3201_v1  ;;  %v3399_v7 = vadd.f32 %v3234_v14, %v2861_v9  ;;  %v3729_v28 = vand.u32 2147483648, %v7866_v47  ;;  %v2590_v46 = vpop.f32.mrf.mxu0 }
 0x56a   : > { %v5338_v49 = vpop.eup %5337  ;;  %5343 = vpow2.f32 %v5101_v44  ;;  %v3269_v38 = vsel %vm202_vm2, %v3250_v32, 0.0  ;;  %v3322_v48 = vrot.slane %v3176_v16, 1  ;;  %vm3738_vm11 = vweird.f32 %v7860_v45  ;;  %v3089_v9 = vpop.f32.mrf.mxu1 }
 0x56b   : > { %v3734_v18 = vmul.f32 %v5338_v49, %v7860_v45  ;;  %v3398_v12 = vadd.f32 %v3269_v38, %v2859_v37  ;;  %v3431_v5 = vadd.f32 %v3399_v7, %v3367_v10  ;;  %vm3723_vm13 = vweird.f32 %v7866_v47  ;;  %v2863_v10 = vpop.f32.mrf.mxu2  ;;  %v8544_v38 = vld [vmem:[#allocation56_spill] sm:$0xff] }
 0x56c   : > { %v5340_v6 = vpop.eup %5339  ;;  %vm7900_vm14 = vcmp.eq.f32.partialorder %v3742_v24, 8.507059e+37  ;;  %v3744_v62 = vand.u32 2147483648, %v7860_v45  ;;  %v3339_v52 = vsel %vm8388_vm6, %v3306_v53, %v3322_v48  ;;  %vm7908_vm0 = vcmp.eq.f32.partialorder %v3727_v11, 8.507059e+37 }
 0x56d   : > { %v3719_v27 = vmul.f32 %v5340_v6, %v7866_v47  ;;  %v3735_v36 = vsub.f32 1.0, %v3734_v18  ;;  %v3430_v20 = vadd.f32 %v3398_v12, %v7456_v26  ;;  %v3355_v40 = vsel %vm8388_vm6, %v3322_v48, %v3306_v53 }
 0x56e   : > { %v5342_v13 = vpop.eup %5341  ;;  %v3730_v51 = vor.u32 1.1754944e-38, %v3729_v28  ;;  %vm3739_vm1 = vweird.f32 %v5338_v49  ;;  %v3468_v63 = vmul.f32 %v7566_v61, %v3431_v5  ;;  %v7917_v55 = vadd.f32 %v2588_v43, %v8543_v50 }
 0x56f   : > { %v3720_v25 = vsub.f32 1.0, %v3719_v27  ;;  %v3736_v56 = vmul.f32 %v5338_v49, %v3735_v36  ;;  %v7919_v2 = vadd.f32 1.0, %v5342_v13  ;;  %v3467_v42 = vmul.f32 %v7566_v61, %v3430_v20  ;;  %vm3740_vm7 = vmor %vm3738_vm11, %vm3739_vm1  ;;  %v8547_v13 = vld [vmem:[#allocation57_spill] sm:$0xff] }
 0x570   : > { %v5344_v26 = vpop.eup %5343  ;;  %vm3724_vm9 = vweird.f32 %v5340_v6  ;;  %v3383_v1 = vsel %vm205_vm3, %v3355_v40, 0.0  ;;  %v3446_v16 = vadd.f32 %v7446_v21, %v3339_v52  ;;  %v7925_v4 = vadd.f32 %v3178_v19, %v3089_v9 }
 0x571   : > { %v3721_v43 = vmul.f32 %v5340_v6, %v3720_v25  ;;  %v3737_v37 = vadd.f32 %v5338_v49, %v3736_v56  ;;  %v7927_v24 = vadd.f32 1.0, %v5344_v26  ;;  %5345 = vrcp.f32 %v7919_v2  ;;  %vm3725_vm8 = vmor %vm3723_vm13, %vm3724_vm9  ;;  %v2593_v9 = vpop.f32.mrf.mxu0 }
 0x572   : > { %v3745_v44 = vor.u32 1.1754944e-38, %v3744_v62  ;;  %v3504_v14 = vadd.f32 %v7578_v3, %v3467_v42  ;;  %v3505_v11 = vadd.f32 %v7578_v3, %v3468_v63  ;;  %v3202_v21 = vrot.slane %v7917_v55, 7 }
 0x573   : > { %v3722_v53 = vadd.f32 %v5340_v6, %v3721_v43  ;;  %v3741_v32 = vsel %vm3740_vm7, %v5338_v49, %v3737_v37  ;;  %5347 = vrcp.f32 %v7927_v24  ;;  %v3447_v7 = vadd.f32 %v7449_v22, %v3383_v1  ;;  %v2865_v42 = vpop.f32.mrf.mxu2  ;;  %v3091_v43 = vpop.f32.mrf.mxu1 }
 0x574   : > { %v3746_v45 = vsel %vm7900_vm14, %v3745_v44, %v3741_v32  ;;  %v3483_v28 = vmul.f32 %v7566_v61, %v3446_v16  ;;  %v7945_v48 = vadd.f32 %v2863_v10, %v8544_v38  ;;  %v3307_v18 = vrot.slane %v7925_v4, 1  ;;  %v8063_v4 = vld [vmem:[%s8378_s3 + $0x14] ss:$0 sm:$0xff] }
 0x575   : > { %v3726_v49 = vsel %vm3725_vm8, %v5340_v6, %v3722_v53  ;;  %vm4143_vm12 = vcmp.gt.f32.partialorder %v3746_v45, 0.5  ;;  %v3967_v12 = vand.u32 2147483647, %v7919_v2  ;;  %v5086_v22 = vmul.f32 -1.442695, %v3504_v14  ;;  %v8548_v14 = vld [vmem:[#allocation58_spill] sm:$0xff] }
 0x576   : > { %v3731_v47 = vsel %vm7908_vm0, %v3730_v51, %v3726_v49  ;;  %v4175_v5 = vsel %vm4143_vm12, %v3746_v45, 0.0  ;;  %v3969_v23 = vand.u32 2147483648, %v7919_v2  ;;  %v5087_v62 = vmul.f32 -1.442695, %v3505_v11  ;;  %v8549_v53 = vld [vmem:[#allocation59_spill] sm:$0xff] }
 0x577   : > { %v5346_v52 = vpop.eup %5345  ;;  %vm4142_vm15 = vcmp.gt.f32.partialorder %v3731_v47, 0.5  ;;  %4207 = vst.msk [vmem:[%s5484_s24 + $0x28] sm:$0xff] %vm747_vm4, %v4175_v5  ;;  %vm3963_vm10 = vweird.f32 %v7919_v2  ;;  %5349 = vpow2.f32 %v5086_v22  ;;  %v3484_v6 = vmul.f32 %v7566_v61, %v3447_v7  ;;  %v3180_v61 = vpop.f32.mrf.mxu3 }
 0x578   : > { %v4174_v27 = vsel %vm4142_vm15, %v3731_v47, 0.0  ;;  %v3959_v36 = vmul.f32 %v5346_v52, %v7919_v2  ;;  %vm3978_vm11 = vweird.f32 %v7927_v24  ;;  %5351 = vpow2.f32 %v5087_v62 }
 0x579   : > { %v5348_v30 = vpop.eup %5347  ;;  %4206 = vst.msk [vmem:[%s5484_s24 + $0x20] sm:$0xff] %vm747_vm4, %v4174_v27  ;;  %vm7960_vm13 = vcmp.eq.f32.partialorder %v3967_v12, 8.507059e+37  ;;  %v3520_v40 = vadd.f32 %v7578_v3, %v3483_v28  ;;  %v3521_v19 = vadd.f32 %v7578_v3, %v3484_v6  ;;  %v2591_v51 = vadd.f32 %v2590_v46, %v8547_v13 }
 0x57a   : > { %v3960_v63 = vsub.f32 1.0, %v3959_v36  ;;  %v3970_v50 = vor.u32 1.1754944e-38, %v3969_v23  ;;  %v3974_v25 = vmul.f32 %v5348_v30, %v7927_v24  ;;  %v3982_v56 = vand.u32 2147483647, %v7927_v24 }
 0x57b   : > { %v3984_v26 = vand.u32 2147483648, %v7927_v24  ;;  %v5102_v1 = vmul.f32 -1.442695, %v3520_v40  ;;  %v5103_v16 = vmul.f32 -1.442695, %v3521_v19  ;;  %v3218_v10 = vrot.slane %v2591_v51, 7 }
 0x57c   : > { %v3961_v37 = vmul.f32 %v5346_v52, %v3960_v63  ;;  %vm3964_vm14 = vweird.f32 %v5346_v52  ;;  %v3975_v3 = vsub.f32 1.0, %v3974_v25  ;;  %v7970_v44 = vadd.f32 %v3180_v61, %v3091_v43 }
 0x57d   : > { %v5350_v46 = vpop.eup %5349  ;;  %vm3979_vm0 = vweird.f32 %v5348_v30  ;;  %5353 = vpow2.f32 %v5102_v1  ;;  %v2866_v11 = vadd.f32 %v2865_v42, %v8548_v14  ;;  %v7974_v32 = vadd.f32 %v2593_v9, %v8549_v53  ;;  %vm3965_vm1 = vmor %vm3963_vm10, %vm3964_vm14 }
 0x57e   : > { %v5352_v7 = vpop.eup %5351  ;;  %v3962_v45 = vadd.f32 %v5346_v52, %v3961_v37  ;;  %v3976_v28 = vmul.f32 %v5348_v30, %v3975_v3  ;;  %v7976_v38 = vadd.f32 1.0, %v5350_v46  ;;  %5355 = vpow2.f32 %v5103_v16  ;;  %vm3980_vm7 = vmor %vm3978_vm11, %vm3979_vm0 }
 0x57f   : > { %vm7980_vm9 = vcmp.eq.f32.partialorder %v3982_v56, 8.507059e+37  ;;  %v3985_v12 = vor.u32 1.1754944e-38, %v3984_v26  ;;  %v7984_v22 = vadd.f32 1.0, %v5352_v7  ;;  %v3251_v47 = vsel %vm1560_vm5, %v3218_v10, %v3202_v21 }
 0x580   : > { %v3966_v5 = vsel %vm3965_vm1, %v5346_v52, %v3962_v45  ;;  %v3977_v23 = vadd.f32 %v5348_v30, %v3976_v28  ;;  %5357 = vrcp.f32 %v7976_v38  ;;  %v3323_v62 = vrot.slane %v7970_v44, 1 }
 0x581   : > { %v3971_v2 = vsel %vm7960_vm13, %v3970_v50, %v3966_v5  ;;  %5359 = vrcp.f32 %v7984_v22  ;;  %v3235_v52 = vsel %vm1560_vm5, %v3202_v21, %v3218_v10  ;;  %v3203_v6 = vrot.slane %v7974_v32, 7 }
 0x582   : > { %v3981_v27 = vsel %vm3980_vm7, %v5348_v30, %v3977_v23  ;;  %vm4158_vm8 = vcmp.gt.f32.partialorder %v3971_v2, 0.5  ;;  %v3271_v36 = vsel %vm202_vm2, %v3251_v47, 0.0  ;;  %v3401_v20 = vadd.f32 %v3235_v52, %v2866_v11  ;;  %v8045_v11 = vld [vmem:[%s8377_s2 + $0x14] ss:$0 sm:$0xff] }
 0x583   : > { %v5354_v40 = vpop.eup %5353  ;;  %v3986_v24 = vsel %vm7980_vm9, %v3985_v12, %v3981_v27  ;;  %v4190_v19 = vsel %vm4158_vm8, %v3971_v2, 0.0  ;;  %v3757_v13 = vand.u32 2147483647, %v7976_v38  ;;  %v3759_v55 = vand.u32 2147483648, %v7976_v38  ;;  %v8057_v12 = vpop.f32.mrf.mxu2 }
 0x584   : > { %v5356_v51 = vpop.eup %5355  ;;  %vm4159_vm12 = vcmp.gt.f32.partialorder %v3986_v24, 0.5  ;;  %4222 = vst.msk [vmem:[%s5484_s24 + $0xa0] sm:$0xff] %vm747_vm4, %v4190_v19  ;;  %v3772_v21 = vand.u32 2147483647, %v7984_v22  ;;  %v3774_v30 = vand.u32 2147483648, %v7984_v22  ;;  %v8013_v61 = vadd.f32 1.0, %v5354_v40  ;;  %v8073_v40 = vpop.f32.mrf.mxu3 }
 0x585   : > { %v4191_v63 = vsel %vm4159_vm12, %v3986_v24, 0.0  ;;  %vm3753_vm15 = vweird.f32 %v7976_v38  ;;  %v8016_v50 = vadd.f32 1.0, %v5356_v51  ;;  %v3340_v25 = vsel %vm8388_vm6, %v3307_v18, %v3323_v62 }
 0x586   : > { %v5358_v56 = vpop.eup %5357  ;;  %4223 = vst.msk [vmem:[%s5484_s24 + $0xa8] sm:$0xff] %vm747_vm4, %v4191_v63  ;;  %vm3768_vm10 = vweird.f32 %v7984_v22  ;;  %5361 = vrcp.f32 %v8013_v61  ;;  %v3400_v42 = vadd.f32 %v3271_v36, %v7945_v48  ;;  %v3433_v9 = vadd.f32 %v3401_v20, %v7882_v41 }
 0x587   : > { %v5360_v26 = vpop.eup %5359  ;;  %v3749_v1 = vmul.f32 %v5358_v56, %v7976_v38  ;;  %vm8029_vm11 = vcmp.eq.f32.partialorder %v3757_v13, 8.507059e+37  ;;  %v3760_v10 = vor.u32 1.1754944e-38, %v3759_v55  ;;  %5363 = vrcp.f32 %v8016_v50 }
 0x588   : > { %v3764_v43 = vmul.f32 %v5360_v26, %v7984_v22  ;;  %vm8035_vm13 = vcmp.eq.f32.partialorder %v3772_v21, 8.507059e+37  ;;  %v3775_v3 = vor.u32 1.1754944e-38, %v3774_v30  ;;  %v3997_v48 = vand.u32 2147483647, %v8013_v61  ;;  %v3094_v21 = vpop.f32.mrf.mxu1  ;;  %v2595_v22 = vpop.f32.mrf.mxu0 }
 0x589   : > { %v3750_v41 = vsub.f32 1.0, %v3749_v1  ;;  %vm3754_vm14 = vweird.f32 %v5358_v56  ;;  %vm3769_vm0 = vweird.f32 %v5360_v26  ;;  %v3999_v44 = vand.u32 2147483648, %v8013_v61 }
 0x58a   : > { %v3765_v46 = vsub.f32 1.0, %v3764_v43  ;;  %v3432_v14 = vadd.f32 %v3400_v42, %v7485_v0  ;;  %v3470_v53 = vmul.f32 %v8045_v11, %v3433_v9  ;;  %v3356_v7 = vsel %vm8388_vm6, %v3323_v62, %v3307_v18  ;;  %vm3755_vm8 = vmor %vm3753_vm15, %vm3754_vm14 }
 0x58b   : > { %v3751_v45 = vmul.f32 %v5358_v56, %v3750_v41  ;;  %vm3993_vm1 = vweird.f32 %v8013_v61  ;;  %v4012_v28 = vand.u32 2147483647, %v8016_v50  ;;  %v4014_v49 = vand.u32 2147483648, %v8016_v50  ;;  %vm3770_vm6 = vmor %vm3768_vm10, %vm3769_vm0 }
 0x58c   : > { %v3385_v0 = vsel %vm205_vm3, %v3356_v7, 0.0  ;;  %v5362_v47 = vpop.eup %5361  ;;  %v3766_v5 = vmul.f32 %v5360_v26, %v3765_v46  ;;  %v3469_v23 = vmul.f32 %v8045_v11, %v3432_v14  ;;  %v3507_v18 = vadd.f32 %v8063_v4, %v3470_v53 }
 0x58d   : > { %v3448_v62 = vadd.f32 %v7475_v15, %v3340_v25  ;;  %v5364_v2 = vpop.eup %5363  ;;  %v3752_v52 = vadd.f32 %v5358_v56, %v3751_v45  ;;  %v3989_v27 = vmul.f32 %v5362_v47, %v8013_v61  ;;  %vm3994_vm9 = vweird.f32 %v5362_v47  ;;  %v2870_v45 = vpop.f32.mrf.mxu2 }
 0x58e   : > { %vm8068_vm7 = vcmp.eq.f32.partialorder %v3997_v48, 8.507059e+37  ;;  %v3449_v20 = vadd.f32 %v7478_v31, %v3385_v0  ;;  %v3767_v24 = vadd.f32 %v5360_v26, %v3766_v5  ;;  %v4004_v15 = vmul.f32 %v5364_v2, %v8016_v50  ;;  %v8558_v48 = vld [vmem:[#allocation61_spill] sm:$0xff] }
 0x58f   : > { %vm4009_vm12 = vweird.f32 %v5364_v2  ;;  %v3506_v19 = vadd.f32 %v8063_v4, %v3469_v23  ;;  %v3756_v13 = vsel %vm3755_vm8, %v5358_v56, %v3752_v52  ;;  %v3990_v55 = vsub.f32 1.0, %v3989_v27  ;;  %v8559_v52 = vld [vmem:[#allocation62_spill] sm:$0xff] }
 0x590   : > { %v5089_v51 = vmul.f32 -1.442695, %v3507_v18  ;;  %v3485_v31 = vmul.f32 %v8045_v11, %v3448_v62  ;;  %v3761_v38 = vsel %vm8029_vm11, %v3760_v10, %v3756_v13  ;;  %v3771_v30 = vsel %vm3770_vm6, %v5360_v26, %v3767_v24  ;;  %vm3995_vm6 = vmor %vm3993_vm1, %vm3994_vm9 }
 0x591   : > { %v4005_v63 = vsub.f32 1.0, %v4004_v15  ;;  %v5088_v25 = vmul.f32 -1.442695, %v3506_v19  ;;  %vm4144_vm15 = vcmp.gt.f32.partialorder %v3761_v38, 0.5  ;;  %v3776_v56 = vsel %vm8035_vm13, %v3775_v3, %v3771_v30  ;;  %v8560_v15 = vld [vmem:[#allocation60_spill] sm:$0xff] }
 0x592   : > { %v3991_v42 = vmul.f32 %v5362_v47, %v3990_v55  ;;  %5365 = vpow2.f32 %v5089_v51  ;;  %v4176_v9 = vsel %vm4144_vm15, %v3761_v38, 0.0  ;;  %vm4145_vm10 = vcmp.gt.f32.partialorder %v3776_v56, 0.5 }
 0x593   : > { %v4006_v1 = vmul.f32 %v5364_v2, %v4005_v63  ;;  %5367 = vpow2.f32 %v5088_v25  ;;  %4208 = vst.msk [vmem:[%s5484_s24 + $0x30] sm:$0xff] %vm747_vm4, %v4176_v9  ;;  %v4177_v43 = vsel %vm4145_vm10, %v3776_v56, 0.0  ;;  %v3486_v26 = vmul.f32 %v8045_v11, %v3449_v20  ;;  %v3096_v20 = vpop.f32.mrf.mxu1 }
 0x594   : > { %v3992_v16 = vadd.f32 %v5362_v47, %v3991_v42  ;;  %v3522_v10 = vadd.f32 %v8063_v4, %v3485_v31  ;;  %4209 = vst.msk [vmem:[%s5484_s24 + $0x38] sm:$0xff] %vm747_vm4, %v4177_v43  ;;  %v4000_v37 = vor.u32 1.1754944e-38, %v3999_v44  ;;  %vm4008_vm11 = vweird.f32 %v8016_v50 }
 0x595   : > { %v4007_v3 = vadd.f32 %v5364_v2, %v4006_v1  ;;  %v2596_v41 = vadd.f32 %v2595_v22, %v8558_v48  ;;  %vm4010_vm13 = vmor %vm4008_vm11, %vm4009_vm12  ;;  %v4015_v14 = vor.u32 1.1754944e-38, %v4014_v49  ;;  %v3523_v53 = vadd.f32 %v8063_v4, %v3486_v26  ;;  %v2598_v26 = vpop.f32.mrf.mxu0 }
 0x596   : > { %v3996_v46 = vsel %vm3995_vm6, %v5362_v47, %v3992_v16  ;;  %v5104_v7 = vmul.f32 -1.442695, %v3522_v10  ;;  %vm4013_vm14 = vcmp.eq.f32.partialorder %v4012_v28, 8.507059e+37  ;;  %v3185_v47 = vpop.f32.mrf.mxu3  ;;  %v2871_v27 = vadd.f32 %v2870_v45, %v8559_v52 }
 0x597   : > { %v4001_v0 = vsel %vm8068_vm7, %v4000_v37, %v3996_v46  ;;  %v4011_v61 = vsel %vm4010_vm13, %v5364_v2, %v4007_v3  ;;  %v3219_v44 = vrot.slane %v2596_v41, 7  ;;  %v5105_v50 = vmul.f32 -1.442695, %v3523_v53 }
 0x598   : > { %v5366_v5 = vpop.eup %5365  ;;  %v4016_v23 = vsel %vm4013_vm14, %v4015_v14, %v4011_v61  ;;  %vm4160_vm0 = vcmp.gt.f32.partialorder %v4001_v0, 0.5  ;;  %5369 = vpow2.f32 %v5104_v7  ;;  %v3186_v24 = vadd.f32 %v3185_v47, %v3096_v20 }
 0x599   : > { %v5368_v18 = vpop.eup %5367  ;;  %vm4161_vm1 = vcmp.gt.f32.partialorder %v4016_v23, 0.5  ;;  %v4192_v49 = vsel %vm4160_vm0, %v4001_v0, 0.0  ;;  %v8103_v62 = vadd.f32 1.0, %v5366_v5  ;;  %5371 = vpow2.f32 %v5105_v50  ;;  %v8567_v0 = vld [vmem:[#allocation63_spill] sm:$0xff] }
 0x59a   : > { %v4193_v36 = vsel %vm4161_vm1, %v4016_v23, 0.0  ;;  %4224 = vst.msk [vmem:[%s5484_s24 + $0xb0] sm:$0xff] %vm747_vm4, %v4192_v49  ;;  %v8108_v2 = vadd.f32 1.0, %v5368_v18  ;;  %v3252_v28 = vsel %vm1560_vm5, %v3219_v44, %v3203_v6  ;;  %v2869_v19 = vadd.f32 %v8057_v12, %v8560_v15 }
 0x59b   : > { %4225 = vst.msk [vmem:[%s5484_s24 + $0xb8] sm:$0xff] %vm747_vm4, %v4193_v36  ;;  %5373 = vrcp.f32 %v8103_v62  ;;  %v3184_v13 = vadd.f32 %v8073_v40, %v3094_v21  ;;  %v3236_v55 = vsel %vm1560_vm5, %v3203_v6, %v3219_v44  ;;  %v3804_v51 = vand.u32 2147483648, %v8103_v62 }
 0x59c   : > { %5375 = vrcp.f32 %v8108_v2  ;;  %v3273_v31 = vsel %vm202_vm2, %v3252_v28, 0.0  ;;  %v3403_v38 = vadd.f32 %v3236_v55, %v2871_v27  ;;  %v3789_v63 = vand.u32 2147483648, %v8108_v2  ;;  %v8171_v27 = vpop.f32.mrf.mxu2 }
 0x59d   : > { %v3802_v25 = vand.u32 2147483647, %v8103_v62  ;;  %v3402_v56 = vadd.f32 %v3273_v31, %v2869_v19  ;;  %v3787_v12 = vand.u32 2147483647, %v8108_v2  ;;  %v3324_v32 = vrot.slane %v3186_v24, 1  ;;  %v8175_v19 = vpop.f32.mrf.mxu1 }
 0x59e   : > { %v5370_v30 = vpop.eup %5369  ;;  %v3371_v6 = vsel %vm205_vm3, %v7518_v58, 0.0  ;;  %vm3798_vm9 = vweird.f32 %v8103_v62  ;;  %v3308_v42 = vrot.slane %v3184_v13, 1  ;;  %vm3783_vm7 = vweird.f32 %v8108_v2  ;;  %v8165_v50 = vpop.f32.mrf.mxu3 }
 0x59f   : > { %v8131_v40 = vadd.f32 1.0, %v5370_v30  ;;  %v5372_v21 = vpop.eup %5371  ;;  %v3434_v22 = vadd.f32 %v3402_v56, %v7514_v35  ;;  %v3805_v1 = vor.u32 1.1754944e-38, %v3804_v51  ;;  %v3435_v16 = vadd.f32 %v3403_v38, %v3371_v6 }
 0x5a0   : > { %v8139_v43 = vadd.f32 1.0, %v5372_v21  ;;  %v3790_v37 = vor.u32 1.1754944e-38, %v3789_v63  ;;  %vm8143_vm8 = vcmp.eq.f32.partialorder %v3802_v25, 8.507059e+37  ;;  %vm8150_vm12 = vcmp.eq.f32.partialorder %v3787_v12, 8.507059e+37 }
 0x5a1   : > { %v5374_v9 = vpop.eup %5373  ;;  %5377 = vrcp.f32 %v8131_v40  ;;  %v4029_v35 = vand.u32 2147483648, %v8131_v40  ;;  %v3471_v48 = vmul.f32 %v8045_v11, %v3434_v22  ;;  %vm8565_vm15 = vcmp.lt.s32.totalorder %v5761_v57, 7  ;;  %v2600_v22 = vpop.f32.mrf.mxu0 }
 0x5a2   : > { %v5376_v10 = vpop.eup %5375  ;;  %v3794_v3 = vmul.f32 %v5374_v9, %v8103_v62  ;;  %5379 = vrcp.f32 %v8139_v43  ;;  %v3341_v14 = vsel %vm8565_vm15, %v3308_v42, %v3324_v32  ;;  %vm8566_vm10 = vmmov %vm8565_vm15  ;;  %vm3799_vm6 = vweird.f32 %v5374_v9 }
 0x5a3   : > { %v3779_v41 = vmul.f32 %v5376_v10, %v8108_v2  ;;  %v3357_v53 = vsel %vm8566_vm10, %v3324_v32, %v3308_v42  ;;  %v4027_v45 = vand.u32 2147483647, %v8131_v40  ;;  %v8161_v61 = vadd.f32 %v2598_v26, %v8567_v0  ;;  %vm3800_vm0 = vmor %vm3798_vm9, %vm3799_vm6 }
 0x5a4   : > { %v3795_v7 = vsub.f32 1.0, %v3794_v3  ;;  %vm3784_vm11 = vweird.f32 %v5376_v10  ;;  %v3508_v5 = vadd.f32 %v8063_v4, %v3471_v48  ;;  %v3472_v23 = vmul.f32 %v8045_v11, %v3435_v16  ;;  %v8572_v48 = vld [vmem:[#allocation66_spill] sm:$0xff]  ;;  %v2875_v0 = vpop.f32.mrf.mxu2 }
 0x5a5   : > { %v3780_v44 = vsub.f32 1.0, %v3779_v41  ;;  %vm4023_vm13 = vweird.f32 %v8131_v40  ;;  %v4030_v18 = vor.u32 1.1754944e-38, %v4029_v35  ;;  %v3387_v49 = vsel %vm205_vm3, %v3357_v53, 0.0  ;;  %vm3785_vm1 = vmor %vm3783_vm7, %vm3784_vm11 }
 0x5a6   : > { %v3796_v47 = vmul.f32 %v5374_v9, %v3795_v7  ;;  %v3450_v52 = vadd.f32 %v7504_v39, %v3341_v14  ;;  %v4042_v20 = vand.u32 2147483647, %v8139_v43  ;;  %v5090_v24 = vmul.f32 -1.442695, %v3508_v5  ;;  %v3190_v46 = vpop.f32.mrf.mxu3 }
 0x5a7   : > { %v5378_v36 = vpop.eup %5377  ;;  %v3781_v28 = vmul.f32 %v5376_v10, %v3780_v44  ;;  %v3509_v15 = vadd.f32 %v8063_v4, %v3472_v23  ;;  %vm8178_vm14 = vcmp.eq.f32.partialorder %v4027_v45, 8.507059e+37  ;;  %v4044_v39 = vand.u32 2147483648, %v8139_v43  ;;  %v3101_v23 = vpop.f32.mrf.mxu1 }
 0x5a8   : > { %v3797_v13 = vadd.f32 %v5374_v9, %v3796_v47  ;;  %v4019_v55 = vmul.f32 %v5378_v36, %v8131_v40  ;;  %v3451_v31 = vadd.f32 %v7507_v33, %v3387_v49  ;;  %v5380_v38 = vpop.eup %5379  ;;  %5381 = vpow2.f32 %v5090_v24 }
 0x5a9   : > { %v3782_v30 = vadd.f32 %v5376_v10, %v3781_v28  ;;  %v5091_v63 = vmul.f32 -1.442695, %v3509_v15  ;;  %v3487_v25 = vmul.f32 %v8045_v11, %v3450_v52  ;;  %vm4024_vm15 = vweird.f32 %v5378_v36  ;;  %v8573_v28 = vld [vmem:[#allocation68_spill] sm:$0xff] }
 0x5aa   : > { %v3801_v56 = vsel %vm3800_vm0, %v5374_v9, %v3797_v13  ;;  %v4020_v12 = vsub.f32 1.0, %v4019_v55  ;;  %v4034_v33 = vmul.f32 %v5380_v38, %v8139_v43  ;;  %v3488_v62 = vmul.f32 %v8045_v11, %v3451_v31 }
 0x5ab   : > { %v3786_v32 = vsel %vm3785_vm1, %v5376_v10, %v3782_v30  ;;  %v3806_v21 = vsel %vm8143_vm8, %v3805_v1, %v3801_v56  ;;  %5383 = vpow2.f32 %v5091_v63  ;;  %v3524_v16 = vadd.f32 %v8063_v4, %v3487_v25 }
 0x5ac   : > { %v3791_v6 = vsel %vm8150_vm12, %v3790_v37, %v3786_v32  ;;  %vm4147_vm9 = vcmp.gt.f32.partialorder %v3806_v21, 0.5  ;;  %v4021_v2 = vmul.f32 %v5378_v36, %v4020_v12  ;;  %v4035_v42 = vsub.f32 1.0, %v4034_v33  ;;  %vm4025_vm12 = vmor %vm4023_vm13, %vm4024_vm15 }
 0x5ad   : > { %vm4146_vm7 = vcmp.gt.f32.partialorder %v3791_v6, 0.5  ;;  %v4179_v9 = vsel %vm4147_vm9, %v3806_v21, 0.0  ;;  %v3525_v26 = vadd.f32 %v8063_v4, %v3488_v62  ;;  %vm4039_vm8 = vweird.f32 %v5380_v38 }
 0x5ae   : > { %v4178_v10 = vsel %vm4146_vm7, %v3791_v6, 0.0  ;;  %4211 = vst.msk [vmem:[%s5484_s24 + $0x48] sm:$0xff] %vm747_vm4, %v4179_v9  ;;  %v4022_v1 = vadd.f32 %v5378_v36, %v4021_v2  ;;  %v4036_v3 = vmul.f32 %v5380_v38, %v4035_v42  ;;  %v5382_v58 = vpop.eup %5381  ;;  %vm4038_vm10 = vweird.f32 %v8139_v43  ;;  %v3193_v6 = vpop.f32.mrf.mxu3 }
 0x5af   : > { %4210 = vst.msk [vmem:[%s5484_s24 + $0x40] sm:$0xff] %vm747_vm4, %v4178_v10  ;;  %vm8207_vm6 = vcmp.eq.f32.partialorder %v4042_v20, 8.507059e+37  ;;  %v5106_v35 = vmul.f32 -1.442695, %v3524_v16  ;;  %v2601_v41 = vadd.f32 %v2600_v22, %v8572_v48  ;;  %v8212_v7 = vadd.f32 1.0, %v5382_v58  ;;  %vm4040_vm11 = vmor %vm4038_vm10, %vm4039_vm8 }
 0x5b0   : > { %v4026_v14 = vsel %vm4025_vm12, %v5378_v36, %v4022_v1  ;;  %v4037_v53 = vadd.f32 %v5380_v38, %v4036_v3  ;;  %v5107_v45 = vmul.f32 -1.442695, %v3525_v26  ;;  %v4045_v43 = vor.u32 1.1754944e-38, %v4044_v39  ;;  %v8574_v39 = vld [vmem:[#allocation64_spill] sm:$0xff]  ;;  %v3104_v3 = vpop.f32.mrf.mxu1 }
 0x5b1   : > { %v5384_v44 = vpop.eup %5383  ;;  %v4031_v40 = vsel %vm8178_vm14, %v4030_v18, %v4026_v14  ;;  %5385 = vpow2.f32 %v5106_v35  ;;  %v3220_v5 = vrot.slane %v2601_v41, 7  ;;  %v3204_v49 = vrot.slane %v8161_v61, 7 }
 0x5b2   : > { %v4041_v47 = vsel %vm4040_vm11, %v5380_v38, %v4037_v53  ;;  %vm4162_vm13 = vcmp.gt.f32.partialorder %v4031_v40, 0.5  ;;  %5387 = vrcp.f32 %v8212_v7  ;;  %v2876_v20 = vadd.f32 %v2875_v0, %v8573_v28 }
 0x5b3   : > { %v4046_v52 = vsel %vm8207_vm6, %v4045_v43, %v4041_v47  ;;  %v4194_v36 = vsel %vm4162_vm13, %v4031_v40, 0.0  ;;  %v3191_v18 = vadd.f32 %v3190_v46, %v3101_v23  ;;  %v8224_v24 = vadd.f32 1.0, %v5384_v44 }
 0x5b4   : > { %vm4163_vm14 = vcmp.gt.f32.partialorder %v4046_v52, 0.5  ;;  %4226 = vst.msk [vmem:[%s5484_s24 + $0xc0] sm:$0xff] %vm747_vm4, %v4194_v36  ;;  %5389 = vpow2.f32 %v5107_v45  ;;  %v3189_v15 = vadd.f32 %v8165_v50, %v8175_v19  ;;  %v3817_v55 = vand.u32 2147483647, %v8212_v7 }
 0x5b5   : > { %v4195_v13 = vsel %vm4163_vm14, %v4046_v52, 0.0  ;;  %v3819_v61 = vand.u32 2147483648, %v8212_v7  ;;  %v3253_v51 = vsel %vm1560_vm5, %v3220_v5, %v3204_v49  ;;  %5391 = vrcp.f32 %v8224_v24 }
 0x5b6   : > { %4227 = vst.msk [vmem:[%s5484_s24 + $0xc8] sm:$0xff] %vm747_vm4, %v4195_v13  ;;  %v2874_v31 = vadd.f32 %v8171_v27, %v8574_v39  ;;  %v3237_v38 = vsel %vm1560_vm5, %v3204_v49, %v3220_v5  ;;  %v3373_v50 = vsel %vm205_vm3, %v7545_v17, 0.0  ;;  %v3275_v19 = vsel %vm202_vm2, %v3253_v51, 0.0 }
 0x5b7   : > { %v5386_v30 = vpop.eup %5385  ;;  %v3405_v63 = vadd.f32 %v3237_v38, %v2876_v20  ;;  %v3325_v25 = vrot.slane %v3191_v18, 1  ;;  %vm3813_vm0 = vweird.f32 %v8212_v7  ;;  %v3309_v33 = vrot.slane %v3189_v15, 1 }
 0x5b8   : > { %v5388_v56 = vpop.eup %5387  ;;  %v8245_v12 = vadd.f32 1.0, %v5386_v30  ;;  %v3404_v27 = vadd.f32 %v3275_v19, %v2874_v31  ;;  %vm8248_vm5 = vcmp.eq.f32.partialorder %v3817_v55, 8.507059e+37  ;;  %v3820_v62 = vor.u32 1.1754944e-38, %v3819_v61  ;;  %v3195_v30 = vpop.f32.mrf.mxu3 }
 0x5b9   : > { %v3809_v32 = vmul.f32 %v5388_v56, %v8212_v7  ;;  %v3437_v17 = vadd.f32 %v3405_v63, %v3373_v50  ;;  %v3832_v42 = vand.u32 2147483647, %v8224_v24  ;;  %v3834_v22 = vand.u32 2147483648, %v8224_v24 }
 0x5ba   : > { %v5390_v2 = vpop.eup %5389  ;;  %5393 = vrcp.f32 %v8245_v12  ;;  %vm8577_vm2 = vcmp.lt.s32.totalorder %v5761_v57, 7  ;;  %vm3828_vm1 = vweird.f32 %v8224_v24  ;;  %v3436_v10 = vadd.f32 %v3404_v27, %v7541_v29  ;;  %v3106_v27 = vpop.f32.mrf.mxu1 }
 0x5bb   : > { %v3342_v9 = vsel %vm8577_vm2, %v3309_v33, %v3325_v25  ;;  %v3810_v16 = vsub.f32 1.0, %v3809_v32  ;;  %v8258_v26 = vadd.f32 1.0, %v5390_v2  ;;  %v3474_v1 = vmul.f32 %v8045_v11, %v3437_v17  ;;  %v5392_v58 = vpop.eup %5391  ;;  %vm8578_vm9 = vmmov %vm8577_vm2 }
 0x5bc   : > { %vm3814_vm15 = vweird.f32 %v5388_v56  ;;  %v4059_v37 = vand.u32 2147483648, %v8245_v12  ;;  %v3358_v35 = vsel %vm8578_vm9, %v3325_v25, %v3309_v33  ;;  %v8265_v48 = vadd.f32 %v3193_v6, %v3104_v3 }
 0x5bd   : > { %v3811_v41 = vmul.f32 %v5388_v56, %v3810_v16  ;;  %v3824_v46 = vmul.f32 %v5392_v58, %v8224_v24  ;;  %v4057_v14 = vand.u32 2147483647, %v8245_v12  ;;  %5395 = vrcp.f32 %v8258_v26  ;;  %vm3815_vm12 = vmor %vm3813_vm0, %vm3814_vm15 }
 0x5be   : > { %vm8270_vm7 = vcmp.eq.f32.partialorder %v3832_v42, 8.507059e+37  ;;  %v3835_v53 = vor.u32 1.1754944e-38, %v3834_v22  ;;  %v3473_v45 = vmul.f32 %v8045_v11, %v3436_v10  ;;  %v3452_v0 = vadd.f32 %v7533_v34, %v3342_v9 }
 0x5bf   : > { %v3812_v44 = vadd.f32 %v5388_v56, %v3811_v41  ;;  %v3825_v40 = vsub.f32 1.0, %v3824_v46  ;;  %vm4053_vm8 = vweird.f32 %v8245_v12  ;;  %v3511_v43 = vadd.f32 %v8063_v4, %v3474_v1 }
 0x5c0   : > { %v3389_v5 = vsel %vm205_vm3, %v3358_v35, 0.0  ;;  %v5394_v23 = vpop.eup %5393  ;;  %vm3829_vm10 = vweird.f32 %v5392_v58  ;;  %v4060_v47 = vor.u32 1.1754944e-38, %v4059_v37  ;;  %v3510_v49 = vadd.f32 %v8063_v4, %v3473_v45 }
 0x5c1   : > { %v3453_v34 = vadd.f32 %v7536_v60, %v3389_v5  ;;  %v3816_v52 = vsel %vm3815_vm12, %v5388_v56, %v3812_v44  ;;  %v3826_v36 = vmul.f32 %v5392_v58, %v3825_v40  ;;  %v4049_v28 = vmul.f32 %v5394_v23, %v8245_v12  ;;  %vm3830_vm13 = vmor %vm3828_vm1, %vm3829_vm10 }
 0x5c2   : > { %vm8286_vm6 = vcmp.eq.f32.partialorder %v4057_v14, 8.507059e+37  ;;  %v4072_v18 = vand.u32 2147483647, %v8258_v26  ;;  %v3821_v7 = vsel %vm8248_vm5, %v3820_v62, %v3816_v52  ;;  %v5092_v15 = vmul.f32 -1.442695, %v3510_v49 }
 0x5c3   : > { %v5093_v13 = vmul.f32 -1.442695, %v3511_v43  ;;  %v3489_v55 = vmul.f32 %v8045_v11, %v3452_v0  ;;  %v5396_v61 = vpop.eup %5395  ;;  %vm4148_vm11 = vcmp.gt.f32.partialorder %v3821_v7, 0.5  ;;  %v3827_v60 = vadd.f32 %v5392_v58, %v3826_v36 }
 0x5c4   : > { %v4050_v51 = vsub.f32 1.0, %v4049_v28  ;;  %v3490_v39 = vmul.f32 %v8045_v11, %v3453_v34  ;;  %v4180_v31 = vsel %vm4148_vm11, %v3821_v7, 0.0  ;;  %vm4054_vm14 = vweird.f32 %v5394_v23 }
 0x5c5   : > { %v4064_v38 = vmul.f32 %v5396_v61, %v8258_v26  ;;  %5397 = vpow2.f32 %v5092_v15  ;;  %4212 = vst.msk [vmem:[%s5484_s24 + $0x50] sm:$0xff] %vm747_vm4, %v4180_v31  ;;  %v3831_v50 = vsel %vm3830_vm13, %v5392_v58, %v3827_v60  ;;  %v3526_v63 = vadd.f32 %v8063_v4, %v3489_v55  ;;  %vm4055_vm5 = vmor %vm4053_vm8, %vm4054_vm14 }
 0x5c6   : > { %v4051_v19 = vmul.f32 %v5394_v23, %v4050_v51  ;;  %5399 = vpow2.f32 %v5093_v13  ;;  %v3836_v25 = vsel %vm8270_vm7, %v3835_v53, %v3831_v50  ;;  %v4074_v24 = vand.u32 2147483648, %v8258_v26 }
 0x5c7   : > { %v4065_v56 = vsub.f32 1.0, %v4064_v38  ;;  %v3527_v33 = vadd.f32 %v8063_v4, %v3490_v39  ;;  %vm4149_vm0 = vcmp.gt.f32.partialorder %v3836_v25, 0.5  ;;  %v5108_v21 = vmul.f32 -1.442695, %v3526_v63 }
 0x5c8   : > { %v4052_v32 = vadd.f32 %v5394_v23, %v4051_v19  ;;  %v3196_v62 = vadd.f32 %v3195_v30, %v3106_v27  ;;  %v4181_v17 = vsel %vm4149_vm0, %v3836_v25, 0.0  ;;  %vm4069_vm2 = vweird.f32 %v5396_v61 }
 0x5c9   : > { %v4066_v6 = vmul.f32 %v5396_v61, %v4065_v56  ;;  %v5109_v2 = vmul.f32 -1.442695, %v3527_v33  ;;  %4213 = vst.msk [vmem:[%s5484_s24 + $0x58] sm:$0xff] %vm747_vm4, %v4181_v17  ;;  %vm4068_vm1 = vweird.f32 %v8258_v26  ;;  %5401 = vpow2.f32 %v5108_v21 }
 0x5ca   : > { %v4056_v42 = vsel %vm4055_vm5, %v5394_v23, %v4052_v32  ;;  %v3326_v22 = vrot.slane %v3196_v62, 1  ;;  %v3310_v12 = vrot.slane %v8265_v48, 1  ;;  %vm4070_vm15 = vmor %vm4068_vm1, %vm4069_vm2  ;;  %vm4073_vm9 = vcmp.eq.f32.partialorder %v4072_v18, 8.507059e+37 }
 0x5cb   : > { %v5398_v9 = vpop.eup %5397  ;;  %v4061_v16 = vsel %vm8286_vm6, %v4060_v47, %v4056_v42  ;;  %v4067_v10 = vadd.f32 %v5396_v61, %v4066_v6  ;;  %5403 = vpow2.f32 %v5109_v2  ;;  %v4075_v3 = vor.u32 1.1754944e-38, %v4074_v24 }
 0x5cc   : > { %v5400_v1 = vpop.eup %5399  ;;  %vm4164_vm7 = vcmp.gt.f32.partialorder %v4061_v16, 0.5  ;;  %v3638_v58 = vadd.f32 1.0, %v5398_v9  ;;  %vm8583_vm8 = vcmp.lt.s32.totalorder %v5761_v57, 7 }
 0x5cd   : > { %v4071_v37 = vsel %vm4070_vm15, %v5396_v61, %v4067_v10  ;;  %v4196_v26 = vsel %vm4164_vm7, %v4061_v16, 0.0  ;;  %v3639_v35 = vadd.f32 1.0, %v5400_v1  ;;  %v3359_v41 = vsel %vm8583_vm8, %v3326_v22, %v3310_v12  ;;  %vm8584_vm10 = vmmov %vm8583_vm8 }
 0x5ce   : > { %v4076_v46 = vsel %vm4073_vm9, %v4075_v3, %v4071_v37  ;;  %4228 = vst.msk [vmem:[%s5484_s24 + $0xd0] sm:$0xff] %vm747_vm4, %v4196_v26  ;;  %5405 = vrcp.f32 %v3638_v58  ;;  %v3343_v29 = vsel %vm8584_vm10, %v3310_v12, %v3326_v22  ;;  %v3391_v53 = vsel %vm205_vm3, %v3359_v41, 0.0 }
 0x5cf   : > { %vm4165_vm12 = vcmp.gt.f32.partialorder %v4076_v46, 0.5  ;;  %5407 = vrcp.f32 %v3639_v35  ;;  %v5402_v48 = vpop.eup %5401  ;;  %v3847_v44 = vand.u32 2147483647, %v3638_v58  ;;  %v3849_v43 = vand.u32 2147483648, %v3638_v58 }
 0x5d0   : > { %v4197_v14 = vsel %vm4165_vm12, %v4076_v46, 0.0  ;;  %v8325_v0 = vadd.f32 1.0, %v5402_v48  ;;  %v3454_v5 = vadd.f32 %v7558_v8, %v3343_v29  ;;  %v3455_v23 = vadd.f32 %v7561_v54, %v3391_v53 }
 0x5d1   : > { %v5404_v45 = vpop.eup %5403  ;;  %4229 = vst.msk [vmem:[%s5484_s24 + $0xd8] sm:$0xff] %vm747_vm4, %v4197_v14  ;;  %v3862_v47 = vand.u32 2147483647, %v3639_v35  ;;  %v3864_v49 = vand.u32 2147483648, %v3639_v35  ;;  %vm3843_vm3 = vweird.f32 %v3638_v58  ;;  %vm8333_vm6 = vcmp.eq.f32.partialorder %v3847_v44, 8.507059e+37 }
 0x5d2   : > { %v8327_v40 = vadd.f32 1.0, %v5404_v45  ;;  %5409 = vrcp.f32 %v8325_v0  ;;  %vm3858_vm11 = vweird.f32 %v3639_v35  ;;  %v3850_v20 = vor.u32 1.1754944e-38, %v3849_v43 }
 0x5d3   : > { %v3491_v8 = vmul.f32 %v8045_v11, %v3454_v5  ;;  %v3492_v54 = vmul.f32 %v8045_v11, %v3455_v23  ;;  %vm8339_vm13 = vcmp.eq.f32.partialorder %v3862_v47, 8.507059e+37  ;;  %v3865_v15 = vor.u32 1.1754944e-38, %v3864_v49 }
 0x5d4   : > { %v5406_v57 = vpop.eup %5405  ;;  %5411 = vrcp.f32 %v8327_v40  ;;  %v4087_v13 = vand.u32 2147483647, %v8325_v0  ;;  %v4089_v38 = vand.u32 2147483648, %v8325_v0  ;;  %v4102_v19 = vand.u32 2147483647, %v8327_v40 }
 0x5d5   : > { %v5408_v59 = vpop.eup %5407  ;;  %v3839_v34 = vmul.f32 %v5406_v57, %v3638_v58  ;;  %vm3844_vm14 = vweird.f32 %v5406_v57  ;;  %v3528_v60 = vadd.f32 %v8063_v4, %v3491_v8  ;;  %v3529_v51 = vadd.f32 %v8063_v4, %v3492_v54 }
 0x5d6   : > { %v3854_v36 = vmul.f32 %v5408_v59, %v3639_v35  ;;  %vm3859_vm0 = vweird.f32 %v5408_v59  ;;  %vm3845_vm5 = vmor %vm3843_vm3, %vm3844_vm14  ;;  %v4104_v24 = vand.u32 2147483648, %v8327_v40  ;;  %vm4083_vm8 = vweird.f32 %v8325_v0 }
 0x5d7   : > { %v3840_v28 = vsub.f32 1.0, %v3839_v34  ;;  %v5110_v63 = vmul.f32 -1.442695, %v3528_v60  ;;  %v5111_v4 = vmul.f32 -1.442695, %v3529_v51  ;;  %vm3860_vm2 = vmor %vm3858_vm11, %vm3859_vm0  ;;  %v4090_v9 = vor.u32 1.1754944e-38, %v4089_v38 }
 0x5d8   : > { %v3855_v18 = vsub.f32 1.0, %v3854_v36  ;;  %v5410_v55 = vpop.eup %5409  ;;  %vm4098_vm10 = vweird.f32 %v8327_v40  ;;  %vm4088_vm3 = vcmp.eq.f32.partialorder %v4087_v13, 8.507059e+37  ;;  %v4105_v12 = vor.u32 1.1754944e-38, %v4104_v24 }
 0x5d9   : > { %v3841_v61 = vmul.f32 %v5406_v57, %v3840_v28  ;;  %v4079_v11 = vmul.f32 %v5410_v55, %v8325_v0  ;;  %vm4084_vm1 = vweird.f32 %v5410_v55  ;;  %5413 = vpow2.f32 %v5110_v63 }
 0x5da   : > { %v5412_v39 = vpop.eup %5411  ;;  %v3856_v31 = vmul.f32 %v5408_v59, %v3855_v18  ;;  %5415 = vpow2.f32 %v5111_v4  ;;  %vm4085_vm12 = vmor %vm4083_vm8, %vm4084_vm1  ;;  %vm4103_vm11 = vcmp.eq.f32.partialorder %v4102_v19, 8.507059e+37 }
 0x5db   : > { %v3842_v30 = vadd.f32 %v5406_v57, %v3841_v61  ;;  %v4094_v50 = vmul.f32 %v5412_v39, %v8327_v40  ;;  %v4080_v56 = vsub.f32 1.0, %v4079_v11  ;;  %vm4099_vm9 = vweird.f32 %v5412_v39 }
 0x5dc   : > { %v3857_v25 = vadd.f32 %v5408_v59, %v3856_v31 }
 0x5dd   : > { %v3846_v33 = vsel %vm3845_vm5, %v5406_v57, %v3842_v30  ;;  %v4095_v27 = vsub.f32 1.0, %v4094_v50  ;;  %v4081_v62 = vmul.f32 %v5410_v55, %v4080_v56 }
 0x5de   : > { %v3851_v32 = vsel %vm8333_vm6, %v3850_v20, %v3846_v33  ;;  %v3861_v21 = vsel %vm3860_vm2, %v5408_v59, %v3857_v25  ;;  %vm4100_vm6 = vmor %vm4098_vm10, %vm4099_vm9 }
 0x5df   : > { %vm4150_vm15 = vcmp.gt.f32.partialorder %v3851_v32, 0.5  ;;  %v3866_v17 = vsel %vm8339_vm13, %v3865_v15, %v3861_v21  ;;  %v4096_v6 = vmul.f32 %v5412_v39, %v4095_v27  ;;  %v4082_v42 = vadd.f32 %v5410_v55, %v4081_v62  ;;  %v5414_v1 = vpop.eup %5413 }
 0x5e0   : > { %v4182_v2 = vsel %vm4150_vm15, %v3851_v32, 0.0  ;;  %vm4151_vm7 = vcmp.gt.f32.partialorder %v3866_v17, 0.5  ;;  %v5416_v37 = vpop.eup %5415  ;;  %v3656_v35 = vadd.f32 1.0, %v5414_v1 }
 0x5e1   : > { %4214 = vst.msk [vmem:[%s5484_s24 + $0x60] sm:$0xff] %vm747_vm4, %v4182_v2  ;;  %v4183_v22 = vsel %vm4151_vm7, %v3866_v17, 0.0  ;;  %v4097_v16 = vadd.f32 %v5412_v39, %v4096_v6  ;;  %v4086_v10 = vsel %vm4085_vm12, %v5410_v55, %v4082_v42  ;;  %v3657_v46 = vadd.f32 1.0, %v5416_v37 }
 0x5e2   : > { %4215 = vst.msk [vmem:[%s5484_s24 + $0x68] sm:$0xff] %vm747_vm4, %v4183_v22  ;;  %v4091_v3 = vsel %vm4088_vm3, %v4090_v9, %v4086_v10  ;;  %5417 = vrcp.f32 %v3656_v35  ;;  %v4119_v44 = vand.u32 2147483648, %v3656_v35  ;;  %v4117_v5 = vand.u32 2147483647, %v3656_v35 }
 0x5e3   : > { %v4101_v58 = vsel %vm4100_vm6, %v5412_v39, %v4097_v16  ;;  %vm4166_vm13 = vcmp.gt.f32.partialorder %v4091_v3, 0.5  ;;  %5419 = vrcp.f32 %v3657_v46  ;;  %v4134_v23 = vand.u32 2147483648, %v3657_v46 }
 0x5e4   : > { %v4106_v26 = vsel %vm4103_vm11, %v4105_v12, %v4101_v58  ;;  %v4198_v41 = vsel %vm4166_vm13, %v4091_v3, 0.0  ;;  %v4132_v47 = vand.u32 2147483647, %v3657_v46  ;;  %vm4113_vm2 = vweird.f32 %v3656_v35 }
 0x5e5   : > { %vm4167_vm14 = vcmp.gt.f32.partialorder %v4106_v26, 0.5  ;;  %4230 = vst.msk [vmem:[%s5484_s24 + $0xe0] sm:$0xff] %vm747_vm4, %v4198_v41  ;;  %v4120_v59 = vor.u32 1.1754944e-38, %v4119_v44  ;;  %vm4128_vm15 = vweird.f32 %v3657_v46  ;;  %vm4118_vm9 = vcmp.eq.f32.partialorder %v4117_v5, 8.507059e+37 }
 0x5e6   : > { %v4199_v48 = vsel %vm4167_vm14, %v4106_v26, 0.0  ;;  %v4135_v36 = vor.u32 1.1754944e-38, %v4134_v23  ;;  %vm4133_vm8 = vcmp.eq.f32.partialorder %v4132_v47, 8.507059e+37 }
 0x5e7   : > { %4231 = vst.msk [vmem:[%s5484_s24 + $0xe8] sm:$0xff] %vm747_vm4, %v4199_v48 }
 0x5e8   : > { %v5418_v14 = vpop.eup %5417 }
 0x5e9   : > { %v5420_v29 = vpop.eup %5419  ;;  %v4109_v53 = vmul.f32 %v5418_v14, %v3656_v35  ;;  %vm4114_vm0 = vweird.f32 %v5418_v14 }
 0x5ea   : > { %v4124_v45 = vmul.f32 %v5420_v29, %v3657_v46  ;;  %vm4129_vm5 = vweird.f32 %v5420_v29  ;;  %vm4115_vm1 = vmor %vm4113_vm2, %vm4114_vm0 }
 0x5eb   : > { %v4110_v0 = vsub.f32 1.0, %v4109_v53  ;;  %vm4130_vm7 = vmor %vm4128_vm15, %vm4129_vm5 }
 0x5ec   : > { %v4125_v40 = vsub.f32 1.0, %v4124_v45 }
 0x5ed   : > { %v4111_v43 = vmul.f32 %v5418_v14, %v4110_v0 }
 0x5ee   : > { %v4126_v57 = vmul.f32 %v5420_v29, %v4125_v40 }
 0x5ef   : > { %v4112_v49 = vadd.f32 %v5418_v14, %v4111_v43 }
 0x5f0   : > { %v4127_v34 = vadd.f32 %v5420_v29, %v4126_v57 }
 0x5f1   : > { %v4116_v52 = vsel %vm4115_vm1, %v5418_v14, %v4112_v49 }
 0x5f2   : > { %v4121_v28 = vsel %vm4118_vm9, %v4120_v59, %v4116_v52  ;;  %v4131_v20 = vsel %vm4130_vm7, %v5420_v29, %v4127_v34 }
 0x5f3   : > { %v4136_v8 = vsel %vm4133_vm8, %v4135_v36, %v4131_v20  ;;  %vm4168_vm12 = vcmp.gt.f32.partialorder %v4121_v28, 0.5 }
 0x5f4   : > { %vm4169_vm10 = vcmp.gt.f32.partialorder %v4136_v8, 0.5  ;;  %v4200_v54 = vsel %vm4168_vm12, %v4121_v28, 0.0 }
 0x5f5   : > { %v4201_v18 = vsel %vm4169_vm10, %v4136_v8, 0.0  ;;  %4232 = vst.msk [vmem:[%s5484_s24 + $0xf0] sm:$0xff] %vm747_vm4, %v4200_v54 }
 0x5f6   : > { %4233 = vst.msk [vmem:[%s5484_s24 + $0xf8] sm:$0xff] %vm747_vm4, %v4201_v18 }
 0x5f7 PF: > { %s14_s15 = sadd.s32 1, %s5433_s15  }
 0x5f8   : > { %p11_p5 = scmp.ge.s32.totalorder %s14_s15, 4  }
 0x5fa   :  { %13 = sbr.rel (!%p11_p5) target bundleno = 1 (0x1), region = 96 }

</bundles_post_ra>
